<compile_context>
chip_gen: v6e
topology: v6e:2x2x1
jax: 0.10.0
libtpu: 0.0.40
codegen_flags: <defaults>
</compile_context>

<pallas_src>
import functools

import jax
import jax.numpy as jnp
import numpy as np
from jax.experimental import pallas as pl
from jax.experimental.pallas import tpu as pltpu


# ----------------------------------------------------------------------------
# Pallas kernel
# ----------------------------------------------------------------------------
def dqn_chord_kernel(
    emb_ref,      # (S*B, 144)  concatenated p/d/b embeddings
    note_ref,     # (S*B, 133)  raw note features
    pc_ref,       # (S*B, 20)   pre_chord (chord_t_1)
    wemb_ref, wnote_ref, wpc_ref, bin_ref,     # fused front-end: (144,64),(133,64),(20,64),(1,64)
    wih0_ref, whh0_ref, bl0_ref,               # LSTM layer 0: (64,4H), (H,4H), (1,4H)
    wih1_ref, whh1_ref, bl1_ref,               # LSTM layer 1: (H,4H),  (H,4H), (1,4H)
    wh1_ref, bh1_ref,                          # fused 8 first head layers: (H,1024),(1,1024)
    wh2_ref, bh2_ref,                          # block-diag second head layers, zero-padded: (1024,128),(1,128)
    out_ref,      # (S*B, 128)  lane-dense head output (cols >= 24 are zero)
    hc_ref,       # (4*B, H)    [h_layer0; h_layer1; c_layer0; c_layer1]
    hseq_ref,     # scratch (S*B, H): layer-1 output sequence for the heads
    *, S, B,
):
    H = whh0_ref.shape[0]
    H4 = 4 * H
    f32 = jnp.float32

    # ---- fused front end (fc_embedding/fc_t/input_linear folded into weights) ----
    x = (jnp.dot(emb_ref[...], wemb_ref[...], preferred_element_type=f32)
         + jnp.dot(note_ref[...], wnote_ref[...], preferred_element_type=f32)
         + jnp.dot(pc_ref[...], wpc_ref[...], preferred_element_type=f32)
         + bin_ref[...])                                        # (S*B, 64)

    # ---- layer-0 input projection hoisted out of the recurrence (kept in vregs) ----
    gx0 = (jnp.dot(x, wih0_ref[...], preferred_element_type=f32)
           + bl0_ref[...])                                      # (S*B, 4H)

    whh0 = whh0_ref[...]
    wih1 = wih1_ref[...]
    whh1 = whh1_ref[...]
    bl1 = bl1_ref[...]

    # Per-lane activation constants: sigmoid lanes (i, f, o) use
    # 0.5*tanh(0.5x)+0.5; tanh lanes (g) use tanh(x). Torch gate order (i,f,g,o).
    lane = jax.lax.broadcasted_iota(jnp.int32, (1, H4), 1)
    is_g = (lane >= 2 * H) & (lane < 3 * H)
    g_scale = jnp.where(is_g, 1.0, 0.5).astype(f32)             # (1, 4H)
    g_shift = jnp.where(is_g, 0.0, 0.5).astype(f32)             # (1, 4H)

    def activate(gates):
        # single EUP pass over the whole (B, 4H) gate vector
        return jnp.tanh(gates * g_scale) * g_scale + g_shift

    def cell_update(act, c):
        i = act[:, 0 * H:1 * H]
        f = act[:, 1 * H:2 * H]
        g = act[:, 2 * H:3 * H]
        o = act[:, 3 * H:4 * H]
        c = f * c + i * g
        h = o * jnp.tanh(c)
        return h, c

    zero = jnp.zeros((B, H), f32)
    h0, c0, h1, c1 = zero, zero, zero, zero

    # Interleaved two-layer recurrence: layer-0 step t+1 only depends on
    # (h0_t, c0_t), so the unrolled schedule overlaps it with layer-1 step t.
    for t in range(S):
        a0 = activate(gx0[t * B:(t + 1) * B, :]
                      + jnp.dot(h0, whh0, preferred_element_type=f32))
        h0, c0 = cell_update(a0, c0)

        a1 = activate(jnp.dot(h0, wih1, preferred_element_type=f32)
                      + jnp.dot(h1, whh1, preferred_element_type=f32)
                      + bl1)
        h1, c1 = cell_update(a1, c1)
        hseq_ref[t * B:(t + 1) * B, :] = h1     # off the serial chain

    # ---- fused dueling heads ----
    hseq = hseq_ref[...]                                        # (S*B, H)
    hid = jnp.maximum(
        jnp.dot(hseq, wh1_ref[...], preferred_element_type=f32) + bh1_ref[...],
        0.0)                                                    # (S*B, 1024)
    out_ref[...] = (jnp.dot(hid, wh2_ref[...], preferred_element_type=f32)
                    + bh2_ref[...])                             # (S*B, 128), dense

    # Final hidden/cell states as a single sublane-dense 2-D slab.
    hc_ref[0 * B:1 * B, :] = h0
    hc_ref[1 * B:2 * B, :] = h1
    hc_ref[2 * B:3 * B, :] = c0
    hc_ref[3 * B:4 * B, :] = c1


# ----------------------------------------------------------------------------
# Wrapper: embedding gathers, layout plumbing, dueling reduction + pallas_call
# ----------------------------------------------------------------------------
def _split_state(state, params):
    S, B, _ = state.shape
    idx = state[..., :24].astype(jnp.int32)
    p_emb = params["p_tab"][idx[..., 0:8]]      # (S,B,8,6)
    d_emb = params["d_tab"][idx[..., 8:16]]     # (S,B,8,4)
    b_emb = params["b_tab"][idx[..., 16:24]]    # (S,B,8,8)
    # torch: cat((p,d,b), -1).view(S,B,-1)  -> per-window-position interleave
    emb = jnp.concatenate([p_emb, d_emb, b_emb], axis=-1).reshape(S * B, 144)
    note = state[..., 24:157].reshape(S * B, 133)
    pre_chord = state[..., 157:177].reshape(S * B, 20)
    return emb, note, pre_chord


@jax.jit
def dqn_chord_forward(state, fp):
    S, B, _ = state.shape
    H = fp["whh0"].shape[0]
    emb, note, pc = _split_state(state, fp)

    vmem = pl.BlockSpec(memory_space=pltpu.MemorySpace.VMEM)
    out_pad, hc = pl.pallas_call(
        functools.partial(dqn_chord_kernel, S=S, B=B),
        out_shape=(
            jax.ShapeDtypeStruct((S * B, 128), jnp.float32),
            jax.ShapeDtypeStruct((4 * B, H), jnp.float32),
        ),
        in_specs=[vmem] * 17,
        out_specs=(vmem, vmem),
        scratch_shapes=[pltpu.VMEM((S * B, H), jnp.float32)],
    )(
        emb, note, pc,
        fp["w_emb"], fp["w_note"], fp["w_pc"], fp["b_in"],
        fp["wih0"], fp["whh0"], fp["bl0"],
        fp["wih1"], fp["whh1"], fp["bl1"],
        fp["w1"], fp["b1"], fp["w2pad"], fp["b2pad"],
    )

    out24 = out_pad[:, :24]

    # Dueling reduction (global adv.mean(), matching torch's dim-less .mean()).
    def duel(adv, val):
        return val + adv - jnp.mean(adv)

    q1 = duel(out24[:, 0:1], out24[:, 1:2]).reshape(S, B, 1)
    q2 = duel(out24[:, 2:4], out24[:, 4:5]).reshape(S, B, 2)
    q4 = duel(out24[:, 5:9], out24[:, 9:10]).reshape(S, B, 4)
    q13 = duel(out24[:, 10:23], out24[:, 23:24]).reshape(S, B, 13)
    hn = hc[0:2 * B].reshape(2, B, H)
    cn = hc[2 * B:4 * B].reshape(2, B, H)
    return q1, q2, q4, q13, (hn, cn)


# ----------------------------------------------------------------------------
# Parameters.
# init_params holds "torch-like" (in, out) weights with LSTM gate columns in
# torch's (i, f, g, o) order. fuse_params performs the exact, one-time algebraic
# fusion of fc_embedding / fc_t / input_linear and pads the head output weights.
# ----------------------------------------------------------------------------
def init_params(key, H=64, scale=0.05):
    keys = iter(jax.random.split(key, 64))

    def nrm(shape):
        return scale * jax.random.normal(next(keys), shape, jnp.float32)

    p = {}
    p["p_tab"] = nrm((49, 6))
    p["d_tab"] = nrm((12, 4))
    p["b_tab"] = nrm((72, 8))
    p["wfe"], p["bfe"] = nrm((144, 16)), nrm((1, 16))
    p["wft"], p["bft"] = nrm((133, 16)), nrm((1, 16))
    # input_linear over [pre_chord(20), b_note(72), emb16(16), note16(16)] = 124
    p["win"], p["bin"] = nrm((124, 64)), nrm((1, 64))
    # LSTM (weights pre-transposed to (in, 4H)); b = b_ih + b_hh combined.
    p["wih0"], p["whh0"], p["bl0"] = nrm((64, 4 * H)), nrm((H, 4 * H)), nrm((1, 4 * H))
    p["wih1"], p["whh1"], p["bl1"] = nrm((H, 4 * H)), nrm((H, 4 * H)), nrm((1, 4 * H))

    # Dueling heads: branch order [adv1, val1, adv2, val2, adv4, val4, adv13, val13]
    Ks = [1, 1, 2, 1, 4, 1, 13, 1]
    W1s = [nrm((H, 128)) for _ in Ks]
    b1s = [nrm((128,)) for _ in Ks]
    W2s = [nrm((128, k)) for k in Ks]
    b2s = [nrm((k,)) for k in Ks]
    p["w1"] = jnp.concatenate(W1s, axis=1)             # (H, 1024)
    p["b1"] = jnp.concatenate(b1s).reshape(1, -1)      # (1, 1024)
    w2 = jnp.zeros((128 * len(Ks), sum(Ks)), jnp.float32)
    off = 0
    for i, k in enumerate(Ks):
        w2 = w2.at[i * 128:(i + 1) * 128, off:off + k].set(W2s[i])
        off += k
    p["w2"] = w2                                       # (1024, 24) block-diagonal
    p["b2"] = jnp.concatenate(b2s).reshape(1, -1)      # (1, 24)
    return p


def fuse_params(p):
    """Exact algebraic fusion done once, outside the hot path."""
    win = p["win"]
    win_pc = win[0:20]         # pre_chord rows
    win_bn = win[20:92]        # b_note rows (feed note[:, 61:133] directly)
    win_emb = win[92:108]      # emb16 rows
    win_note = win[108:124]    # note16 rows

    w_note = p["wft"] @ win_note                        # (133, 64) via fc_t
    w_note = w_note.at[61:133].add(win_bn)              # + raw b_note row-block

    fp = {
        "p_tab": p["p_tab"], "d_tab": p["d_tab"], "b_tab": p["b_tab"],
        "w_emb": p["wfe"] @ win_emb,                    # (144, 64)
        "w_note": w_note,                               # (133, 64)
        "w_pc": win_pc,                                 # (20, 64)
        "b_in": p["bin"] + p["bfe"] @ win_emb + p["bft"] @ win_note,
        "wih0": p["wih0"], "whh0": p["whh0"], "bl0": p["bl0"],
        "wih1": p["wih1"], "whh1": p["whh1"], "bl1": p["bl1"],
        "w1": p["w1"], "b1": p["b1"],
        "w2pad": jnp.zeros((p["w2"].shape[0], 128), jnp.float32).at[:, :24].set(p["w2"]),
        "b2pad": jnp.zeros((1, 128), jnp.float32).at[:, :24].set(p["b2"]),
    }
    return fp


# ----------------------------------------------------------------------------
# Pure-JAX reference (unfused original math) for validation
# ----------------------------------------------------------------------------
def ref_forward(state, p):
    S, B, _ = state.shape
    H = p["whh0"].shape[0]
    emb, note, pc = _split_state(state, p)              # (SB,144),(SB,133),(SB,20)
    emb16 = emb @ p["wfe"] + p["bfe"]
    note16 = note @ p["wft"] + p["bft"]
    b_note = note[:, 61:133]
    inp = jnp.concatenate([pc, b_note, emb16, note16], axis=-1)   # (SB, 124)
    x = (inp @ p["win"] + p["bin"]).reshape(S, B, -1)

    def cell(x_t, h, c, wih, whh, b):
        g = x_t @ wih + h @ whh + b
        i = jax.nn.sigmoid(g[:, 0 * H:1 * H])
        f = jax.nn.sigmoid(g[:, 1 * H:2 * H])
        gg = jnp.tanh(g[:, 2 * H:3 * H])
        o = jax.nn.sigmoid(g[:, 3 * H:4 * H])
        c = f * c + i * gg
        h = o * jnp.tanh(c)
        return h, c

    h0 = c0 = h1 = c1 = jnp.zeros((B, H), jnp.float32)
    outs = []
    for t in range(S):
        h0, c0 = cell(x[t], h0, c0, p["wih0"], p["whh0"], p["bl0"])
        h1, c1 = cell(h0, h1, c1, p["wih1"], p["whh1"], p["bl1"])
        outs.append(h1)
    hseq = jnp.concatenate(outs, axis=0)                 # (S*B, H)
    hid = jax.nn.relu(hseq @ p["w1"] + p["b1"])
    o24 = hid @ p["w2"] + p["b2"]

    def duel(adv, val):
        return val + adv - adv.mean()

    q1 = duel(o24[:, 0:1], o24[:, 1:2]).reshape(S, B, 1)
    q2 = duel(o24[:, 2:4], o24[:, 4:5]).reshape(S, B, 2)
    q4 = duel(o24[:, 5:9], o24[:, 9:10]).reshape(S, B, 4)
    q13 = duel(o24[:, 10:23], o24[:, 23:24]).reshape(S, B, 13)
    return q1, q2, q4, q13, (jnp.stack([h0, h1]), jnp.stack([c0, c1]))


# ----------------------------------------------------------------------------
if __name__ == "__main__":
    S, B, H = 8, 2, 64

    key = jax.random.PRNGKey(0)
    kp, kd, kb, kn, kc, kw = jax.random.split(key, 6)
    pitch = jax.random.randint(kp, (S, B, 8), 0, 49)
    dur = jax.random.randint(kd, (S, B, 8), 0, 12)
    pos = jax.random.randint(kb, (S, B, 8), 0, 72)
    note_f = jax.random.normal(kn, (S, B, 133), jnp.float32)
    chord_f = jax.random.normal(kc, (S, B, 20), jnp.float32)
    state = jnp.concatenate(
        [pitch.astype(jnp.float32), dur.astype(jnp.float32),
         pos.astype(jnp.float32), note_f, chord_f], axis=-1)      # (S, B, 177)

    params = init_params(kw, H=H)
    fused = fuse_params(params)

    q1, q2, q4, q13, (hn, cn) = dqn_chord_forward(state, fused)
    jax.block_until_ready((q1, q2, q4, q13, hn, cn))

    r1, r2, r4, r13, (rhn, rcn) = ref_forward(state, params)
    for got, want in [(q1, r1), (q2, r2), (q4, r4), (q13, r13), (hn, rhn), (cn, rcn)]:
        np.testing.assert_allclose(np.asarray(got), np.asarray(want),
                                   rtol=2e-3, atol=2e-3)

    print("KERNEL_OK")
</pallas_src>

<mosaic_0001>
module attributes {stable_mosaic.version = 11 : i64} {
  func.func @dqn_chord_kernel(%arg0: memref<16x144xf32, #tpu.memory_space<vmem>>, %arg1: memref<16x133xf32, #tpu.memory_space<vmem>>, %arg2: memref<16x20xf32, #tpu.memory_space<vmem>>, %arg3: memref<144x64xf32, #tpu.memory_space<vmem>>, %arg4: memref<133x64xf32, #tpu.memory_space<vmem>>, %arg5: memref<20x64xf32, #tpu.memory_space<vmem>>, %arg6: memref<1x64xf32, #tpu.memory_space<vmem>>, %arg7: memref<64x256xf32, #tpu.memory_space<vmem>>, %arg8: memref<64x256xf32, #tpu.memory_space<vmem>>, %arg9: memref<1x256xf32, #tpu.memory_space<vmem>>, %arg10: memref<64x256xf32, #tpu.memory_space<vmem>>, %arg11: memref<64x256xf32, #tpu.memory_space<vmem>>, %arg12: memref<1x256xf32, #tpu.memory_space<vmem>>, %arg13: memref<64x1024xf32, #tpu.memory_space<vmem>>, %arg14: memref<1x1024xf32, #tpu.memory_space<vmem>>, %arg15: memref<1024x128xf32, #tpu.memory_space<vmem>>, %arg16: memref<1x128xf32, #tpu.memory_space<vmem>>, %arg17: memref<16x128xf32, #tpu.memory_space<vmem>>, %arg18: memref<8x64xf32, #tpu.memory_space<vmem>>, %arg19: memref<16x64xf32, #tpu.memory_space<vmem>>) attributes {dimension_semantics = [], scalar_prefetch = 0 : i64, scratch_operands = 1 : i64, tpu.core_type = #tpu.core_type<tc>} {
    %c0 = arith.constant 0 : index
    %c0_0 = arith.constant 0 : index
    %0 = vector.load %arg0[%c0, %c0_0] : memref<16x144xf32, #tpu.memory_space<vmem>>, vector<16x144xf32>
    %c0_1 = arith.constant 0 : index
    %c0_2 = arith.constant 0 : index
    %1 = vector.load %arg3[%c0_1, %c0_2] : memref<144x64xf32, #tpu.memory_space<vmem>>, vector<144x64xf32>
    %cst = arith.constant dense<0.000000e+00> : vector<16x64xf32>
    %2 = tpu.matmul %0, %1, %cst {dimension_numbers = #tpu.dot_dimension_numbers<[1], [0], [0], [1], [0, 0, 1, 1], [], []>} : vector<16x144xf32>, vector<144x64xf32>, vector<16x64xf32> -> vector<16x64xf32>
    %c0_3 = arith.constant 0 : index
    %c0_4 = arith.constant 0 : index
    %3 = vector.load %arg1[%c0_3, %c0_4] : memref<16x133xf32, #tpu.memory_space<vmem>>, vector<16x133xf32>
    %c0_5 = arith.constant 0 : index
    %c0_6 = arith.constant 0 : index
    %4 = vector.load %arg4[%c0_5, %c0_6] : memref<133x64xf32, #tpu.memory_space<vmem>>, vector<133x64xf32>
    %cst_7 = arith.constant dense<0.000000e+00> : vector<16x64xf32>
    %5 = tpu.matmul %3, %4, %cst_7 {dimension_numbers = #tpu.dot_dimension_numbers<[1], [0], [0], [1], [0, 0, 1, 1], [], []>} : vector<16x133xf32>, vector<133x64xf32>, vector<16x64xf32> -> vector<16x64xf32>
    %6 = arith.addf %2, %5 : vector<16x64xf32>
    %c0_8 = arith.constant 0 : index
    %c0_9 = arith.constant 0 : index
    %7 = vector.load %arg2[%c0_8, %c0_9] : memref<16x20xf32, #tpu.memory_space<vmem>>, vector<16x20xf32>
    %c0_10 = arith.constant 0 : index
    %c0_11 = arith.constant 0 : index
    %8 = vector.load %arg5[%c0_10, %c0_11] : memref<20x64xf32, #tpu.memory_space<vmem>>, vector<20x64xf32>
    %cst_12 = arith.constant dense<0.000000e+00> : vector<16x64xf32>
    %9 = tpu.matmul %7, %8, %cst_12 {dimension_numbers = #tpu.dot_dimension_numbers<[1], [0], [0], [1], [0, 0, 1, 1], [], []>} : vector<16x20xf32>, vector<20x64xf32>, vector<16x64xf32> -> vector<16x64xf32>
    %10 = arith.addf %6, %9 : vector<16x64xf32>
    %c0_13 = arith.constant 0 : index
    %c0_14 = arith.constant 0 : index
    %11 = vector.load %arg6[%c0_13, %c0_14] : memref<1x64xf32, #tpu.memory_space<vmem>>, vector<1x64xf32>
    %12 = vector.broadcast %11 : vector<1x64xf32> to vector<16x64xf32>
    %13 = arith.addf %10, %12 : vector<16x64xf32>
    %c0_15 = arith.constant 0 : index
    %c0_16 = arith.constant 0 : index
    %14 = vector.load %arg7[%c0_15, %c0_16] : memref<64x256xf32, #tpu.memory_space<vmem>>, vector<64x256xf32>
    %cst_17 = arith.constant dense<0.000000e+00> : vector<16x256xf32>
    %15 = tpu.matmul %13, %14, %cst_17 {dimension_numbers = #tpu.dot_dimension_numbers<[1], [0], [0], [1], [0, 0, 1, 1], [], []>} : vector<16x64xf32>, vector<64x256xf32>, vector<16x256xf32> -> vector<16x256xf32>
    %c0_18 = arith.constant 0 : index
    %c0_19 = arith.constant 0 : index
    %16 = vector.load %arg9[%c0_18, %c0_19] : memref<1x256xf32, #tpu.memory_space<vmem>>, vector<1x256xf32>
    %17 = vector.broadcast %16 : vector<1x256xf32> to vector<16x256xf32>
    %18 = arith.addf %15, %17 : vector<16x256xf32>
    %c0_20 = arith.constant 0 : index
    %c0_21 = arith.constant 0 : index
    %19 = vector.load %arg8[%c0_20, %c0_21] : memref<64x256xf32, #tpu.memory_space<vmem>>, vector<64x256xf32>
    %c0_22 = arith.constant 0 : index
    %c0_23 = arith.constant 0 : index
    %20 = vector.load %arg10[%c0_22, %c0_23] : memref<64x256xf32, #tpu.memory_space<vmem>>, vector<64x256xf32>
    %c0_24 = arith.constant 0 : index
    %c0_25 = arith.constant 0 : index
    %21 = vector.load %arg11[%c0_24, %c0_25] : memref<64x256xf32, #tpu.memory_space<vmem>>, vector<64x256xf32>
    %c0_26 = arith.constant 0 : index
    %c0_27 = arith.constant 0 : index
    %22 = vector.load %arg12[%c0_26, %c0_27] : memref<1x256xf32, #tpu.memory_space<vmem>>, vector<1x256xf32>
    %23 = tpu.iota {dimensions = array<i32: 1>} : vector<1x256xi32>
    %c128_i32 = arith.constant 128 : i32
    %24 = vector.broadcast %c128_i32 : i32 to vector<1x256xi32>
    %25 = arith.cmpi sge, %23, %24 : vector<1x256xi32>
    %c192_i32 = arith.constant 192 : i32
    %26 = vector.broadcast %c192_i32 : i32 to vector<1x256xi32>
    %27 = arith.cmpi slt, %23, %26 : vector<1x256xi32>
    %28 = arith.andi %25, %27 : vector<1x256xi1>
    %cst_28 = arith.constant 1.000000e+00 : f32
    %cst_29 = arith.constant 5.000000e-01 : f32
    %29 = vector.broadcast %cst_28 : f32 to vector<1x256xf32>
    %30 = vector.broadcast %cst_29 : f32 to vector<1x256xf32>
    %31 = arith.select %28, %29, %30 : vector<1x256xi1>, vector<1x256xf32>
    %cst_30 = arith.constant 0.000000e+00 : f32
    %cst_31 = arith.constant 5.000000e-01 : f32
    %32 = vector.broadcast %cst_30 : f32 to vector<1x256xf32>
    %33 = vector.broadcast %cst_31 : f32 to vector<1x256xf32>
    %34 = arith.select %28, %32, %33 : vector<1x256xi1>, vector<1x256xf32>
    %cst_32 = arith.constant 0.000000e+00 : f32
    %35 = vector.broadcast %cst_32 : f32 to vector<2x64xf32>
    %36 = vector.extract_strided_slice %18 {offsets = [0, 0], sizes = [2, 256], strides = [1, 1]} : vector<16x256xf32> to vector<2x256xf32>
    %cst_33 = arith.constant dense<0.000000e+00> : vector<2x256xf32>
    %37 = tpu.matmul %35, %19, %cst_33 {dimension_numbers = #tpu.dot_dimension_numbers<[1], [0], [0], [1], [0, 0, 1, 1], [], []>} : vector<2x64xf32>, vector<64x256xf32>, vector<2x256xf32> -> vector<2x256xf32>
    %38 = arith.addf %36, %37 : vector<2x256xf32>
    %39 = vector.broadcast %31 : vector<1x256xf32> to vector<2x256xf32>
    %40 = arith.mulf %38, %39 : vector<2x256xf32>
    %41 = math.tanh %40 : vector<2x256xf32>
    %42 = vector.broadcast %31 : vector<1x256xf32> to vector<2x256xf32>
    %43 = arith.mulf %41, %42 : vector<2x256xf32>
    %44 = vector.broadcast %34 : vector<1x256xf32> to vector<2x256xf32>
    %45 = arith.addf %43, %44 : vector<2x256xf32>
    %46 = vector.extract_strided_slice %45 {offsets = [0, 0], sizes = [2, 64], strides = [1, 1]} : vector<2x256xf32> to vector<2x64xf32>
    %47 = vector.extract_strided_slice %45 {offsets = [0, 64], sizes = [2, 64], strides = [1, 1]} : vector<2x256xf32> to vector<2x64xf32>
    %48 = vector.extract_strided_slice %45 {offsets = [0, 128], sizes = [2, 64], strides = [1, 1]} : vector<2x256xf32> to vector<2x64xf32>
    %49 = vector.extract_strided_slice %45 {offsets = [0, 192], sizes = [2, 64], strides = [1, 1]} : vector<2x256xf32> to vector<2x64xf32>
    %50 = arith.mulf %47, %35 : vector<2x64xf32>
    %51 = arith.mulf %46, %48 : vector<2x64xf32>
    %52 = arith.addf %50, %51 : vector<2x64xf32>
    %53 = math.tanh %52 : vector<2x64xf32>
    %54 = arith.mulf %49, %53 : vector<2x64xf32>
    %cst_34 = arith.constant dense<0.000000e+00> : vector<2x256xf32>
    %55 = tpu.matmul %54, %20, %cst_34 {dimension_numbers = #tpu.dot_dimension_numbers<[1], [0], [0], [1], [0, 0, 1, 1], [], []>} : vector<2x64xf32>, vector<64x256xf32>, vector<2x256xf32> -> vector<2x256xf32>
    %cst_35 = arith.constant dense<0.000000e+00> : vector<2x256xf32>
    %56 = tpu.matmul %35, %21, %cst_35 {dimension_numbers = #tpu.dot_dimension_numbers<[1], [0], [0], [1], [0, 0, 1, 1], [], []>} : vector<2x64xf32>, vector<64x256xf32>, vector<2x256xf32> -> vector<2x256xf32>
    %57 = arith.addf %55, %56 : vector<2x256xf32>
    %58 = vector.broadcast %22 : vector<1x256xf32> to vector<2x256xf32>
    %59 = arith.addf %57, %58 : vector<2x256xf32>
    %60 = vector.broadcast %31 : vector<1x256xf32> to vector<2x256xf32>
    %61 = arith.mulf %59, %60 : vector<2x256xf32>
    %62 = math.tanh %61 : vector<2x256xf32>
    %63 = vector.broadcast %31 : vector<1x256xf32> to vector<2x256xf32>
    %64 = arith.mulf %62, %63 : vector<2x256xf32>
    %65 = vector.broadcast %34 : vector<1x256xf32> to vector<2x256xf32>
    %66 = arith.addf %64, %65 : vector<2x256xf32>
    %67 = vector.extract_strided_slice %66 {offsets = [0, 0], sizes = [2, 64], strides = [1, 1]} : vector<2x256xf32> to vector<2x64xf32>
    %68 = vector.extract_strided_slice %66 {offsets = [0, 64], sizes = [2, 64], strides = [1, 1]} : vector<2x256xf32> to vector<2x64xf32>
    %69 = vector.extract_strided_slice %66 {offsets = [0, 128], sizes = [2, 64], strides = [1, 1]} : vector<2x256xf32> to vector<2x64xf32>
    %70 = vector.extract_strided_slice %66 {offsets = [0, 192], sizes = [2, 64], strides = [1, 1]} : vector<2x256xf32> to vector<2x64xf32>
    %71 = arith.mulf %68, %35 : vector<2x64xf32>
    %72 = arith.mulf %67, %69 : vector<2x64xf32>
    %73 = arith.addf %71, %72 : vector<2x64xf32>
    %74 = math.tanh %73 : vector<2x64xf32>
    %75 = arith.mulf %70, %74 : vector<2x64xf32>
    %c0_36 = arith.constant 0 : index
    %c0_37 = arith.constant 0 : index
    %76 = vector.load %arg19[%c0_36, %c0_37] : memref<16x64xf32, #tpu.memory_space<vmem>>, vector<2x64xf32>
    tpu.vector_store %arg19[%c0_36, %c0_37], %75 {strides = array<i32>} : memref<16x64xf32, #tpu.memory_space<vmem>>, vector<2x64xf32>,
    %77 = vector.extract_strided_slice %18 {offsets = [2, 0], sizes = [2, 256], strides = [1, 1]} : vector<16x256xf32> to vector<2x256xf32>
    %cst_38 = arith.constant dense<0.000000e+00> : vector<2x256xf32>
    %78 = tpu.matmul %54, %19, %cst_38 {dimension_numbers = #tpu.dot_dimension_numbers<[1], [0], [0], [1], [0, 0, 1, 1], [], []>} : vector<2x64xf32>, vector<64x256xf32>, vector<2x256xf32> -> vector<2x256xf32>
    %79 = arith.addf %77, %78 : vector<2x256xf32>
    %80 = vector.broadcast %31 : vector<1x256xf32> to vector<2x256xf32>
    %81 = arith.mulf %79, %80 : vector<2x256xf32>
    %82 = math.tanh %81 : vector<2x256xf32>
    %83 = vector.broadcast %31 : vector<1x256xf32> to vector<2x256xf32>
    %84 = arith.mulf %82, %83 : vector<2x256xf32>
    %85 = vector.broadcast %34 : vector<1x256xf32> to vector<2x256xf32>
    %86 = arith.addf %84, %85 : vector<2x256xf32>
    %87 = vector.extract_strided_slice %86 {offsets = [0, 0], sizes = [2, 64], strides = [1, 1]} : vector<2x256xf32> to vector<2x64xf32>
    %88 = vector.extract_strided_slice %86 {offsets = [0, 64], sizes = [2, 64], strides = [1, 1]} : vector<2x256xf32> to vector<2x64xf32>
    %89 = vector.extract_strided_slice %86 {offsets = [0, 128], sizes = [2, 64], strides = [1, 1]} : vector<2x256xf32> to vector<2x64xf32>
    %90 = vector.extract_strided_slice %86 {offsets = [0, 192], sizes = [2, 64], strides = [1, 1]} : vector<2x256xf32> to vector<2x64xf32>
    %91 = arith.mulf %88, %52 : vector<2x64xf32>
    %92 = arith.mulf %87, %89 : vector<2x64xf32>
    %93 = arith.addf %91, %92 : vector<2x64xf32>
    %94 = math.tanh %93 : vector<2x64xf32>
    %95 = arith.mulf %90, %94 : vector<2x64xf32>
    %cst_39 = arith.constant dense<0.000000e+00> : vector<2x256xf32>
    %96 = tpu.matmul %95, %20, %cst_39 {dimension_numbers = #tpu.dot_dimension_numbers<[1], [0], [0], [1], [0, 0, 1, 1], [], []>} : vector<2x64xf32>, vector<64x256xf32>, vector<2x256xf32> -> vector<2x256xf32>
    %cst_40 = arith.constant dense<0.000000e+00> : vector<2x256xf32>
    %97 = tpu.matmul %75, %21, %cst_40 {dimension_numbers = #tpu.dot_dimension_numbers<[1], [0], [0], [1], [0, 0, 1, 1], [], []>} : vector<2x64xf32>, vector<64x256xf32>, vector<2x256xf32> -> vector<2x256xf32>
    %98 = arith.addf %96, %97 : vector<2x256xf32>
    %99 = vector.broadcast %22 : vector<1x256xf32> to vector<2x256xf32>
    %100 = arith.addf %98, %99 : vector<2x256xf32>
    %101 = vector.broadcast %31 : vector<1x256xf32> to vector<2x256xf32>
    %102 = arith.mulf %100, %101 : vector<2x256xf32>
    %103 = math.tanh %102 : vector<2x256xf32>
    %104 = vector.broadcast %31 : vector<1x256xf32> to vector<2x256xf32>
    %105 = arith.mulf %103, %104 : vector<2x256xf32>
    %106 = vector.broadcast %34 : vector<1x256xf32> to vector<2x256xf32>
    %107 = arith.addf %105, %106 : vector<2x256xf32>
    %108 = vector.extract_strided_slice %107 {offsets = [0, 0], sizes = [2, 64], strides = [1, 1]} : vector<2x256xf32> to vector<2x64xf32>
    %109 = vector.extract_strided_slice %107 {offsets = [0, 64], sizes = [2, 64], strides = [1, 1]} : vector<2x256xf32> to vector<2x64xf32>
    %110 = vector.extract_strided_slice %107 {offsets = [0, 128], sizes = [2, 64], strides = [1, 1]} : vector<2x256xf32> to vector<2x64xf32>
    %111 = vector.extract_strided_slice %107 {offsets = [0, 192], sizes = [2, 64], strides = [1, 1]} : vector<2x256xf32> to vector<2x64xf32>
    %112 = arith.mulf %109, %73 : vector<2x64xf32>
    %113 = arith.mulf %108, %110 : vector<2x64xf32>
    %114 = arith.addf %112, %113 : vector<2x64xf32>
    %115 = math.tanh %114 : vector<2x64xf32>
    %116 = arith.mulf %111, %115 : vector<2x64xf32>
    %c2 = arith.constant 2 : index
    %c0_41 = arith.constant 0 : index
    %117 = vector.load %arg19[%c2, %c0_41] : memref<16x64xf32, #tpu.memory_space<vmem>>, vector<2x64xf32>
    tpu.vector_store %arg19[%c2, %c0_41], %116 {strides = array<i32>} : memref<16x64xf32, #tpu.memory_space<vmem>>, vector<2x64xf32>,
    %118 = vector.extract_strided_slice %18 {offsets = [4, 0], sizes = [2, 256], strides = [1, 1]} : vector<16x256xf32> to vector<2x256xf32>
    %cst_42 = arith.constant dense<0.000000e+00> : vector<2x256xf32>
    %119 = tpu.matmul %95, %19, %cst_42 {dimension_numbers = #tpu.dot_dimension_numbers<[1], [0], [0], [1], [0, 0, 1, 1], [], []>} : vector<2x64xf32>, vector<64x256xf32>, vector<2x256xf32> -> vector<2x256xf32>
    %120 = arith.addf %118, %119 : vector<2x256xf32>
    %121 = vector.broadcast %31 : vector<1x256xf32> to vector<2x256xf32>
    %122 = arith.mulf %120, %121 : vector<2x256xf32>
    %123 = math.tanh %122 : vector<2x256xf32>
    %124 = vector.broadcast %31 : vector<1x256xf32> to vector<2x256xf32>
    %125 = arith.mulf %123, %124 : vector<2x256xf32>
    %126 = vector.broadcast %34 : vector<1x256xf32> to vector<2x256xf32>
    %127 = arith.addf %125, %126 : vector<2x256xf32>
    %128 = vector.extract_strided_slice %127 {offsets = [0, 0], sizes = [2, 64], strides = [1, 1]} : vector<2x256xf32> to vector<2x64xf32>
    %129 = vector.extract_strided_slice %127 {offsets = [0, 64], sizes = [2, 64], strides = [1, 1]} : vector<2x256xf32> to vector<2x64xf32>
    %130 = vector.extract_strided_slice %127 {offsets = [0, 128], sizes = [2, 64], strides = [1, 1]} : vector<2x256xf32> to vector<2x64xf32>
    %131 = vector.extract_strided_slice %127 {offsets = [0, 192], sizes = [2, 64], strides = [1, 1]} : vector<2x256xf32> to vector<2x64xf32>
    %132 = arith.mulf %129, %93 : vector<2x64xf32>
    %133 = arith.mulf %128, %130 : vector<2x64xf32>
    %134 = arith.addf %132, %133 : vector<2x64xf32>
    %135 = math.tanh %134 : vector<2x64xf32>
    %136 = arith.mulf %131, %135 : vector<2x64xf32>
    %cst_43 = arith.constant dense<0.000000e+00> : vector<2x256xf32>
    %137 = tpu.matmul %136, %20, %cst_43 {dimension_numbers = #tpu.dot_dimension_numbers<[1], [0], [0], [1], [0, 0, 1, 1], [], []>} : vector<2x64xf32>, vector<64x256xf32>, vector<2x256xf32> -> vector<2x256xf32>
    %cst_44 = arith.constant dense<0.000000e+00> : vector<2x256xf32>
    %138 = tpu.matmul %116, %21, %cst_44 {dimension_numbers = #tpu.dot_dimension_numbers<[1], [0], [0], [1], [0, 0, 1, 1], [], []>} : vector<2x64xf32>, vector<64x256xf32>, vector<2x256xf32> -> vector<2x256xf32>
    %139 = arith.addf %137, %138 : vector<2x256xf32>
    %140 = vector.broadcast %22 : vector<1x256xf32> to vector<2x256xf32>
    %141 = arith.addf %139, %140 : vector<2x256xf32>
    %142 = vector.broadcast %31 : vector<1x256xf32> to vector<2x256xf32>
    %143 = arith.mulf %141, %142 : vector<2x256xf32>
    %144 = math.tanh %143 : vector<2x256xf32>
    %145 = vector.broadcast %31 : vector<1x256xf32> to vector<2x256xf32>
    %146 = arith.mulf %144, %145 : vector<2x256xf32>
    %147 = vector.broadcast %34 : vector<1x256xf32> to vector<2x256xf32>
    %148 = arith.addf %146, %147 : vector<2x256xf32>
    %149 = vector.extract_strided_slice %148 {offsets = [0, 0], sizes = [2, 64], strides = [1, 1]} : vector<2x256xf32> to vector<2x64xf32>
    %150 = vector.extract_strided_slice %148 {offsets = [0, 64], sizes = [2, 64], strides = [1, 1]} : vector<2x256xf32> to vector<2x64xf32>
    %151 = vector.extract_strided_slice %148 {offsets = [0, 128], sizes = [2, 64], strides = [1, 1]} : vector<2x256xf32> to vector<2x64xf32>
    %152 = vector.extract_strided_slice %148 {offsets = [0, 192], sizes = [2, 64], strides = [1, 1]} : vector<2x256xf32> to vector<2x64xf32>
    %153 = arith.mulf %150, %114 : vector<2x64xf32>
    %154 = arith.mulf %149, %151 : vector<2x64xf32>
    %155 = arith.addf %153, %154 : vector<2x64xf32>
    %156 = math.tanh %155 : vector<2x64xf32>
    %157 = arith.mulf %152, %156 : vector<2x64xf32>
    %c4 = arith.constant 4 : index
    %c0_45 = arith.constant 0 : index
    %158 = vector.load %arg19[%c4, %c0_45] : memref<16x64xf32, #tpu.memory_space<vmem>>, vector<2x64xf32>
    tpu.vector_store %arg19[%c4, %c0_45], %157 {strides = array<i32>} : memref<16x64xf32, #tpu.memory_space<vmem>>, vector<2x64xf32>,
    %159 = vector.extract_strided_slice %18 {offsets = [6, 0], sizes = [2, 256], strides = [1, 1]} : vector<16x256xf32> to vector<2x256xf32>
    %cst_46 = arith.constant dense<0.000000e+00> : vector<2x256xf32>
    %160 = tpu.matmul %136, %19, %cst_46 {dimension_numbers = #tpu.dot_dimension_numbers<[1], [0], [0], [1], [0, 0, 1, 1], [], []>} : vector<2x64xf32>, vector<64x256xf32>, vector<2x256xf32> -> vector<2x256xf32>
    %161 = arith.addf %159, %160 : vector<2x256xf32>
    %162 = vector.broadcast %31 : vector<1x256xf32> to vector<2x256xf32>
    %163 = arith.mulf %161, %162 : vector<2x256xf32>
    %164 = math.tanh %163 : vector<2x256xf32>
    %165 = vector.broadcast %31 : vector<1x256xf32> to vector<2x256xf32>
    %166 = arith.mulf %164, %165 : vector<2x256xf32>
    %167 = vector.broadcast %34 : vector<1x256xf32> to vector<2x256xf32>
    %168 = arith.addf %166, %167 : vector<2x256xf32>
    %169 = vector.extract_strided_slice %168 {offsets = [0, 0], sizes = [2, 64], strides = [1, 1]} : vector<2x256xf32> to vector<2x64xf32>
    %170 = vector.extract_strided_slice %168 {offsets = [0, 64], sizes = [2, 64], strides = [1, 1]} : vector<2x256xf32> to vector<2x64xf32>
    %171 = vector.extract_strided_slice %168 {offsets = [0, 128], sizes = [2, 64], strides = [1, 1]} : vector<2x256xf32> to vector<2x64xf32>
    %172 = vector.extract_strided_slice %168 {offsets = [0, 192], sizes = [2, 64], strides = [1, 1]} : vector<2x256xf32> to vector<2x64xf32>
    %173 = arith.mulf %170, %134 : vector<2x64xf32>
    %174 = arith.mulf %169, %171 : vector<2x64xf32>
    %175 = arith.addf %173, %174 : vector<2x64xf32>
    %176 = math.tanh %175 : vector<2x64xf32>
    %177 = arith.mulf %172, %176 : vector<2x64xf32>
    %cst_47 = arith.constant dense<0.000000e+00> : vector<2x256xf32>
    %178 = tpu.matmul %177, %20, %cst_47 {dimension_numbers = #tpu.dot_dimension_numbers<[1], [0], [0], [1], [0, 0, 1, 1], [], []>} : vector<2x64xf32>, vector<64x256xf32>, vector<2x256xf32> -> vector<2x256xf32>
    %cst_48 = arith.constant dense<0.000000e+00> : vector<2x256xf32>
    %179 = tpu.matmul %157, %21, %cst_48 {dimension_numbers = #tpu.dot_dimension_numbers<[1], [0], [0], [1], [0, 0, 1, 1], [], []>} : vector<2x64xf32>, vector<64x256xf32>, vector<2x256xf32> -> vector<2x256xf32>
    %180 = arith.addf %178, %179 : vector<2x256xf32>
    %181 = vector.broadcast %22 : vector<1x256xf32> to vector<2x256xf32>
    %182 = arith.addf %180, %181 : vector<2x256xf32>
    %183 = vector.broadcast %31 : vector<1x256xf32> to vector<2x256xf32>
    %184 = arith.mulf %182, %183 : vector<2x256xf32>
    %185 = math.tanh %184 : vector<2x256xf32>
    %186 = vector.broadcast %31 : vector<1x256xf32> to vector<2x256xf32>
    %187 = arith.mulf %185, %186 : vector<2x256xf32>
    %188 = vector.broadcast %34 : vector<1x256xf32> to vector<2x256xf32>
    %189 = arith.addf %187, %188 : vector<2x256xf32>
    %190 = vector.extract_strided_slice %189 {offsets = [0, 0], sizes = [2, 64], strides = [1, 1]} : vector<2x256xf32> to vector<2x64xf32>
    %191 = vector.extract_strided_slice %189 {offsets = [0, 64], sizes = [2, 64], strides = [1, 1]} : vector<2x256xf32> to vector<2x64xf32>
    %192 = vector.extract_strided_slice %189 {offsets = [0, 128], sizes = [2, 64], strides = [1, 1]} : vector<2x256xf32> to vector<2x64xf32>
    %193 = vector.extract_strided_slice %189 {offsets = [0, 192], sizes = [2, 64], strides = [1, 1]} : vector<2x256xf32> to vector<2x64xf32>
    %194 = arith.mulf %191, %155 : vector<2x64xf32>
    %195 = arith.mulf %190, %192 : vector<2x64xf32>
    %196 = arith.addf %194, %195 : vector<2x64xf32>
    %197 = math.tanh %196 : vector<2x64xf32>
    %198 = arith.mulf %193, %197 : vector<2x64xf32>
    %c6 = arith.constant 6 : index
    %c0_49 = arith.constant 0 : index
    %199 = vector.load %arg19[%c6, %c0_49] : memref<16x64xf32, #tpu.memory_space<vmem>>, vector<2x64xf32>
    tpu.vector_store %arg19[%c6, %c0_49], %198 {strides = array<i32>} : memref<16x64xf32, #tpu.memory_space<vmem>>, vector<2x64xf32>,
    %200 = vector.extract_strided_slice %18 {offsets = [8, 0], sizes = [2, 256], strides = [1, 1]} : vector<16x256xf32> to vector<2x256xf32>
    %cst_50 = arith.constant dense<0.000000e+00> : vector<2x256xf32>
    %201 = tpu.matmul %177, %19, %cst_50 {dimension_numbers = #tpu.dot_dimension_numbers<[1], [0], [0], [1], [0, 0, 1, 1], [], []>} : vector<2x64xf32>, vector<64x256xf32>, vector<2x256xf32> -> vector<2x256xf32>
    %202 = arith.addf %200, %201 : vector<2x256xf32>
    %203 = vector.broadcast %31 : vector<1x256xf32> to vector<2x256xf32>
    %204 = arith.mulf %202, %203 : vector<2x256xf32>
    %205 = math.tanh %204 : vector<2x256xf32>
    %206 = vector.broadcast %31 : vector<1x256xf32> to vector<2x256xf32>
    %207 = arith.mulf %205, %206 : vector<2x256xf32>
    %208 = vector.broadcast %34 : vector<1x256xf32> to vector<2x256xf32>
    %209 = arith.addf %207, %208 : vector<2x256xf32>
    %210 = vector.extract_strided_slice %209 {offsets = [0, 0], sizes = [2, 64], strides = [1, 1]} : vector<2x256xf32> to vector<2x64xf32>
    %211 = vector.extract_strided_slice %209 {offsets = [0, 64], sizes = [2, 64], strides = [1, 1]} : vector<2x256xf32> to vector<2x64xf32>
    %212 = vector.extract_strided_slice %209 {offsets = [0, 128], sizes = [2, 64], strides = [1, 1]} : vector<2x256xf32> to vector<2x64xf32>
    %213 = vector.extract_strided_slice %209 {offsets = [0, 192], sizes = [2, 64], strides = [1, 1]} : vector<2x256xf32> to vector<2x64xf32>
    %214 = arith.mulf %211, %175 : vector<2x64xf32>
    %215 = arith.mulf %210, %212 : vector<2x64xf32>
    %216 = arith.addf %214, %215 : vector<2x64xf32>
    %217 = math.tanh %216 : vector<2x64xf32>
    %218 = arith.mulf %213, %217 : vector<2x64xf32>
    %cst_51 = arith.constant dense<0.000000e+00> : vector<2x256xf32>
    %219 = tpu.matmul %218, %20, %cst_51 {dimension_numbers = #tpu.dot_dimension_numbers<[1], [0], [0], [1], [0, 0, 1, 1], [], []>} : vector<2x64xf32>, vector<64x256xf32>, vector<2x256xf32> -> vector<2x256xf32>
    %cst_52 = arith.constant dense<0.000000e+00> : vector<2x256xf32>
    %220 = tpu.matmul %198, %21, %cst_52 {dimension_numbers = #tpu.dot_dimension_numbers<[1], [0], [0], [1], [0, 0, 1, 1], [], []>} : vector<2x64xf32>, vector<64x256xf32>, vector<2x256xf32> -> vector<2x256xf32>
    %221 = arith.addf %219, %220 : vector<2x256xf32>
    %222 = vector.broadcast %22 : vector<1x256xf32> to vector<2x256xf32>
    %223 = arith.addf %221, %222 : vector<2x256xf32>
    %224 = vector.broadcast %31 : vector<1x256xf32> to vector<2x256xf32>
    %225 = arith.mulf %223, %224 : vector<2x256xf32>
    %226 = math.tanh %225 : vector<2x256xf32>
    %227 = vector.broadcast %31 : vector<1x256xf32> to vector<2x256xf32>
    %228 = arith.mulf %226, %227 : vector<2x256xf32>
    %229 = vector.broadcast %34 : vector<1x256xf32> to vector<2x256xf32>
    %230 = arith.addf %228, %229 : vector<2x256xf32>
    %231 = vector.extract_strided_slice %230 {offsets = [0, 0], sizes = [2, 64], strides = [1, 1]} : vector<2x256xf32> to vector<2x64xf32>
    %232 = vector.extract_strided_slice %230 {offsets = [0, 64], sizes = [2, 64], strides = [1, 1]} : vector<2x256xf32> to vector<2x64xf32>
    %233 = vector.extract_strided_slice %230 {offsets = [0, 128], sizes = [2, 64], strides = [1, 1]} : vector<2x256xf32> to vector<2x64xf32>
    %234 = vector.extract_strided_slice %230 {offsets = [0, 192], sizes = [2, 64], strides = [1, 1]} : vector<2x256xf32> to vector<2x64xf32>
    %235 = arith.mulf %232, %196 : vector<2x64xf32>
    %236 = arith.mulf %231, %233 : vector<2x64xf32>
    %237 = arith.addf %235, %236 : vector<2x64xf32>
    %238 = math.tanh %237 : vector<2x64xf32>
    %239 = arith.mulf %234, %238 : vector<2x64xf32>
    %c8 = arith.constant 8 : index
    %c0_53 = arith.constant 0 : index
    %240 = vector.load %arg19[%c8, %c0_53] : memref<16x64xf32, #tpu.memory_space<vmem>>, vector<2x64xf32>
    tpu.vector_store %arg19[%c8, %c0_53], %239 {strides = array<i32>} : memref<16x64xf32, #tpu.memory_space<vmem>>, vector<2x64xf32>,
    %241 = vector.extract_strided_slice %18 {offsets = [10, 0], sizes = [2, 256], strides = [1, 1]} : vector<16x256xf32> to vector<2x256xf32>
    %cst_54 = arith.constant dense<0.000000e+00> : vector<2x256xf32>
    %242 = tpu.matmul %218, %19, %cst_54 {dimension_numbers = #tpu.dot_dimension_numbers<[1], [0], [0], [1], [0, 0, 1, 1], [], []>} : vector<2x64xf32>, vector<64x256xf32>, vector<2x256xf32> -> vector<2x256xf32>
    %243 = arith.addf %241, %242 : vector<2x256xf32>
    %244 = vector.broadcast %31 : vector<1x256xf32> to vector<2x256xf32>
    %245 = arith.mulf %243, %244 : vector<2x256xf32>
    %246 = math.tanh %245 : vector<2x256xf32>
    %247 = vector.broadcast %31 : vector<1x256xf32> to vector<2x256xf32>
    %248 = arith.mulf %246, %247 : vector<2x256xf32>
    %249 = vector.broadcast %34 : vector<1x256xf32> to vector<2x256xf32>
    %250 = arith.addf %248, %249 : vector<2x256xf32>
    %251 = vector.extract_strided_slice %250 {offsets = [0, 0], sizes = [2, 64], strides = [1, 1]} : vector<2x256xf32> to vector<2x64xf32>
    %252 = vector.extract_strided_slice %250 {offsets = [0, 64], sizes = [2, 64], strides = [1, 1]} : vector<2x256xf32> to vector<2x64xf32>
    %253 = vector.extract_strided_slice %250 {offsets = [0, 128], sizes = [2, 64], strides = [1, 1]} : vector<2x256xf32> to vector<2x64xf32>
    %254 = vector.extract_strided_slice %250 {offsets = [0, 192], sizes = [2, 64], strides = [1, 1]} : vector<2x256xf32> to vector<2x64xf32>
    %255 = arith.mulf %252, %216 : vector<2x64xf32>
    %256 = arith.mulf %251, %253 : vector<2x64xf32>
    %257 = arith.addf %255, %256 : vector<2x64xf32>
    %258 = math.tanh %257 : vector<2x64xf32>
    %259 = arith.mulf %254, %258 : vector<2x64xf32>
    %cst_55 = arith.constant dense<0.000000e+00> : vector<2x256xf32>
    %260 = tpu.matmul %259, %20, %cst_55 {dimension_numbers = #tpu.dot_dimension_numbers<[1], [0], [0], [1], [0, 0, 1, 1], [], []>} : vector<2x64xf32>, vector<64x256xf32>, vector<2x256xf32> -> vector<2x256xf32>
    %cst_56 = arith.constant dense<0.000000e+00> : vector<2x256xf32>
    %261 = tpu.matmul %239, %21, %cst_56 {dimension_numbers = #tpu.dot_dimension_numbers<[1], [0], [0], [1], [0, 0, 1, 1], [], []>} : vector<2x64xf32>, vector<64x256xf32>, vector<2x256xf32> -> vector<2x256xf32>
    %262 = arith.addf %260, %261 : vector<2x256xf32>
    %263 = vector.broadcast %22 : vector<1x256xf32> to vector<2x256xf32>
    %264 = arith.addf %262, %263 : vector<2x256xf32>
    %265 = vector.broadcast %31 : vector<1x256xf32> to vector<2x256xf32>
    %266 = arith.mulf %264, %265 : vector<2x256xf32>
    %267 = math.tanh %266 : vector<2x256xf32>
    %268 = vector.broadcast %31 : vector<1x256xf32> to vector<2x256xf32>
    %269 = arith.mulf %267, %268 : vector<2x256xf32>
    %270 = vector.broadcast %34 : vector<1x256xf32> to vector<2x256xf32>
    %271 = arith.addf %269, %270 : vector<2x256xf32>
    %272 = vector.extract_strided_slice %271 {offsets = [0, 0], sizes = [2, 64], strides = [1, 1]} : vector<2x256xf32> to vector<2x64xf32>
    %273 = vector.extract_strided_slice %271 {offsets = [0, 64], sizes = [2, 64], strides = [1, 1]} : vector<2x256xf32> to vector<2x64xf32>
    %274 = vector.extract_strided_slice %271 {offsets = [0, 128], sizes = [2, 64], strides = [1, 1]} : vector<2x256xf32> to vector<2x64xf32>
    %275 = vector.extract_strided_slice %271 {offsets = [0, 192], sizes = [2, 64], strides = [1, 1]} : vector<2x256xf32> to vector<2x64xf32>
    %276 = arith.mulf %273, %237 : vector<2x64xf32>
    %277 = arith.mulf %272, %274 : vector<2x64xf32>
    %278 = arith.addf %276, %277 : vector<2x64xf32>
    %279 = math.tanh %278 : vector<2x64xf32>
    %280 = arith.mulf %275, %279 : vector<2x64xf32>
    %c10 = arith.constant 10 : index
    %c0_57 = arith.constant 0 : index
    %281 = vector.load %arg19[%c10, %c0_57] : memref<16x64xf32, #tpu.memory_space<vmem>>, vector<2x64xf32>
    tpu.vector_store %arg19[%c10, %c0_57], %280 {strides = array<i32>} : memref<16x64xf32, #tpu.memory_space<vmem>>, vector<2x64xf32>,
    %282 = vector.extract_strided_slice %18 {offsets = [12, 0], sizes = [2, 256], strides = [1, 1]} : vector<16x256xf32> to vector<2x256xf32>
    %cst_58 = arith.constant dense<0.000000e+00> : vector<2x256xf32>
    %283 = tpu.matmul %259, %19, %cst_58 {dimension_numbers = #tpu.dot_dimension_numbers<[1], [0], [0], [1], [0, 0, 1, 1], [], []>} : vector<2x64xf32>, vector<64x256xf32>, vector<2x256xf32> -> vector<2x256xf32>
    %284 = arith.addf %282, %283 : vector<2x256xf32>
    %285 = vector.broadcast %31 : vector<1x256xf32> to vector<2x256xf32>
    %286 = arith.mulf %284, %285 : vector<2x256xf32>
    %287 = math.tanh %286 : vector<2x256xf32>
    %288 = vector.broadcast %31 : vector<1x256xf32> to vector<2x256xf32>
    %289 = arith.mulf %287, %288 : vector<2x256xf32>
    %290 = vector.broadcast %34 : vector<1x256xf32> to vector<2x256xf32>
    %291 = arith.addf %289, %290 : vector<2x256xf32>
    %292 = vector.extract_strided_slice %291 {offsets = [0, 0], sizes = [2, 64], strides = [1, 1]} : vector<2x256xf32> to vector<2x64xf32>
    %293 = vector.extract_strided_slice %291 {offsets = [0, 64], sizes = [2, 64], strides = [1, 1]} : vector<2x256xf32> to vector<2x64xf32>
    %294 = vector.extract_strided_slice %291 {offsets = [0, 128], sizes = [2, 64], strides = [1, 1]} : vector<2x256xf32> to vector<2x64xf32>
    %295 = vector.extract_strided_slice %291 {offsets = [0, 192], sizes = [2, 64], strides = [1, 1]} : vector<2x256xf32> to vector<2x64xf32>
    %296 = arith.mulf %293, %257 : vector<2x64xf32>
    %297 = arith.mulf %292, %294 : vector<2x64xf32>
    %298 = arith.addf %296, %297 : vector<2x64xf32>
    %299 = math.tanh %298 : vector<2x64xf32>
    %300 = arith.mulf %295, %299 : vector<2x64xf32>
    %cst_59 = arith.constant dense<0.000000e+00> : vector<2x256xf32>
    %301 = tpu.matmul %300, %20, %cst_59 {dimension_numbers = #tpu.dot_dimension_numbers<[1], [0], [0], [1], [0, 0, 1, 1], [], []>} : vector<2x64xf32>, vector<64x256xf32>, vector<2x256xf32> -> vector<2x256xf32>
    %cst_60 = arith.constant dense<0.000000e+00> : vector<2x256xf32>
    %302 = tpu.matmul %280, %21, %cst_60 {dimension_numbers = #tpu.dot_dimension_numbers<[1], [0], [0], [1], [0, 0, 1, 1], [], []>} : vector<2x64xf32>, vector<64x256xf32>, vector<2x256xf32> -> vector<2x256xf32>
    %303 = arith.addf %301, %302 : vector<2x256xf32>
    %304 = vector.broadcast %22 : vector<1x256xf32> to vector<2x256xf32>
    %305 = arith.addf %303, %304 : vector<2x256xf32>
    %306 = vector.broadcast %31 : vector<1x256xf32> to vector<2x256xf32>
    %307 = arith.mulf %305, %306 : vector<2x256xf32>
    %308 = math.tanh %307 : vector<2x256xf32>
    %309 = vector.broadcast %31 : vector<1x256xf32> to vector<2x256xf32>
    %310 = arith.mulf %308, %309 : vector<2x256xf32>
    %311 = vector.broadcast %34 : vector<1x256xf32> to vector<2x256xf32>
    %312 = arith.addf %310, %311 : vector<2x256xf32>
    %313 = vector.extract_strided_slice %312 {offsets = [0, 0], sizes = [2, 64], strides = [1, 1]} : vector<2x256xf32> to vector<2x64xf32>
    %314 = vector.extract_strided_slice %312 {offsets = [0, 64], sizes = [2, 64], strides = [1, 1]} : vector<2x256xf32> to vector<2x64xf32>
    %315 = vector.extract_strided_slice %312 {offsets = [0, 128], sizes = [2, 64], strides = [1, 1]} : vector<2x256xf32> to vector<2x64xf32>
    %316 = vector.extract_strided_slice %312 {offsets = [0, 192], sizes = [2, 64], strides = [1, 1]} : vector<2x256xf32> to vector<2x64xf32>
    %317 = arith.mulf %314, %278 : vector<2x64xf32>
    %318 = arith.mulf %313, %315 : vector<2x64xf32>
    %319 = arith.addf %317, %318 : vector<2x64xf32>
    %320 = math.tanh %319 : vector<2x64xf32>
    %321 = arith.mulf %316, %320 : vector<2x64xf32>
    %c12 = arith.constant 12 : index
    %c0_61 = arith.constant 0 : index
    %322 = vector.load %arg19[%c12, %c0_61] : memref<16x64xf32, #tpu.memory_space<vmem>>, vector<2x64xf32>
    tpu.vector_store %arg19[%c12, %c0_61], %321 {strides = array<i32>} : memref<16x64xf32, #tpu.memory_space<vmem>>, vector<2x64xf32>,
    %323 = vector.extract_strided_slice %18 {offsets = [14, 0], sizes = [2, 256], strides = [1, 1]} : vector<16x256xf32> to vector<2x256xf32>
    %cst_62 = arith.constant dense<0.000000e+00> : vector<2x256xf32>
    %324 = tpu.matmul %300, %19, %cst_62 {dimension_numbers = #tpu.dot_dimension_numbers<[1], [0], [0], [1], [0, 0, 1, 1], [], []>} : vector<2x64xf32>, vector<64x256xf32>, vector<2x256xf32> -> vector<2x256xf32>
    %325 = arith.addf %323, %324 : vector<2x256xf32>
    %326 = vector.broadcast %31 : vector<1x256xf32> to vector<2x256xf32>
    %327 = arith.mulf %325, %326 : vector<2x256xf32>
    %328 = math.tanh %327 : vector<2x256xf32>
    %329 = vector.broadcast %31 : vector<1x256xf32> to vector<2x256xf32>
    %330 = arith.mulf %328, %329 : vector<2x256xf32>
    %331 = vector.broadcast %34 : vector<1x256xf32> to vector<2x256xf32>
    %332 = arith.addf %330, %331 : vector<2x256xf32>
    %333 = vector.extract_strided_slice %332 {offsets = [0, 0], sizes = [2, 64], strides = [1, 1]} : vector<2x256xf32> to vector<2x64xf32>
    %334 = vector.extract_strided_slice %332 {offsets = [0, 64], sizes = [2, 64], strides = [1, 1]} : vector<2x256xf32> to vector<2x64xf32>
    %335 = vector.extract_strided_slice %332 {offsets = [0, 128], sizes = [2, 64], strides = [1, 1]} : vector<2x256xf32> to vector<2x64xf32>
    %336 = vector.extract_strided_slice %332 {offsets = [0, 192], sizes = [2, 64], strides = [1, 1]} : vector<2x256xf32> to vector<2x64xf32>
    %337 = arith.mulf %334, %298 : vector<2x64xf32>
    %338 = arith.mulf %333, %335 : vector<2x64xf32>
    %339 = arith.addf %337, %338 : vector<2x64xf32>
    %340 = math.tanh %339 : vector<2x64xf32>
    %341 = arith.mulf %336, %340 : vector<2x64xf32>
    %cst_63 = arith.constant dense<0.000000e+00> : vector<2x256xf32>
    %342 = tpu.matmul %341, %20, %cst_63 {dimension_numbers = #tpu.dot_dimension_numbers<[1], [0], [0], [1], [0, 0, 1, 1], [], []>} : vector<2x64xf32>, vector<64x256xf32>, vector<2x256xf32> -> vector<2x256xf32>
    %cst_64 = arith.constant dense<0.000000e+00> : vector<2x256xf32>
    %343 = tpu.matmul %321, %21, %cst_64 {dimension_numbers = #tpu.dot_dimension_numbers<[1], [0], [0], [1], [0, 0, 1, 1], [], []>} : vector<2x64xf32>, vector<64x256xf32>, vector<2x256xf32> -> vector<2x256xf32>
    %344 = arith.addf %342, %343 : vector<2x256xf32>
    %345 = vector.broadcast %22 : vector<1x256xf32> to vector<2x256xf32>
    %346 = arith.addf %344, %345 : vector<2x256xf32>
    %347 = vector.broadcast %31 : vector<1x256xf32> to vector<2x256xf32>
    %348 = arith.mulf %346, %347 : vector<2x256xf32>
    %349 = math.tanh %348 : vector<2x256xf32>
    %350 = vector.broadcast %31 : vector<1x256xf32> to vector<2x256xf32>
    %351 = arith.mulf %349, %350 : vector<2x256xf32>
    %352 = vector.broadcast %34 : vector<1x256xf32> to vector<2x256xf32>
    %353 = arith.addf %351, %352 : vector<2x256xf32>
    %354 = vector.extract_strided_slice %353 {offsets = [0, 0], sizes = [2, 64], strides = [1, 1]} : vector<2x256xf32> to vector<2x64xf32>
    %355 = vector.extract_strided_slice %353 {offsets = [0, 64], sizes = [2, 64], strides = [1, 1]} : vector<2x256xf32> to vector<2x64xf32>
    %356 = vector.extract_strided_slice %353 {offsets = [0, 128], sizes = [2, 64], strides = [1, 1]} : vector<2x256xf32> to vector<2x64xf32>
    %357 = vector.extract_strided_slice %353 {offsets = [0, 192], sizes = [2, 64], strides = [1, 1]} : vector<2x256xf32> to vector<2x64xf32>
    %358 = arith.mulf %355, %319 : vector<2x64xf32>
    %359 = arith.mulf %354, %356 : vector<2x64xf32>
    %360 = arith.addf %358, %359 : vector<2x64xf32>
    %361 = math.tanh %360 : vector<2x64xf32>
    %362 = arith.mulf %357, %361 : vector<2x64xf32>
    %c14 = arith.constant 14 : index
    %c0_65 = arith.constant 0 : index
    %363 = vector.load %arg19[%c14, %c0_65] : memref<16x64xf32, #tpu.memory_space<vmem>>, vector<2x64xf32>
    tpu.vector_store %arg19[%c14, %c0_65], %362 {strides = array<i32>} : memref<16x64xf32, #tpu.memory_space<vmem>>, vector<2x64xf32>,
    %c0_66 = arith.constant 0 : index
    %c0_67 = arith.constant 0 : index
    %364 = vector.load %arg19[%c0_66, %c0_67] : memref<16x64xf32, #tpu.memory_space<vmem>>, vector<16x64xf32>
    %c0_68 = arith.constant 0 : index
    %c0_69 = arith.constant 0 : index
    %365 = vector.load %arg13[%c0_68, %c0_69] : memref<64x1024xf32, #tpu.memory_space<vmem>>, vector<64x1024xf32>
    %cst_70 = arith.constant dense<0.000000e+00> : vector<16x1024xf32>
    %366 = tpu.matmul %364, %365, %cst_70 {dimension_numbers = #tpu.dot_dimension_numbers<[1], [0], [0], [1], [0, 0, 1, 1], [], []>} : vector<16x64xf32>, vector<64x1024xf32>, vector<16x1024xf32> -> vector<16x1024xf32>
    %c0_71 = arith.constant 0 : index
    %c0_72 = arith.constant 0 : index
    %367 = vector.load %arg14[%c0_71, %c0_72] : memref<1x1024xf32, #tpu.memory_space<vmem>>, vector<1x1024xf32>
    %368 = vector.broadcast %367 : vector<1x1024xf32> to vector<16x1024xf32>
    %369 = arith.addf %366, %368 : vector<16x1024xf32>
    %cst_73 = arith.constant 0.000000e+00 : f32
    %370 = vector.broadcast %cst_73 : f32 to vector<16x1024xf32>
    %371 = arith.maximumf %369, %370 : vector<16x1024xf32>
    %c0_74 = arith.constant 0 : index
    %c0_75 = arith.constant 0 : index
    %372 = vector.load %arg15[%c0_74, %c0_75] : memref<1024x128xf32, #tpu.memory_space<vmem>>, vector<1024x128xf32>
    %cst_76 = arith.constant dense<0.000000e+00> : vector<16x128xf32>
    %373 = tpu.matmul %371, %372, %cst_76 {dimension_numbers = #tpu.dot_dimension_numbers<[1], [0], [0], [1], [0, 0, 1, 1], [], []>} : vector<16x1024xf32>, vector<1024x128xf32>, vector<16x128xf32> -> vector<16x128xf32>
    %c0_77 = arith.constant 0 : index
    %c0_78 = arith.constant 0 : index
    %374 = vector.load %arg16[%c0_77, %c0_78] : memref<1x128xf32, #tpu.memory_space<vmem>>, vector<1x128xf32>
    %375 = vector.broadcast %374 : vector<1x128xf32> to vector<16x128xf32>
    %376 = arith.addf %373, %375 : vector<16x128xf32>
    %c0_79 = arith.constant 0 : index
    %c0_80 = arith.constant 0 : index
    %377 = vector.load %arg17[%c0_79, %c0_80] : memref<16x128xf32, #tpu.memory_space<vmem>>, vector<16x128xf32>
    tpu.vector_store %arg17[%c0_79, %c0_80], %376 {strides = array<i32>} : memref<16x128xf32, #tpu.memory_space<vmem>>, vector<16x128xf32>,
    %c0_81 = arith.constant 0 : index
    %c0_82 = arith.constant 0 : index
    %378 = vector.load %arg18[%c0_81, %c0_82] : memref<8x64xf32, #tpu.memory_space<vmem>>, vector<2x64xf32>
    tpu.vector_store %arg18[%c0_81, %c0_82], %341 {strides = array<i32>} : memref<8x64xf32, #tpu.memory_space<vmem>>, vector<2x64xf32>,
    %c2_83 = arith.constant 2 : index
    %c0_84 = arith.constant 0 : index
    %379 = vector.load %arg18[%c2_83, %c0_84] : memref<8x64xf32, #tpu.memory_space<vmem>>, vector<2x64xf32>
    tpu.vector_store %arg18[%c2_83, %c0_84], %362 {strides = array<i32>} : memref<8x64xf32, #tpu.memory_space<vmem>>, vector<2x64xf32>,
    %c4_85 = arith.constant 4 : index
    %c0_86 = arith.constant 0 : index
    %380 = vector.load %arg18[%c4_85, %c0_86] : memref<8x64xf32, #tpu.memory_space<vmem>>, vector<2x64xf32>
    tpu.vector_store %arg18[%c4_85, %c0_86], %339 {strides = array<i32>} : memref<8x64xf32, #tpu.memory_space<vmem>>, vector<2x64xf32>,
    %c6_87 = arith.constant 6 : index
    %c0_88 = arith.constant 0 : index
    %381 = vector.load %arg18[%c6_87, %c0_88] : memref<8x64xf32, #tpu.memory_space<vmem>>, vector<2x64xf32>
    tpu.vector_store %arg18[%c6_87, %c0_88], %360 {strides = array<i32>} : memref<8x64xf32, #tpu.memory_space<vmem>>, vector<2x64xf32>,
    return
  }
}

</mosaic_0001>

<bundles_post_ra>
// kernel: dqn_chord_forward.1
= control target key start
LH: loop header
LB: loop body
LE: loop exit
PB: predicated region body
PF: predicated region fallthrough
CT: control target
= control target key end

     0   :  { %v6159_v0 = vmov 0.0   ;;  %vm108_vm0 = vcmask 1044480   ;;  %vm101_vm1 = vcmask 39936   ;;  %vm281_vm2 = vcmask 1043456   ;;  %s6137_s4 = inlined_call_operand.vmem [shape: f32[133,64], index: 4, kind: input, shape index: {}]   ;;  %s6138_s3 = inlined_call_operand.vmem [shape: f32[144,64], index: 3, kind: input, shape index: {}]   ;;  %s6139_s1 = inlined_call_operand.vmem [shape: f32[16,133], index: 1, kind: input, shape index: {}]   ;;  %s6140_s5 = inlined_call_operand.vmem [shape: f32[20,64], index: 5, kind: input, shape index: {}]   ;;  %s6141_s0 = inlined_call_operand.vmem [shape: f32[16,144], index: 0, kind: input, shape index: {}]   ;;  %s6142_s2 = inlined_call_operand.vmem [shape: f32[16,20], index: 2, kind: input, shape index: {}]   ;;  %s6143_s7 = inlined_call_operand.vmem [shape: f32[64,256], index: 7, kind: input, shape index: {}]   ;;  %s6144_s8 = inlined_call_operand.vmem [shape: f32[64,256], index: 8, kind: input, shape index: {}]   ;;  %s6145_s6 = inlined_call_operand.vmem [shape: f32[1,64], index: 6, kind: input, shape index: {}]   ;;  %s6146_s9 = inlined_call_operand.vmem [shape: f32[1,256], index: 9, kind: input, shape index: {}]   ;;  %s6147_s11 = inlined_call_operand.vmem [shape: f32[64,256], index: 11, kind: input, shape index: {}]   ;;  %s6148_s10 = inlined_call_operand.vmem [shape: f32[64,256], index: 10, kind: input, shape index: {}]   ;;  %s6149_s12 = inlined_call_operand.vmem [shape: f32[1,256], index: 12, kind: input, shape index: {}]   ;;  %s6150_s13 = inlined_call_operand.vmem [shape: f32[64,1024], index: 13, kind: input, shape index: {}]   ;;  %s6151_s18 = inlined_call_operand.vmem [shape: f32[8,64], index: 18, kind: output, shape index: {1}]   ;;  %s6152_s15 = inlined_call_operand.vmem [shape: f32[1024,128], index: 15, kind: input, shape index: {}]   ;;  %s6153_s14 = inlined_call_operand.vmem [shape: f32[1,1024], index: 14, kind: input, shape index: {}]   ;;  %s6154_s16 = inlined_call_operand.vmem [shape: f32[1,128], index: 16, kind: input, shape index: {}]   ;;  %s6155_s17 = inlined_call_operand.vmem [shape: f32[16,128], index: 17, kind: output, shape index: {0}]  }
   0x1   :  { %6203 = sst [smem:[#allocation20_spill]] %s6137_s4  ;;  %112 = vmatprep.subr.mxu0 %v6159_v0  ;;  %194 = vmatprep.subr.mxu1 %v6159_v0  ;;  %v273_v37 = vld [vmem:[%s6140_s5 + $0x10] sm:$0xf]  ;;  %v59_v39 = vld [vmem:[%s6141_s0 + $0x8] sm:$0xff]  ;;  %vm187_vm3 = vcmask 130048   ;;  %v58_v40 = vld [vmem:[%s6141_s0] sm:$0xff] }
   0x2   :  { %6204 = sst [smem:[#allocation21_spill]] %s6138_s3  ;;  %v272_v42 = vld [vmem:[%s6140_s5 + $0x8] sm:$0xff]  ;;  %3627 = vmatprep.mubr.msk.f32.mxu1 %vm187_vm3, %v59_v39  ;;  %v61_v44 = vld [vmem:[%s6141_s0 + $0x18] sm:$0xff]  ;;  %v269_v45 = vld [vmem:[%s6142_s2] sm:$0xff]  ;;  %vm274_vm4 = vcmask 162816   ;;  %vm399_vm5 = vcmask 523264  }
   0x3   :  { %6205 = sst [smem:[#allocation22_spill]] %s6139_s1  ;;  %v60_v46 = vld [vmem:[%s6141_s0 + $0x10] sm:$0xff]  ;;  %v271_v47 = vld [vmem:[%s6140_s5] sm:$0xff]  ;;  %v386_v48 = vld [vmem:[%s6143_s7 + $0x78] sm:$0xff]  ;;  %vm819_vm7 = vcmask 517120   ;;  %vm3603_vm8 = vcmask 523270  }
   0x4   :  { %s6206_s29 = sld [smem:[#allocation20_spill]]  ;;  %v270_v49 = vld [vmem:[%s6142_s2 + $0x8] sm:$0xff]  ;;  %v4270_v50 = vld [vmem:[%s6144_s8 + $0x78] sm:$0xff]  ;;  %v385_v51 = vld [vmem:[%s6143_s7 + $0x70] sm:$0xff] }
   0x5   :  { %s6207_s19 = sld [smem:[#allocation21_spill]]  ;;  %6209 = vst [vmem:[#allocation3_spill] sm:$0xff] %v4270_v50  ;;  %v384_v52 = vld [vmem:[%s6143_s7 + $0x68] sm:$0xff]  ;;  %v4282_v53 = vld [vmem:[%s6144_s8 + $0x70] sm:$0xff]  ;;  %v383_v55 = vld [vmem:[%s6143_s7 + $0x60] sm:$0xff] }
   0x6   :  { %s6208_s4 = sld [smem:[#allocation22_spill]]  ;;  %v4288_v54 = vld [vmem:[%s6144_s8 + $0x68] sm:$0xff]  ;;  %v4297_v56 = vld [vmem:[%s6144_s8 + $0x60] sm:$0xff]  ;;  %v382_v57 = vld [vmem:[%s6143_s7 + $0x58] sm:$0xff] }
   0x7   :  { %v4306_v58 = vld [vmem:[%s6144_s8 + $0x58] sm:$0xff]  ;;  %v381_v59 = vld [vmem:[%s6143_s7 + $0x50] sm:$0xff]  ;;  %v380_v61 = vld [vmem:[%s6143_s7 + $0x48] sm:$0xff] }
   0x8   :  { %v4315_v60 = vld [vmem:[%s6144_s8 + $0x50] sm:$0xff]  ;;  %v4324_v62 = vld [vmem:[%s6144_s8 + $0x48] sm:$0xff]  ;;  %v379_v63 = vld [vmem:[%s6143_s7 + $0x40] sm:$0xff] }
   0x9   :  { %v387_v39 = vld [vmem:[%s6146_s9] sm:$0x3]  ;;  %s3981_s9 = smov 64  }
   0xa   :  { %v99_v1 = vld [vmem:[%s6206_s29 + $0x78] sm:$0xff]  ;;  %v98_v3 = vld [vmem:[%s6206_s29 + $0x70] sm:$0xff]  ;;  %v97_v5 = vld [vmem:[%s6206_s29 + $0x68] sm:$0xff] }
   0xb   :  { %v77_v2 = vld [vmem:[%s6207_s19 + $0x78] sm:$0xff]  ;;  %113 = vmatpush1.msra.mxu0 %v99_v1  ;;  %v76_v4 = vld [vmem:[%s6207_s19 + $0x70] sm:$0xff]  ;;  %v75_v6 = vld [vmem:[%s6207_s19 + $0x68] sm:$0xff] }
   0xc   :  { %195 = vmatpush1.msra.mxu1 %v77_v2  ;;  %114 = vmatprep.subr.mxu0 %v6159_v0  ;;  %v96_v7 = vld [vmem:[%s6206_s29 + $0x60] sm:$0xff]  ;;  %v95_v9 = vld [vmem:[%s6206_s29 + $0x58] sm:$0xff]  ;;  %v94_v11 = vld [vmem:[%s6206_s29 + $0x50] sm:$0xff] }
   0xd   :  { %196 = vmatprep.subr.mxu1 %v6159_v0  ;;  %115 = vmatpush1.msra.mxu0 %v98_v3  ;;  %v74_v8 = vld [vmem:[%s6207_s19 + $0x60] sm:$0xff]  ;;  %v73_v10 = vld [vmem:[%s6207_s19 + $0x58] sm:$0xff]  ;;  %v72_v12 = vld [vmem:[%s6207_s19 + $0x50] sm:$0xff] }
   0xe   :  { %197 = vmatpush1.msra.mxu1 %v76_v4  ;;  %116 = vmatprep.subr.mxu0 %v6159_v0  ;;  %v93_v13 = vld [vmem:[%s6206_s29 + $0x48] sm:$0xff]  ;;  %v92_v15 = vld [vmem:[%s6206_s29 + $0x40] sm:$0xff]  ;;  %v91_v17 = vld [vmem:[%s6206_s29 + $0x38] sm:$0xff] }
   0xf   :  { %198 = vmatprep.subr.mxu1 %v6159_v0  ;;  %117 = vmatpush1.msra.mxu0 %v97_v5  ;;  %v71_v14 = vld [vmem:[%s6207_s19 + $0x48] sm:$0xff]  ;;  %v70_v16 = vld [vmem:[%s6207_s19 + $0x40] sm:$0xff]  ;;  %v69_v18 = vld [vmem:[%s6207_s19 + $0x38] sm:$0xff] }
  0x10   :  { %199 = vmatpush1.msra.mxu1 %v75_v6  ;;  %118 = vmatprep.subr.mxu0 %v6159_v0  ;;  %v90_v19 = vld [vmem:[%s6206_s29 + $0x30] sm:$0xff]  ;;  %v89_v21 = vld [vmem:[%s6206_s29 + $0x28] sm:$0xff]  ;;  %v88_v23 = vld [vmem:[%s6206_s29 + $0x20] sm:$0xff] }
  0x11   :  { %200 = vmatprep.subr.mxu1 %v6159_v0  ;;  %119 = vmatpush1.msra.mxu0 %v96_v7  ;;  %v68_v20 = vld [vmem:[%s6207_s19 + $0x30] sm:$0xff]  ;;  %v67_v22 = vld [vmem:[%s6207_s19 + $0x28] sm:$0xff]  ;;  %v66_v24 = vld [vmem:[%s6207_s19 + $0x20] sm:$0xff] }
  0x12   :  { %201 = vmatpush1.msra.mxu1 %v74_v8  ;;  %120 = vmatprep.subr.mxu0 %v6159_v0  ;;  %v87_v25 = vld [vmem:[%s6206_s29 + $0x18] sm:$0xff]  ;;  %v86_v27 = vld [vmem:[%s6206_s29 + $0x10] sm:$0xff]  ;;  %v85_v29 = vld [vmem:[%s6206_s29 + $0x8] sm:$0xff] }
  0x13   :  { %202 = vmatprep.subr.mxu1 %v6159_v0  ;;  %121 = vmatpush1.msra.mxu0 %v95_v9  ;;  %v65_v26 = vld [vmem:[%s6207_s19 + $0x18] sm:$0xff]  ;;  %v64_v28 = vld [vmem:[%s6207_s19 + $0x10] sm:$0xff]  ;;  %v63_v30 = vld [vmem:[%s6207_s19 + $0x8] sm:$0xff] }
  0x14   :  { %203 = vmatpush1.msra.mxu1 %v73_v10  ;;  %122 = vmatprep.subr.mxu0 %v6159_v0  ;;  %v84_v31 = vld [vmem:[%s6206_s29] sm:$0xff]  ;;  %v81_v34 = vld [vmem:[%s6208_s4 + $0x8] sm:$0xff]  ;;  %v83_v41 = vld [vmem:[%s6208_s4 + $0x18] sm:$0xff] }
  0x15   :  { %204 = vmatprep.subr.mxu1 %v6159_v0  ;;  %123 = vmatpush1.msra.mxu0 %v94_v11  ;;  %v62_v32 = vld [vmem:[%s6207_s19] sm:$0xff]  ;;  %v79_v35 = vld [vmem:[%s6207_s19 + $0x88] sm:$0xff]  ;;  %v82_v43 = vld [vmem:[%s6208_s4 + $0x10] sm:$0xff] }
  0x16   :  { %205 = vmatpush1.msra.mxu1 %v72_v12  ;;  %124 = vmatprep.subr.mxu0 %v6159_v0  ;;  %v100_v33 = vld [vmem:[%s6206_s29 + $0x80] sm:$0x1f]  ;;  %v378_v2 = vld [vmem:[%s6143_s7 + $0x38] sm:$0xff]  ;;  %v377_v4 = vld [vmem:[%s6143_s7 + $0x30] sm:$0xff] }
  0x17   :  { %206 = vmatprep.subr.mxu1 %v6159_v0  ;;  %125 = vmatpush1.msra.mxu0 %v93_v13  ;;  %v80_v36 = vld [vmem:[%s6208_s4] sm:$0xff]  ;;  %v4342_v3 = vld [vmem:[%s6144_s8 + $0x38] sm:$0xff]  ;;  %v4351_v5 = vld [vmem:[%s6144_s8 + $0x30] sm:$0xff] }
  0x18   :  { %207 = vmatpush1.msra.mxu1 %v71_v14  ;;  %126 = vmatprep.subr.mxu0 %v6159_v0  ;;  %v78_v38 = vld [vmem:[%s6207_s19 + $0x80] sm:$0xff]  ;;  %v376_v6 = vld [vmem:[%s6143_s7 + $0x28] sm:$0xff]  ;;  %v374_v10 = vld [vmem:[%s6143_s7 + $0x18] sm:$0xff] }
  0x19   :  { %208 = vmatprep.subr.mxu1 %v6159_v0  ;;  %127 = vmatpush1.msra.mxu0 %v92_v15  ;;  %v4333_v1 = vld [vmem:[%s6144_s8 + $0x40] sm:$0xff]  ;;  %v4360_v7 = vld [vmem:[%s6144_s8 + $0x28] sm:$0xff]  ;;  %v4378_v11 = vld [vmem:[%s6144_s8 + $0x18] sm:$0xff] }
  0x1a   :  { %209 = vmatpush1.msra.mxu1 %v70_v16  ;;  %128 = vmatprep.subr.mxu0 %v6159_v0  ;;  %v375_v8 = vld [vmem:[%s6143_s7 + $0x20] sm:$0xff]  ;;  %v373_v12 = vld [vmem:[%s6143_s7 + $0x10] sm:$0xff]  ;;  %v372_v14 = vld [vmem:[%s6143_s7 + $0x8] sm:$0xff] }
  0x1b   :  { %210 = vmatprep.subr.mxu1 %v6159_v0  ;;  %129 = vmatpush1.msra.mxu0 %v91_v17  ;;  %v4369_v9 = vld [vmem:[%s6144_s8 + $0x20] sm:$0xff]  ;;  %v4387_v13 = vld [vmem:[%s6144_s8 + $0x10] sm:$0xff]  ;;  %v4396_v15 = vld [vmem:[%s6144_s8 + $0x8] sm:$0xff] }
  0x1c   :  { %211 = vmatpush1.msra.mxu1 %v69_v18  ;;  %130 = vmatprep.subr.mxu0 %v6159_v0  ;;  %v371_v16 = vld [vmem:[%s6143_s7] sm:$0xff] }
  0x1d   :  { %212 = vmatprep.subr.mxu1 %v6159_v0  ;;  %131 = vmatpush1.msra.mxu0 %v90_v19  ;;  %v4405_v17 = vld [vmem:[%s6144_s8] sm:$0xff] }
  0x1e   :  { %213 = vmatpush1.msra.mxu1 %v68_v20  ;;  %132 = vmatprep.subr.mxu0 %v6159_v0 }
  0x1f   :  { %214 = vmatprep.subr.mxu1 %v6159_v0  ;;  %133 = vmatpush1.msra.mxu0 %v89_v21 }
  0x20   :  { %215 = vmatpush1.msra.mxu1 %v67_v22  ;;  %134 = vmatprep.subr.mxu0 %v6159_v0 }
  0x21   :  { %216 = vmatprep.subr.mxu1 %v6159_v0  ;;  %135 = vmatpush1.msra.mxu0 %v88_v23 }
  0x22   :  { %217 = vmatpush1.msra.mxu1 %v66_v24  ;;  %136 = vmatprep.subr.mxu0 %v6159_v0 }
  0x23   :  { %218 = vmatprep.subr.mxu1 %v6159_v0  ;;  %137 = vmatpush1.msra.mxu0 %v87_v25 }
  0x24   :  { %219 = vmatpush1.msra.mxu1 %v65_v26  ;;  %138 = vmatprep.subr.mxu0 %v6159_v0 }
  0x25   :  { %220 = vmatprep.subr.mxu1 %v6159_v0  ;;  %139 = vmatpush1.msra.mxu0 %v86_v27 }
  0x26   :  { %221 = vmatpush1.msra.mxu1 %v64_v28  ;;  %140 = vmatprep.subr.mxu0 %v6159_v0 }
  0x27   :  { %222 = vmatprep.subr.mxu1 %v6159_v0  ;;  %141 = vmatpush1.msra.mxu0 %v85_v29 }
  0x28   :  { %223 = vmatpush1.msra.mxu1 %v63_v30  ;;  %142 = vmatprep.subr.mxu0 %v6159_v0 }
  0x29   :  { %224 = vmatprep.subr.mxu1 %v6159_v0  ;;  %143 = vmatpush1.msra.mxu0 %v84_v31  ;;  %v3632_v31 = vld [vmem:[%s6145_s6] ss:$0 sm:$0xff] }
  0x2a   :  { %225 = vmatpush1.msra.mxu1 %v62_v32  ;;  %174 = vmatprep.subr.mxu0 %v6159_v0 }
  0x2b   :  { %254 = vmatprep.subr.mxu1 %v6159_v0  ;;  %3624 = vmatpush2.msk.msra.mxu0 %vm108_vm0, %v100_v33 }
  0x2c   :  { %3625 = vmatprep.mubr.msk.f32.mxu0 %vm101_vm1, %v81_v34  ;;  %255 = vmatpush2.msra.mxu1 %v79_v35  ;;  %v389_v35 = vlaneseq }
  0x2d   :  { %177 = vmatmul.mubr.f32.vlgmr.msra.gmra.mxu0 %v80_v36  ;;  %256 = vmatprep.subr.mxu1 %v6159_v0 }
  0x2e   :  { %3823 = vmatprep.subr.msk.mxu0 %vm281_vm2, %v273_v37  ;;  %257 = vmatpush2.msra.mxu1 %v78_v38  ;;  %v4417_v36 = vshrl.u32 %v389_v35, 7  ;;  %v533_v38 = vand.u32 127, %v389_v35  ;;  %v4551_v35 = vld [vmem:[%s6148_s10 + $0x50] sm:$0xff] }
  0x2f   :  { %3824 = vmatpush3.msk.msra.mxu0 %vm281_vm2, %v273_v37  ;;  %259 = vmatmul.mubr.f32.vlgmr.msra.gmra.mxu1 %v58_v40 }
  0x30   :  { %3626 = vmatprep.mubr.msk.f32.mxu0 %vm101_vm1, %v83_v41  ;;  %3825 = vmatprep.subr.mxu0 %v272_v42  ;;  %6210 = vst [vmem:[#allocation4_spill] sm:$0xff] %v4417_v36  ;;  %v4420_v37 = vsub.s32 0, %v4417_v36  ;;  %v4426_v40 = vsub.s32 1, %v4417_v36 }
  0x31   :  { %182 = vmatmul.mubr.f32.gmra.mxu0 %v82_v43  ;;  %3628 = vmatprep.mubr.msk.f32.mxu1 %vm187_vm3, %v61_v44 }
  0x32   :  { %3826 = vmatpush3.msra.mxu0 %v272_v42  ;;  %3829 = vmatprep.mubr.msk.f32.mxu0 %vm274_vm4, %v269_v45  ;;  %6211 = vst [vmem:[#allocation5_spill] sm:$0xff] %v4420_v37  ;;  %6212 = vst [vmem:[#allocation6_spill] sm:$0xff] %v4426_v40  ;;  %v392_v41 = vrot.slane %v387_v39, %v4420_v37  ;;  %v534_v42 = vadd.s32 128, %v533_v38  ;;  %v4430_v43 = vrot.slane %v387_v39, %v4426_v40  ;;  %v4557_v38 = vld [vmem:[%s6147_s11 + $0x20] sm:$0xff]  ;;  %v4563_v39 = vld [vmem:[%s6148_s10 + $0x48] sm:$0xff] }
  0x33   :  { %264 = vmatmul.mubr.f32.gmra.mxu1 %v60_v46  ;;  %3827 = vmatprep.subr.mxu0 %v271_v47 }
  0x34   :  { %3828 = vmatpush3.msra.mxu0 %v271_v47  ;;  %422 = vmatprep.subr.mxu1 %v386_v48  ;;  %6213 = vst [vmem:[#allocation7_spill] sm:$0xff] %v4430_v43  ;;  %vm538_vm6 = vcmp.lt.s32.totalorder %v534_v42, 192  ;;  %v4575_v42 = vld [vmem:[%s6148_s10 + $0x40] sm:$0xff] }
  0x35   :  { %3830 = vmatmul.mubr.msk.f32.vlgmr.msra.gmra.mxu0 %vm274_vm4, %v270_v49  ;;  %470 = vmatprep.mubr.f32.mxu1 %v6159_v0  ;;  %6216 = vst [vmem:[#allocation10_spill] sm:$0xff] %v4575_v42 }
  0x36   :  { %612 = vmatprep.mubr.f32.mxu0 %v6159_v0  ;;  %564 = vmatprep.subr.mxu0 %v4270_v50 }
  0x37   :  { %423 = vmatpush1.msra.mxu1 %v385_v51  ;;  %565 = vmatpush1.msra.mxu0 %v4282_v53  ;;  %v3980_v51 = vmov 0.5  }
  0x38   :  { %424 = vmatprep.subr.mxu1 %v384_v52  ;;  %566 = vmatprep.subr.mxu0 %v4288_v54  ;;  %v4439_v52 = vsel %vm538_vm6, 1.0, %v3980_v51 }
  0x39   :  { %425 = vmatpush1.msra.mxu1 %v383_v55  ;;  %567 = vmatpush1.msra.mxu0 %v4297_v56 }
  0x3a   :  { %426 = vmatprep.subr.mxu1 %v382_v57  ;;  %568 = vmatprep.subr.mxu0 %v4306_v58 }
  0x3b   :  { %427 = vmatpush1.msra.mxu1 %v381_v59  ;;  %569 = vmatpush1.msra.mxu0 %v4315_v60 }
  0x3c   :  { %428 = vmatprep.subr.mxu1 %v380_v61  ;;  %570 = vmatprep.subr.mxu0 %v4324_v62 }
  0x3d   :  { %429 = vmatpush1.msra.mxu1 %v379_v63  ;;  %571 = vmatpush1.msra.mxu0 %v4333_v1 }
  0x3e   :  { %430 = vmatprep.subr.mxu1 %v378_v2  ;;  %572 = vmatprep.subr.mxu0 %v4342_v3 }
  0x3f   :  { %431 = vmatpush1.msra.mxu1 %v377_v4  ;;  %573 = vmatpush1.msra.mxu0 %v4351_v5 }
  0x40   :  { %432 = vmatprep.subr.mxu1 %v376_v6  ;;  %574 = vmatprep.subr.mxu0 %v4360_v7 }
  0x41   :  { %433 = vmatpush1.msra.mxu1 %v375_v8  ;;  %575 = vmatpush1.msra.mxu0 %v4369_v9 }
  0x42   :  { %434 = vmatprep.subr.mxu1 %v374_v10  ;;  %576 = vmatprep.subr.mxu0 %v4378_v11  ;;  %v4446_v10 = vsel %vm538_vm6, 0.0, %v3980_v51  ;;  %v4605_v51 = vld [vmem:[%s6147_s11] sm:$0xff] }
  0x43   :  { %435 = vmatpush1.msra.mxu1 %v373_v12  ;;  %577 = vmatpush1.msra.mxu0 %v4387_v13 }
  0x44   :  { %436 = vmatprep.subr.mxu1 %v372_v14  ;;  %578 = vmatprep.subr.mxu0 %v4396_v15 }
  0x45   :  { %437 = vmatpush1.msra.mxu1 %v371_v16  ;;  %579 = vmatpush1.msra.mxu0 %v4405_v17 }
  0x46   :  { %613 = vmatmul.mubr.f32.vlgmr.msra.gmra.mxu0 %v6159_v0 }
  0x47   :  { %778 = vmatprep.mubr.f32.mxu0 %v6159_v0 }
  0xed   :  { %v178_v18 = vpop.f32.mrf.mxu0 }
  0xef   :  { %v180_v19 = vpop.f32.mrf.mxu0  ;;  %v260_v20 = vpop.f32.mrf.mxu1 }
  0xf0   :  { %v261_v27 = vadd.f32 %v260_v20, %v178_v18  ;;  %v4460_v19 = vld [vmem:[%s6147_s11 + $0x78] sm:$0xff]  ;;  %v4465_v20 = vld [vmem:[%s6147_s11 + $0x70] sm:$0xff] }
  0xf1   :  { %v183_v21 = vpop.f32.mrf.mxu0  ;;  %v262_v22 = vpop.f32.mrf.mxu1  ;;  %6215 = vst [vmem:[#allocation9_spill] sm:$0xff] %v4460_v19  ;;  %654 = vmatprep.subr.mxu1 %v4460_v19 }
  0xf2   :  { %v4476_v22 = vld [vmem:[%s6147_s11 + $0x60] sm:$0xff] }
  0xf3   :  { %v185_v23 = vpop.f32.mrf.mxu0  ;;  %v265_v24 = vpop.f32.mrf.mxu1 }
  0xf4   :  { %v266_v28 = vadd.f32 %v265_v24, %v183_v21  ;;  %v4470_v21 = vld [vmem:[%s6147_s11 + $0x68] sm:$0xff]  ;;  %v4482_v23 = vld [vmem:[%s6147_s11 + $0x58] sm:$0xff]  ;;  %v4488_v24 = vld [vmem:[%s6147_s11 + $0x50] sm:$0xff] }
  0xf5   :  { %v3831_v25 = vpop.f32.mrf.mxu0  ;;  %v267_v26 = vpop.f32.mrf.mxu1 }
  0xf6   :  { %v361_v32 = vadd.f32 %v3831_v25, %v266_v28  ;;  %v4494_v25 = vld [vmem:[%s6147_s11 + $0x48] sm:$0xff]  ;;  %v4500_v26 = vld [vmem:[%s6147_s11 + $0x40] sm:$0xff]  ;;  %v4510_v28 = vld [vmem:[%s6148_s10 + $0x70] sm:$0xff] }
  0xf7   :  { %v351_v29 = vpop.f32.mrf.mxu0 }
  0xf8   :  { %v360_v30 = vadd.f32 %v351_v29, %v261_v27  ;;  %v370_v34 = vadd.f32 %v3632_v31, %v361_v32  ;;  %v4505_v27 = vld [vmem:[%s6148_s10 + $0x78] sm:$0xff]  ;;  %v4533_v32 = vld [vmem:[%s6147_s11 + $0x30] sm:$0xff] }
  0xf9   :  { %v4516_v29 = vld [vmem:[%s6147_s11 + $0x38] sm:$0xff]  ;;  %730 = vmatprep.subr.mxu0 %v4505_v27 }
  0xfa   :  { %v369_v33 = vadd.f32 %v3632_v31, %v360_v30  ;;  %v4522_v30 = vld [vmem:[%s6148_s10 + $0x68] sm:$0xff]  ;;  %v4527_v31 = vld [vmem:[%s6148_s10 + $0x60] sm:$0xff]  ;;  %731 = vmatpush1.msra.mxu0 %v4510_v28 }
  0xfb   :  { %732 = vmatprep.subr.mxu0 %v4522_v30 }
  0xfc   :  { %3633 = vmatmul.mubr.msk.f32.vlgmr.msra.gmra.mxu1 %vm399_vm5, %v369_v33  ;;  %v4539_v33 = vld [vmem:[%s6148_s10 + $0x58] sm:$0xff]  ;;  %733 = vmatpush1.msra.mxu0 %v4527_v31 }
  0xfd   :  { %476 = vmatprep.mubr.f32.mxu1 %v6159_v0  ;;  %655 = vmatpush1.msra.mxu1 %v4465_v20 }
  0xfe   :  { %656 = vmatprep.subr.mxu1 %v4470_v21  ;;  %734 = vmatprep.subr.mxu0 %v4539_v33 }
  0xff   :  { %657 = vmatpush1.msra.mxu1 %v4476_v22  ;;  %735 = vmatpush1.msra.mxu0 %v4551_v35 }
 0x100   :  { %3634 = vmatmul.mubr.msk.f32.gmra.mxu1 %vm399_vm5, %v370_v34  ;;  %658 = vmatprep.subr.mxu1 %v4482_v23  ;;  %v4545_v34 = vld [vmem:[%s6147_s11 + $0x28] sm:$0xff] }
 0x101   :  { %702 = vmatprep.mubr.f32.mxu1 %v6159_v0  ;;  %659 = vmatpush1.msra.mxu1 %v4488_v24 }
 0x102   :  { %660 = vmatprep.subr.mxu1 %v4494_v25  ;;  %736 = vmatprep.subr.mxu0 %v4563_v39 }
 0x103   :  { %661 = vmatpush1.msra.mxu1 %v4500_v26  ;;  %737 = vmatpush1.msra.mxu0 %v4575_v42 }
 0x104   :  { %662 = vmatprep.subr.mxu1 %v4516_v29 }
 0x105   :  { %663 = vmatpush1.msra.mxu1 %v4533_v32 }
 0x106   :  { %v614_v45 = vpop.f32.mrf.mxu0  ;;  %664 = vmatprep.subr.mxu1 %v4545_v34 }
 0x107   :  { %665 = vmatpush1.msra.mxu1 %v4557_v38 }
 0x108   :  { %v616_v55 = vpop.f32.mrf.mxu0 }
 0x1bc   :  { %v472_v44 = vpop.f32.mrf.mxu1 }
 0x1bd   :  { %v4432_v46 = vadd.f32 %v472_v44, %v392_v41  ;;  %v4581_v44 = vld [vmem:[%s6147_s11 + $0x10] sm:$0xff] }
 0x1be   :  { %v474_v47 = vpop.f32.mrf.mxu1 }
 0x1bf   :  { %v619_v48 = vadd.f32 %v614_v45, %v4432_v46  ;;  %v4436_v49 = vadd.f32 %v474_v47, %v4430_v43  ;;  %v4587_v45 = vld [vmem:[%s6148_s10 + $0x38] sm:$0xff]  ;;  %v4593_v47 = vld [vmem:[%s6147_s11 + $0x8] sm:$0xff] }
 0x1c0   :  { %v478_v57 = vpop.f32.mrf.mxu1  ;;  %6217 = vst [vmem:[#allocation11_spill] sm:$0xff] %v4587_v45  ;;  %738 = vmatprep.subr.mxu0 %v4587_v45 }
 0x1c1   :  { %v621_v59 = vmul.f32 0.5, %v619_v48  ;;  %v620_v61 = vadd.f32 %v616_v55, %v4436_v49  ;;  %v4442_v63 = vadd.f32 %v478_v57, %v392_v41  ;;  %v4569_v41 = vld [vmem:[%s6147_s11 + $0x18] sm:$0xff]  ;;  %v4599_v48 = vld [vmem:[%s6148_s10 + $0x30] sm:$0xff]  ;;  %v4611_v55 = vld [vmem:[%s6148_s10 + $0x28] sm:$0xff] }
 0x1c2   :  { %6218 = vst [vmem:[#allocation12_spill] sm:$0xff] %v4599_v48  ;;  %666 = vmatprep.subr.mxu1 %v4569_v41  ;;  %6219 = vst [vmem:[#allocation13_spill] sm:$0xff] %v4611_v55  ;;  %739 = vmatpush1.msra.mxu0 %v4599_v48  ;;  %v4620_v57 = vld [vmem:[%s6148_s10 + $0x20] sm:$0xff] }
 0x1c3   :  { %6214 = vst [vmem:[#allocation8_spill] sm:$0xff] %v4442_v63  ;;  %3835 = vtanh.f32 %v621_v59  ;;  %v622_v2 = vmul.f32 %v620_v61, %v4439_v52  ;;  %667 = vmatpush1.msra.mxu1 %v4581_v44  ;;  %6220 = vst [vmem:[#allocation14_spill] sm:$0xff] %v4620_v57  ;;  %740 = vmatprep.subr.mxu0 %v4611_v55  ;;  %v4627_v59 = vld [vmem:[%s6148_s10 + $0x18] sm:$0xff]  ;;  %v4634_v61 = vld [vmem:[%s6148_s10 + $0x10] sm:$0xff] }
 0x1c4   :  { %668 = vmatprep.subr.mxu1 %v4593_v47  ;;  %6221 = vst [vmem:[#allocation15_spill] sm:$0xff] %v4627_v59  ;;  %6222 = vst [vmem:[#allocation16_spill] sm:$0xff] %v4634_v61  ;;  %741 = vmatpush1.msra.mxu0 %v4620_v57 }
 0x1c5   :  { %3837 = vtanh.f32 %v622_v2  ;;  %669 = vmatpush1.msra.mxu1 %v4605_v51  ;;  %v4641_v2 = vld [vmem:[%s6148_s10 + $0x8] sm:$0xff]  ;;  %742 = vmatprep.subr.mxu0 %v4627_v59 }
 0x1c6   :  { %837 = vmatprep.subr.mxu1 %v4270_v50  ;;  %703 = vmatmul.mubr.f32.vlgmr.msra.gmra.mxu1 %v6159_v0  ;;  %6223 = vst [vmem:[#allocation17_spill] sm:$0xff] %v4641_v2 }
 0x1c7   :  { %838 = vmatpush1.msra.mxu1 %v4282_v53  ;;  %743 = vmatpush1.msra.mxu0 %v4634_v61 }
 0x1c8   :  { %839 = vmatprep.subr.mxu1 %v4288_v54  ;;  %744 = vmatprep.subr.mxu0 %v4641_v2 }
 0x1c9   :  { %840 = vmatpush1.msra.mxu1 %v4297_v56  ;;  %885 = vmatprep.mubr.f32.mxu1 %v6159_v0 }
 0x1ca   :  { %841 = vmatprep.subr.mxu1 %v4306_v58 }
 0x1cb   :  { %842 = vmatpush1.msra.mxu1 %v4315_v60 }
 0x1cc   :  { %843 = vmatprep.subr.mxu1 %v4324_v62 }
 0x1cd   :  { %844 = vmatpush1.msra.mxu1 %v4333_v1 }
 0x1ce   :  { %845 = vmatprep.subr.mxu1 %v4342_v3 }
 0x1cf   :  { %846 = vmatpush1.msra.mxu1 %v4351_v5 }
 0x1d0   :  { %v3836_v4 = vpop.eup %3835  ;;  %847 = vmatprep.subr.mxu1 %v4360_v7 }
 0x1d1   :  { %v625_v6 = vmul.f32 0.5, %v3836_v4  ;;  %v4648_v4 = vld [vmem:[%s6148_s10] sm:$0xff]  ;;  %848 = vmatpush1.msra.mxu1 %v4369_v9 }
 0x1d2   :  { %v3838_v8 = vpop.eup %3837  ;;  %6224 = vst [vmem:[#allocation18_spill] sm:$0xff] %v4648_v4  ;;  %745 = vmatpush1.msra.mxu0 %v4648_v4  ;;  %849 = vmatprep.subr.mxu1 %v4378_v11 }
 0x1d3   :  { %v626_v12 = vmul.f32 %v3838_v8, %v4439_v52  ;;  %v4449_v14 = vadd.f32 0.5, %v625_v6  ;;  %938 = vmatprep.subr.mxu0 %v4460_v19  ;;  %850 = vmatpush1.msra.mxu1 %v4387_v13 }
 0x1d4   :  { %851 = vmatprep.subr.mxu1 %v4396_v15 }
 0x1d5   :  { %v4452_v16 = vadd.f32 %v626_v12, %v4446_v10  ;;  %852 = vmatpush1.msra.mxu1 %v4405_v17  ;;  %v629_v6 = vmul.f32 0.0, %v4449_v14 }
 0x1d6   :  { %1015 = vmatprep.subr.mxu1 %v4505_v27 }
 0x1d7   :  { %v630_v18 = vmul.f32 %v4452_v16, %v4449_v14 }
 0x1d9   :  { %632 = vrot.lane.b32.xlu0 %v630_v18, %s3981_s9 }
 0x24b   :  { %v633_v8 = vpop.permute.xlu0 %632 }
 0x24c   :  { %v4670_v12 = vadd.f32 %v633_v8, %v629_v6 }
 0x24e   :  { %3839 = vtanh.f32 %v4670_v12 }
 0x25b   :  { %v3840_v18 = vpop.eup %3839 }
 0x25c   :  { %v637_v0 = vmul.f32 %v3840_v18, %v4452_v16  ;;  %v531_v16 = vld [vmem:[%s6149_s12] sm:$0x3] }
 0x25d   :  { %v4717_v8 = vrot.slane %v531_v16, %v4420_v37  ;;  %v4720_v43 = vrot.slane %v531_v16, %v4426_v40 }
 0x25e   :  { %710 = vrot.lane.b32.xlu0 %v637_v0, %s3981_s9  ;;  %v6225_v0 = vmov 0.0  }
 0x2d0   :  { %v711_v36 = vpop.permute.xlu0 %710 }
 0x2d1   :  { %3635 = vmatmul.mubr.msk.f32.vlgmr.msra.gmra.mxu0 %vm399_vm5, %v711_v36  ;;  %3636 = vmatmul.mubr.msk.f32.vlgmr.msra.gmra.mxu1 %vm399_vm5, %v711_v36  ;;  %v4711_v36 = vpop.f32.mrf.mxu1 }
 0x2d2   :  { %939 = vmatpush1.msra.mxu0 %v4465_v20  ;;  %1016 = vmatpush1.msra.mxu1 %v4510_v28  ;;  %6226 = vst [vmem:[#allocation19_spill] sm:$0xff] %v4711_v36 }
 0x2d3   :  { %940 = vmatprep.subr.mxu0 %v4470_v21  ;;  %1017 = vmatprep.subr.mxu1 %v4522_v30  ;;  %v704_v14 = vpop.f32.mrf.mxu1 }
 0x2d4   :  { %941 = vmatpush1.msra.mxu0 %v4476_v22  ;;  %1018 = vmatpush1.msra.mxu1 %v4527_v31 }
 0x2d5   :  { %942 = vmatprep.subr.mxu0 %v4482_v23  ;;  %1019 = vmatprep.subr.mxu1 %v4539_v33  ;;  %v706_v6 = vpop.f32.mrf.mxu1 }
 0x2d6   :  { %943 = vmatpush1.msra.mxu0 %v4488_v24  ;;  %1020 = vmatpush1.msra.mxu1 %v4551_v35 }
 0x2d7   :  { %944 = vmatprep.subr.mxu0 %v4494_v25  ;;  %1021 = vmatprep.subr.mxu1 %v4563_v39 }
 0x2d8   :  { %945 = vmatpush1.msra.mxu0 %v4500_v26  ;;  %1022 = vmatpush1.msra.mxu1 %v4575_v42 }
 0x2d9   :  { %946 = vmatprep.subr.mxu0 %v4516_v29  ;;  %1023 = vmatprep.subr.mxu1 %v4587_v45 }
 0x2da   :  { %947 = vmatpush1.msra.mxu0 %v4533_v32  ;;  %986 = vmatprep.mubr.f32.mxu0 %v6225_v0 }
 0x2db   :  { %948 = vmatprep.subr.mxu0 %v4545_v34  ;;  %1024 = vmatpush1.msra.mxu1 %v4599_v48 }
 0x2dc   :  { %949 = vmatpush1.msra.mxu0 %v4557_v38  ;;  %1025 = vmatprep.subr.mxu1 %v4611_v55 }
 0x2dd   :  { %950 = vmatprep.subr.mxu0 %v4569_v41  ;;  %1026 = vmatpush1.msra.mxu1 %v4620_v57 }
 0x2de   :  { %951 = vmatpush1.msra.mxu0 %v4581_v44  ;;  %1027 = vmatprep.subr.mxu1 %v4627_v59 }
 0x2df   :  { %952 = vmatprep.subr.mxu0 %v4593_v47  ;;  %1028 = vmatpush1.msra.mxu1 %v4634_v61 }
 0x2e0   :  { %953 = vmatpush1.msra.mxu0 %v4605_v51  ;;  %1029 = vmatprep.subr.mxu1 %v4641_v2 }
 0x2e1   :  { %1110 = vmatprep.subr.mxu0 %v4270_v50  ;;  %1030 = vmatpush1.msra.mxu1 %v4648_v4 }
 0x2e2   :  { %1063 = vmatprep.mubr.f32.mxu1 %v6225_v0  ;;  %1211 = vmatprep.subr.mxu1 %v4460_v19 }
 0x391   :  { %v780_v18 = vpop.f32.mrf.mxu0  ;;  %v887_v63 = vpop.f32.mrf.mxu1 }
 0x392   :  { %v781_v4 = vadd.f32 %v780_v18, %v704_v14  ;;  %v894_v2 = vrot.slane %v887_v63, 6 }
 0x393   :  { %v782_v61 = vpop.f32.mrf.mxu0  ;;  %v889_v19 = vpop.f32.mrf.mxu1 }
 0x394   :  { %v796_v36 = vadd.f32 %v4717_v8, %v781_v4  ;;  %v898_v59 = vadd.f32 %v894_v2, %v4432_v46  ;;  %v783_v57 = vadd.f32 %v782_v61, %v706_v6  ;;  %v895_v55 = vrot.slane %v889_v19, 6 }
 0x396   :  { %v798_v48 = vmul.f32 0.5, %v796_v36  ;;  %v900_v45 = vmul.f32 0.5, %v898_v59  ;;  %v797_v37 = vadd.f32 %v4720_v43, %v783_v57  ;;  %v899_v42 = vadd.f32 %v895_v55, %v4436_v49 }
 0x397   :  { %v909_v57 = vrot.slane %v4670_v12, 6 }
 0x398   :  { %3841 = vtanh.f32 %v798_v48  ;;  %v799_v16 = vmul.f32 %v797_v37, %v4439_v52  ;;  %v901_v14 = vmul.f32 %v899_v42, %v4439_v52 }
 0x399   :  { %3843 = vtanh.f32 %v900_v45 }
 0x39a   :  { %3845 = vtanh.f32 %v799_v16 }
 0x39b   :  { %3847 = vtanh.f32 %v901_v14 }
 0x3a5   :  { %v3842_v63 = vpop.eup %3841 }
 0x3a6   :  { %v3844_v4 = vpop.eup %3843  ;;  %v802_v18 = vmul.f32 0.5, %v3842_v63 }
 0x3a7   :  { %v3846_v2 = vpop.eup %3845  ;;  %v904_v61 = vmul.f32 0.5, %v3844_v4 }
 0x3a8   :  { %v3848_v19 = vpop.eup %3847  ;;  %v803_v59 = vmul.f32 %v3846_v2, %v4439_v52  ;;  %v804_v36 = vadd.f32 0.5, %v802_v18 }
 0x3a9   :  { %v905_v55 = vmul.f32 %v3848_v19, %v4439_v52  ;;  %v906_v48 = vadd.f32 0.5, %v904_v61 }
 0x3aa   :  { %v805_v37 = vadd.f32 %v803_v59, %v4446_v10  ;;  %v806_v14 = vmul.f32 0.0, %v804_v36 }
 0x3ab   :  { %v911_v42 = vmul.f32 %v909_v57, %v906_v48  ;;  %v907_v6 = vadd.f32 %v905_v55, %v4446_v10 }
 0x3ac   :  { %v807_v45 = vmul.f32 %v805_v37, %v804_v36  ;;  %v6227_v36 = vld [vmem:[#allocation10_spill] sm:$0xff] }
 0x3ad   :  { %v912_v16 = vmul.f32 %v907_v6, %v906_v48 }
 0x3ae   :  { %809 = vrot.lane.b32.xlu1 %v807_v45, %s3981_s9  ;;  %v6230_v45 = vld [vmem:[#allocation13_spill] sm:$0xff] }
 0x3b2   :  { %914 = vrot.lane.b32.xlu1 %v912_v16, %s3981_s9  ;;  %v6232_v16 = vld [vmem:[#allocation15_spill] sm:$0xff] }
 0x420   :  { %v810_v63 = vpop.permute.xlu1 %809 }
 0x421   :  { %v4735_v4 = vadd.f32 %v810_v63, %v806_v14  ;;  %v6233_v14 = vld [vmem:[#allocation16_spill] sm:$0xff]  ;;  %v6234_v63 = vld [vmem:[#allocation17_spill] sm:$0xff] }
 0x423   :  { %3849 = vtanh.f32 %v4735_v4 }
 0x424   :  { %v915_v12 = vpop.permute.xlu1 %914 }
 0x425   :  { %v4738_v2 = vadd.f32 %v915_v12, %v911_v42  ;;  %v6229_v42 = vld [vmem:[#allocation12_spill] sm:$0xff]  ;;  %v6235_v12 = vld [vmem:[#allocation18_spill] sm:$0xff] }
 0x427   :  { %3851 = vtanh.f32 %v4738_v2 }
 0x430   :  { %v3850_v18 = vpop.eup %3849 }
 0x431   :  { %v814_v61 = vmul.f32 %v3850_v18, %v805_v37  ;;  %v6228_v37 = vld [vmem:[#allocation11_spill] sm:$0xff]  ;;  %v6236_v18 = vld [vmem:[#allocation9_spill] sm:$0xff] }
 0x433   :  { %816 = vrot.lane.b32.xlu0 %v814_v61, %s3981_s9 }
 0x434   :  { %v3852_v19 = vpop.eup %3851 }
 0x435   :  { %v919_v59 = vmul.f32 %v3852_v19, %v907_v6  ;;  %v6231_v6 = vld [vmem:[#allocation14_spill] sm:$0xff] }
 0x437   :  { %v994_v57 = vrot.slane %v919_v59, 2 }
 0x439   :  { %995 = vrot.lane.b32.xlu1 %v994_v57, %s3981_s9 }
 0x4a5   :  { %v817_v55 = vpop.permute.xlu0 %816 }
 0x4a6   :  { %820 = vst.msk [vmem:[#allocation2] sm:$0x3] %vm819_vm7, %v817_v55  ;;  %3637 = vmatmul.mubr.msk.f32.vlgmr.msra.gmra.mxu0 %vm399_vm5, %v817_v55 }
 0x4a7   :  { %1111 = vmatpush1.msra.mxu0 %v4282_v53  ;;  %1158 = vmatprep.mubr.f32.mxu0 %v6225_v0 }
 0x4a8   :  { %1112 = vmatprep.subr.mxu0 %v4288_v54 }
 0x4a9   :  { %1113 = vmatpush1.msra.mxu0 %v4297_v56 }
 0x4aa   :  { %1114 = vmatprep.subr.mxu0 %v4306_v58 }
 0x4ab   :  { %1115 = vmatpush1.msra.mxu0 %v4315_v60  ;;  %v996_v48 = vpop.permute.xlu1 %995 }
 0x4ac   :  { %1116 = vmatprep.subr.mxu0 %v4324_v62  ;;  %3638 = vmatmul.mubr.msk.f32.vlgmr.msra.gmra.mxu1 %vm399_vm5, %v996_v48 }
 0x4ad   :  { %1117 = vmatpush1.msra.mxu0 %v4333_v1  ;;  %1212 = vmatpush1.msra.mxu1 %v4465_v20 }
 0x4ae   :  { %1118 = vmatprep.subr.mxu0 %v4342_v3  ;;  %1213 = vmatprep.subr.mxu1 %v4470_v21 }
 0x4af   :  { %1119 = vmatpush1.msra.mxu0 %v4351_v5  ;;  %1214 = vmatpush1.msra.mxu1 %v4476_v22 }
 0x4b0   :  { %1120 = vmatprep.subr.mxu0 %v4360_v7  ;;  %1215 = vmatprep.subr.mxu1 %v4482_v23 }
 0x4b1   :  { %1121 = vmatpush1.msra.mxu0 %v4369_v9  ;;  %1216 = vmatpush1.msra.mxu1 %v4488_v24 }
 0x4b2   :  { %1122 = vmatprep.subr.mxu0 %v4378_v11  ;;  %1217 = vmatprep.subr.mxu1 %v4494_v25 }
 0x4b3   :  { %1123 = vmatpush1.msra.mxu0 %v4387_v13  ;;  %1218 = vmatpush1.msra.mxu1 %v4500_v26 }
 0x4b4   :  { %1124 = vmatprep.subr.mxu0 %v4396_v15  ;;  %1219 = vmatprep.subr.mxu1 %v4516_v29 }
 0x4b5   :  { %1125 = vmatpush1.msra.mxu0 %v4405_v17  ;;  %1220 = vmatpush1.msra.mxu1 %v4533_v32 }
 0x4b6   :  { %3639 = vmatmul.mubr.msk.f32.vlgmr.msra.gmra.mxu0 %vm399_vm5, %v996_v48  ;;  %1221 = vmatprep.subr.mxu1 %v4545_v34 }
 0x4b7   :  { %1222 = vmatpush1.msra.mxu1 %v4557_v38  ;;  %1288 = vmatprep.subr.mxu0 %v4505_v27 }
 0x4b8   :  { %1223 = vmatprep.subr.mxu1 %v4569_v41  ;;  %1289 = vmatpush1.msra.mxu0 %v4510_v28 }
 0x4b9   :  { %1224 = vmatpush1.msra.mxu1 %v4581_v44  ;;  %1290 = vmatprep.subr.mxu0 %v4522_v30 }
 0x4ba   :  { %1225 = vmatprep.subr.mxu1 %v4593_v47  ;;  %1291 = vmatpush1.msra.mxu0 %v4527_v31 }
 0x4bb   :  { %1226 = vmatpush1.msra.mxu1 %v4605_v51  ;;  %1259 = vmatprep.mubr.f32.mxu1 %v6225_v0 }
 0x4bc   :  { %1292 = vmatprep.subr.mxu0 %v4539_v33  ;;  %1383 = vmatprep.subr.mxu1 %v4270_v50 }
 0x4bd   :  { %1293 = vmatpush1.msra.mxu0 %v4551_v35  ;;  %1336 = vmatprep.mubr.f32.mxu0 %v6225_v0 }
 0x4be   :  { %1294 = vmatprep.subr.mxu0 %v4563_v39 }
 0x4bf   :  { %1295 = vmatpush1.msra.mxu0 %v6227_v36 }
 0x4c0   :  { %1296 = vmatprep.subr.mxu0 %v6228_v37 }
 0x4c1   :  { %1297 = vmatpush1.msra.mxu0 %v6229_v42 }
 0x4c2   :  { %1298 = vmatprep.subr.mxu0 %v6230_v45 }
 0x4c3   :  { %1299 = vmatpush1.msra.mxu0 %v6231_v6 }
 0x4c4   :  { %1300 = vmatprep.subr.mxu0 %v6232_v16 }
 0x4c5   :  { %1301 = vmatpush1.msra.mxu0 %v6233_v14 }
 0x4c6   :  { %1302 = vmatprep.subr.mxu0 %v6234_v63 }
 0x4c7   :  { %1303 = vmatpush1.msra.mxu0 %v6235_v12 }
 0x4c8   :  { %1484 = vmatprep.subr.mxu0 %v6236_v18 }
 0x566   :  { %v988_v61 = vpop.f32.mrf.mxu0 }
 0x568   :  { %v990_v57 = vpop.f32.mrf.mxu0 }
 0x56c   :  { %v1065_v19 = vpop.f32.mrf.mxu1 }
 0x56d   :  { %v1066_v59 = vadd.f32 %v1065_v19, %v988_v61 }
 0x56e   :  { %v1067_v55 = vpop.f32.mrf.mxu1 }
 0x56f   :  { %v1070_v48 = vadd.f32 %v1066_v59, %v4717_v8  ;;  %v1068_v40 = vadd.f32 %v1067_v55, %v990_v57 }
 0x571   :  { %v1072_v45 = vmul.f32 0.5, %v1070_v48  ;;  %v1071_v6 = vadd.f32 %v1068_v40, %v4720_v43 }
 0x573   :  { %3853 = vtanh.f32 %v1072_v45  ;;  %v1073_v14 = vmul.f32 %v1071_v6, %v4439_v52 }
 0x575   :  { %3855 = vtanh.f32 %v1073_v14 }
 0x576   :  { %v1160_v63 = vpop.f32.mrf.mxu0 }
 0x577   :  { %v1167_v16 = vrot.slane %v1160_v63, 4 }
 0x578   :  { %v1162_v12 = vpop.f32.mrf.mxu0 }
 0x579   :  { %v1171_v18 = vadd.f32 %v1167_v16, %v4432_v46  ;;  %v1168_v50 = vrot.slane %v1162_v12, 4 }
 0x57b   :  { %v1173_v42 = vmul.f32 0.5, %v1171_v18  ;;  %v1172_v61 = vadd.f32 %v1168_v50, %v4436_v49  ;;  %v1182_v50 = vrot.slane %v4738_v2, 6 }
 0x57d   :  { %3857 = vtanh.f32 %v1173_v42  ;;  %v1174_v19 = vmul.f32 %v1172_v61, %v4439_v52 }
 0x57f   :  { %3859 = vtanh.f32 %v1174_v19 }
 0x580   :  { %v3854_v59 = vpop.eup %3853 }
 0x581   :  { %v1076_v57 = vmul.f32 0.5, %v3854_v59 }
 0x582   :  { %v3856_v40 = vpop.eup %3855 }
 0x583   :  { %v1077_v45 = vmul.f32 %v3856_v40, %v4439_v52  ;;  %v1078_v6 = vadd.f32 0.5, %v1076_v57 }
 0x585   :  { %v1079_v14 = vadd.f32 %v1077_v45, %v4446_v10  ;;  %v1080_v59 = vmul.f32 %v1078_v6, %v4735_v4 }
 0x587   :  { %v1081_v63 = vmul.f32 %v1079_v14, %v1078_v6 }
 0x589   :  { %1083 = vrot.lane.b32.xlu0 %v1081_v63, %s3981_s9 }
 0x58a   :  { %v3858_v16 = vpop.eup %3857 }
 0x58b   :  { %v1177_v12 = vmul.f32 0.5, %v3858_v16 }
 0x58c   :  { %v3860_v18 = vpop.eup %3859 }
 0x58d   :  { %v1178_v42 = vmul.f32 %v3860_v18, %v4439_v52  ;;  %v1179_v55 = vadd.f32 0.5, %v1177_v12 }
 0x58f   :  { %v1180_v48 = vadd.f32 %v1178_v42, %v4446_v10  ;;  %v1184_v61 = vmul.f32 %v1182_v50, %v1179_v55 }
 0x591   :  { %v1185_v19 = vmul.f32 %v1180_v48, %v1179_v55 }
 0x593   :  { %1187 = vrot.lane.b32.xlu1 %v1185_v19, %s3981_s9 }
 0x5fb   :  { %v1084_v57 = vpop.permute.xlu0 %1083 }
 0x5fc   :  { %v4812_v40 = vadd.f32 %v1084_v57, %v1080_v59 }
 0x5fe   :  { %3861 = vtanh.f32 %v4812_v40 }
 0x605   :  { %v1188_v45 = vpop.permute.xlu1 %1187 }
 0x606   :  { %v4815_v63 = vadd.f32 %v1188_v45, %v1184_v61 }
 0x608   :  { %3863 = vtanh.f32 %v4815_v63 }
 0x60b   :  { %v3862_v2 = vpop.eup %3861 }
 0x60c   :  { %v1088_v16 = vmul.f32 %v3862_v2, %v1079_v14 }
 0x60e   :  { %1090 = vrot.lane.b32.xlu0 %v1088_v16, %s3981_s9 }
 0x615   :  { %v3864_v12 = vpop.eup %3863 }
 0x616   :  { %v1192_v18 = vmul.f32 %v3864_v12, %v1180_v48 }
 0x618   :  { %v1267_v50 = vrot.slane %v1192_v18, 4 }
 0x61a   :  { %1268 = vrot.lane.b32.xlu1 %v1267_v50, %s3981_s9 }
 0x680   :  { %v1091_v4 = vpop.permute.xlu0 %1090 }
 0x681   :  { %1093 = vst.msk [vmem:[#allocation2 + $0x2] sm:$0x3] %vm819_vm7, %v1091_v4  ;;  %3640 = vmatmul.mubr.msk.f32.vlgmr.msra.gmra.mxu1 %vm399_vm5, %v1091_v4 }
 0x682   :  { %1384 = vmatpush1.msra.mxu1 %v4282_v53  ;;  %1431 = vmatprep.mubr.f32.mxu1 %v6225_v0 }
 0x683   :  { %1385 = vmatprep.subr.mxu1 %v4288_v54  ;;  %v6237_v54 = vld [vmem:[#allocation12_spill] sm:$0xff] }
 0x684   :  { %1386 = vmatpush1.msra.mxu1 %v4297_v56  ;;  %v6238_v56 = vld [vmem:[#allocation3_spill] sm:$0xff] }
 0x685   :  { %1387 = vmatprep.subr.mxu1 %v4306_v58  ;;  %v6239_v58 = vld [vmem:[#allocation13_spill] sm:$0xff] }
 0x686   :  { %1388 = vmatpush1.msra.mxu1 %v4315_v60  ;;  %v6240_v60 = vld [vmem:[#allocation14_spill] sm:$0xff] }
 0x687   :  { %1389 = vmatprep.subr.mxu1 %v4324_v62  ;;  %v6241_v62 = vld [vmem:[#allocation15_spill] sm:$0xff] }
 0x688   :  { %1390 = vmatpush1.msra.mxu1 %v4333_v1  ;;  %v6242_v1 = vld [vmem:[#allocation16_spill] sm:$0xff] }
 0x689   :  { %1391 = vmatprep.subr.mxu1 %v4342_v3  ;;  %v6243_v3 = vld [vmem:[#allocation17_spill] sm:$0xff] }
 0x68a   :  { %1392 = vmatpush1.msra.mxu1 %v4351_v5  ;;  %v6244_v5 = vld [vmem:[#allocation18_spill] sm:$0xff] }
 0x68b   :  { %1393 = vmatprep.subr.mxu1 %v4360_v7  ;;  %v6245_v7 = vld [vmem:[#allocation9_spill] sm:$0xff] }
 0x68c   :  { %v1269_v53 = vpop.permute.xlu1 %1268  ;;  %1394 = vmatpush1.msra.mxu1 %v4369_v9 }
 0x68d   :  { %3641 = vmatmul.mubr.msk.f32.vlgmr.msra.gmra.mxu0 %vm399_vm5, %v1269_v53  ;;  %1395 = vmatprep.subr.mxu1 %v4378_v11 }
 0x68e   :  { %1396 = vmatpush1.msra.mxu1 %v4387_v13  ;;  %1485 = vmatpush1.msra.mxu0 %v4465_v20 }
 0x68f   :  { %1397 = vmatprep.subr.mxu1 %v4396_v15  ;;  %1486 = vmatprep.subr.mxu0 %v4470_v21 }
 0x690   :  { %1398 = vmatpush1.msra.mxu1 %v4405_v17  ;;  %1487 = vmatpush1.msra.mxu0 %v4476_v22 }
 0x691   :  { %3642 = vmatmul.mubr.msk.f32.vlgmr.msra.gmra.mxu1 %vm399_vm5, %v1269_v53  ;;  %1488 = vmatprep.subr.mxu0 %v4482_v23 }
 0x692   :  { %1489 = vmatpush1.msra.mxu0 %v4488_v24  ;;  %1561 = vmatprep.subr.mxu1 %v4505_v27 }
 0x693   :  { %1490 = vmatprep.subr.mxu0 %v4494_v25  ;;  %1562 = vmatpush1.msra.mxu1 %v4510_v28 }
 0x694   :  { %1491 = vmatpush1.msra.mxu0 %v4500_v26  ;;  %1563 = vmatprep.subr.mxu1 %v4522_v30 }
 0x695   :  { %1492 = vmatprep.subr.mxu0 %v4516_v29  ;;  %1564 = vmatpush1.msra.mxu1 %v4527_v31 }
 0x696   :  { %1493 = vmatpush1.msra.mxu0 %v4533_v32  ;;  %1565 = vmatprep.subr.mxu1 %v4539_v33 }
 0x697   :  { %1494 = vmatprep.subr.mxu0 %v4545_v34  ;;  %1566 = vmatpush1.msra.mxu1 %v4551_v35 }
 0x698   :  { %1495 = vmatpush1.msra.mxu0 %v4557_v38  ;;  %1567 = vmatprep.subr.mxu1 %v4563_v39 }
 0x699   :  { %1496 = vmatprep.subr.mxu0 %v4569_v41  ;;  %1568 = vmatpush1.msra.mxu1 %v6227_v36 }
 0x69a   :  { %1497 = vmatpush1.msra.mxu0 %v4581_v44  ;;  %1569 = vmatprep.subr.mxu1 %v6228_v37 }
 0x69b   :  { %1498 = vmatprep.subr.mxu0 %v4593_v47  ;;  %1532 = vmatprep.mubr.f32.mxu0 %v6225_v0 }
 0x69c   :  { %1499 = vmatpush1.msra.mxu0 %v4605_v51  ;;  %1570 = vmatpush1.msra.mxu1 %v6237_v54 }
 0x69d   :  { %1656 = vmatprep.subr.mxu0 %v6238_v56  ;;  %1571 = vmatprep.subr.mxu1 %v6239_v58 }
 0x69e   :  { %1572 = vmatpush1.msra.mxu1 %v6240_v60  ;;  %1609 = vmatprep.mubr.f32.mxu1 %v6225_v0 }
 0x69f   :  { %1573 = vmatprep.subr.mxu1 %v6241_v62 }
 0x6a0   :  { %1574 = vmatpush1.msra.mxu1 %v6242_v1 }
 0x6a1   :  { %1575 = vmatprep.subr.mxu1 %v6243_v3 }
 0x6a2   :  { %1576 = vmatpush1.msra.mxu1 %v6244_v5 }
 0x6a3   :  { %1751 = vmatprep.subr.mxu1 %v6245_v7 }
 0x741   :  { %v1261_v9 = vpop.f32.mrf.mxu1 }
 0x743   :  { %v1263_v42 = vpop.f32.mrf.mxu1 }
 0x74d   :  { %v1338_v6 = vpop.f32.mrf.mxu0 }
 0x74e   :  { %v1339_v14 = vadd.f32 %v1338_v6, %v1261_v9 }
 0x74f   :  { %v1340_v55 = vpop.f32.mrf.mxu0 }
 0x750   :  { %v1343_v48 = vadd.f32 %v1339_v14, %v4717_v8  ;;  %v1341_v61 = vadd.f32 %v1340_v55, %v1263_v42 }
 0x751   :  { %v1433_v19 = vpop.f32.mrf.mxu1 }
 0x752   :  { %v1345_v59 = vmul.f32 0.5, %v1343_v48  ;;  %v1344_v57 = vadd.f32 %v1341_v61, %v4720_v43  ;;  %v1440_v45 = vrot.slane %v1433_v19, 2  ;;  %v1455_v19 = vrot.slane %v4815_v63, 6 }
 0x753   :  { %v1435_v2 = vpop.f32.mrf.mxu1 }
 0x754   :  { %3865 = vtanh.f32 %v1345_v59  ;;  %v1346_v16 = vmul.f32 %v1344_v57, %v4439_v52  ;;  %v1444_v12 = vadd.f32 %v1440_v45, %v4432_v46  ;;  %v1441_v18 = vrot.slane %v1435_v2, 2 }
 0x756   :  { %3867 = vtanh.f32 %v1346_v16  ;;  %v1446_v50 = vmul.f32 0.5, %v1444_v12  ;;  %v1445_v4 = vadd.f32 %v1441_v18, %v4436_v49 }
 0x758   :  { %3869 = vtanh.f32 %v1446_v50  ;;  %v1447_v53 = vmul.f32 %v1445_v4, %v4439_v52 }
 0x75a   :  { %3871 = vtanh.f32 %v1447_v53 }
 0x761   :  { %v3866_v56 = vpop.eup %3865 }
 0x762   :  { %v1349_v9 = vmul.f32 0.5, %v3866_v56 }
 0x763   :  { %v3868_v6 = vpop.eup %3867 }
 0x764   :  { %v1350_v14 = vmul.f32 %v3868_v6, %v4439_v52  ;;  %v1351_v55 = vadd.f32 0.5, %v1349_v9 }
 0x765   :  { %v3870_v42 = vpop.eup %3869 }
 0x766   :  { %v1352_v48 = vadd.f32 %v1350_v14, %v4446_v10  ;;  %v1450_v61 = vmul.f32 0.5, %v3870_v42  ;;  %v1353_v12 = vmul.f32 %v1351_v55, %v4812_v40  ;;  %v4902_v42 = vld [vmem:[%s6144_s8 + $0x70] sm:$0xff] }
 0x767   :  { %v3872_v46 = vpop.eup %3871 }
 0x768   :  { %v1354_v59 = vmul.f32 %v1352_v48, %v1351_v55  ;;  %v1451_v49 = vmul.f32 %v3872_v46, %v4439_v52  ;;  %v1452_v57 = vadd.f32 0.5, %v1450_v61  ;;  %v4909_v55 = vld [vmem:[%s6144_s8 + $0x68] sm:$0xff]  ;;  %v4921_v61 = vld [vmem:[%s6144_s8 + $0x58] sm:$0xff]  ;;  %v4927_v46 = vld [vmem:[%s6144_s8 + $0x50] sm:$0xff] }
 0x76a   :  { %1356 = vrot.lane.b32.xlu1 %v1354_v59, %s3981_s9  ;;  %v1453_v45 = vadd.f32 %v1451_v49, %v4446_v10  ;;  %v1457_v2 = vmul.f32 %v1455_v19, %v1452_v57  ;;  %v4933_v59 = vld [vmem:[%s6144_s8 + $0x48] sm:$0xff]  ;;  %v4940_v49 = vld [vmem:[%s6144_s8 + $0x40] sm:$0xff] }
 0x76c   :  { %v1458_v16 = vmul.f32 %v1453_v45, %v1452_v57  ;;  %v4947_v57 = vld [vmem:[%s6144_s8 + $0x38] sm:$0xff] }
 0x76e   :  { %1460 = vrot.lane.b32.xlu0 %v1458_v16, %s3981_s9 }
 0x7dc   :  { %v1357_v18 = vpop.permute.xlu1 %1356 }
 0x7dd   :  { %v4889_v50 = vadd.f32 %v1357_v18, %v1353_v12 }
 0x7df   :  { %3873 = vtanh.f32 %v4889_v50 }
 0x7e0   :  { %v1461_v63 = vpop.permute.xlu0 %1460 }
 0x7e1   :  { %v4892_v4 = vadd.f32 %v1461_v63, %v1457_v2 }
 0x7e3   :  { %3875 = vtanh.f32 %v4892_v4 }
 0x7ec   :  { %v3874_v53 = vpop.eup %3873 }
 0x7ed   :  { %v1361_v56 = vmul.f32 %v3874_v53, %v1352_v48  ;;  %v4915_v48 = vld [vmem:[%s6144_s8 + $0x60] sm:$0xff] }
 0x7ef   :  { %1363 = vrot.lane.b32.xlu0 %v1361_v56, %s3981_s9 }
 0x7f0   :  { %v3876_v9 = vpop.eup %3875 }
 0x7f1   :  { %v1465_v6 = vmul.f32 %v3876_v9, %v1453_v45  ;;  %v4954_v45 = vld [vmem:[%s6144_s8 + $0x30] sm:$0xff] }
 0x7f3   :  { %v1540_v14 = vrot.slane %v1465_v6, 6 }
 0x7f5   :  { %1541 = vrot.lane.b32.xlu1 %v1540_v14, %s3981_s9 }
 0x861   :  { %v1364_v40 = vpop.permute.xlu0 %1363 }
 0x862   :  { %1366 = vst.msk [vmem:[#allocation2 + $0x4] sm:$0x3] %vm819_vm7, %v1364_v40  ;;  %3643 = vmatmul.mubr.msk.f32.vlgmr.msra.gmra.mxu0 %vm399_vm5, %v1364_v40 }
 0x863   :  { %1657 = vmatpush1.msra.mxu0 %v4902_v42  ;;  %1704 = vmatprep.mubr.f32.mxu0 %v6225_v0 }
 0x864   :  { %1658 = vmatprep.subr.mxu0 %v4909_v55 }
 0x865   :  { %1659 = vmatpush1.msra.mxu0 %v4915_v48 }
 0x866   :  { %1660 = vmatprep.subr.mxu0 %v4921_v61 }
 0x867   :  { %1661 = vmatpush1.msra.mxu0 %v4927_v46  ;;  %v1542_v19 = vpop.permute.xlu1 %1541 }
 0x868   :  { %1662 = vmatprep.subr.mxu0 %v4933_v59  ;;  %3644 = vmatmul.mubr.msk.f32.vlgmr.msra.gmra.mxu1 %vm399_vm5, %v1542_v19 }
 0x869   :  { %1663 = vmatpush1.msra.mxu0 %v4940_v49  ;;  %1752 = vmatpush1.msra.mxu1 %v4465_v20  ;;  %v4961_v20 = vld [vmem:[%s6144_s8 + $0x28] sm:$0xff] }
 0x86a   :  { %1664 = vmatprep.subr.mxu0 %v4947_v57  ;;  %1753 = vmatprep.subr.mxu1 %v4470_v21  ;;  %v4968_v21 = vld [vmem:[%s6144_s8 + $0x20] sm:$0xff] }
 0x86b   :  { %1665 = vmatpush1.msra.mxu0 %v4954_v45  ;;  %1754 = vmatpush1.msra.mxu1 %v4476_v22 }
 0x86c   :  { %1666 = vmatprep.subr.mxu0 %v4961_v20  ;;  %1755 = vmatprep.subr.mxu1 %v4482_v23 }
 0x86d   :  { %1667 = vmatpush1.msra.mxu0 %v4968_v21  ;;  %1756 = vmatpush1.msra.mxu1 %v4488_v24 }
 0x86e   :  { %1668 = vmatprep.subr.mxu0 %v4378_v11  ;;  %1757 = vmatprep.subr.mxu1 %v4494_v25  ;;  %v5000_v11 = vld [vmem:[%s6144_s8 + $0x78] sm:$0xff] }
 0x86f   :  { %1669 = vmatpush1.msra.mxu0 %v4387_v13  ;;  %1758 = vmatpush1.msra.mxu1 %v4500_v26  ;;  %6246 = vst [vmem:[#allocation10_spill] sm:$0xff] %v5000_v11 }
 0x870   :  { %1670 = vmatprep.subr.mxu0 %v4396_v15  ;;  %1759 = vmatprep.subr.mxu1 %v4516_v29 }
 0x871   :  { %1671 = vmatpush1.msra.mxu0 %v4405_v17  ;;  %1760 = vmatpush1.msra.mxu1 %v4533_v32 }
 0x872   :  { %3645 = vmatmul.mubr.msk.f32.vlgmr.msra.gmra.mxu0 %vm399_vm5, %v1542_v19  ;;  %1827 = vmatprep.subr.mxu0 %v4505_v27 }
 0x873   :  { %1828 = vmatpush1.msra.mxu0 %v4510_v28  ;;  %1761 = vmatprep.subr.mxu1 %v4545_v34 }
 0x874   :  { %1829 = vmatprep.subr.mxu0 %v4522_v30  ;;  %1762 = vmatpush1.msra.mxu1 %v4557_v38  ;;  %v6247_v30 = vld [vmem:[#allocation7_spill] sm:$0xff] }
 0x875   :  { %1830 = vmatpush1.msra.mxu0 %v4527_v31  ;;  %1763 = vmatprep.subr.mxu1 %v4569_v41  ;;  %v6248_v31 = vld [vmem:[#allocation19_spill] sm:$0xff] }
 0x876   :  { %1831 = vmatprep.subr.mxu0 %v4539_v33  ;;  %1764 = vmatpush1.msra.mxu1 %v4581_v44  ;;  %v5017_v32 = vadd.f32 %v6248_v31, %v6247_v30  ;;  %v6249_v33 = vld [vmem:[#allocation8_spill] sm:$0xff]  ;;  %v5116_v30 = vld [vmem:[%s6147_s11 + $0x40] sm:$0xff] }
 0x877   :  { %1832 = vmatpush1.msra.mxu0 %v4551_v35  ;;  %1765 = vmatprep.subr.mxu1 %v4593_v47  ;;  %v5123_v31 = vld [vmem:[%s6147_s11 + $0x38] sm:$0xff] }
 0x878   :  { %1833 = vmatprep.subr.mxu0 %v4563_v39  ;;  %1766 = vmatpush1.msra.mxu1 %v4605_v51 }
 0x879   :  { %1834 = vmatpush1.msra.mxu0 %v6227_v36  ;;  %1799 = vmatprep.mubr.f32.mxu1 %v6225_v0 }
 0x87a   :  { %1835 = vmatprep.subr.mxu0 %v6228_v37  ;;  %1922 = vmatprep.subr.mxu1 %v5000_v11 }
 0x87b   :  { %1836 = vmatpush1.msra.mxu0 %v6237_v54  ;;  %1875 = vmatprep.mubr.f32.mxu0 %v6225_v0 }
 0x87c   :  { %1837 = vmatprep.subr.mxu0 %v6239_v58 }
 0x87d   :  { %1838 = vmatpush1.msra.mxu0 %v6240_v60 }
 0x87e   :  { %1839 = vmatprep.subr.mxu0 %v6241_v62 }
 0x87f   :  { %1840 = vmatpush1.msra.mxu0 %v6242_v1 }
 0x880   :  { %1841 = vmatprep.subr.mxu0 %v6243_v3  ;;  %v1722_v3 = vrot.slane %v4892_v4, 6 }
 0x881   :  { %1842 = vmatpush1.msra.mxu0 %v6244_v5 }
 0x882   :  { %2023 = vmatprep.subr.mxu0 %v6245_v7 }
 0x922   :  { %v1534_v13 = vpop.f32.mrf.mxu0 }
 0x924   :  { %v1536_v22 = vpop.f32.mrf.mxu0 }
 0x928   :  { %v1611_v15 = vpop.f32.mrf.mxu1 }
 0x929   :  { %v1612_v17 = vadd.f32 %v1611_v15, %v1534_v13  ;;  %v5054_v15 = vld [vmem:[%s6147_s11 + $0x70] sm:$0xff] }
 0x92a   :  { %v1613_v23 = vpop.f32.mrf.mxu1 }
 0x92b   :  { %v1616_v24 = vadd.f32 %v1612_v17, %v4717_v8  ;;  %v1614_v25 = vadd.f32 %v1613_v23, %v1536_v22  ;;  %v5061_v17 = vld [vmem:[%s6147_s11 + $0x68] sm:$0xff]  ;;  %v5068_v22 = vld [vmem:[%s6147_s11 + $0x60] sm:$0xff]  ;;  %v5074_v23 = vld [vmem:[%s6144_s8 + $0x18] sm:$0xff] }
 0x92d   :  { %v1618_v26 = vmul.f32 0.5, %v1616_v24  ;;  %v1617_v27 = vadd.f32 %v1614_v25, %v4720_v43  ;;  %v5080_v24 = vld [vmem:[%s6147_s11 + $0x58] sm:$0xff]  ;;  %v5086_v25 = vld [vmem:[%s6144_s8 + $0x10] sm:$0xff] }
 0x92f   :  { %3877 = vtanh.f32 %v1618_v26  ;;  %v1619_v28 = vmul.f32 %v1617_v27, %v4439_v52  ;;  %v5092_v26 = vld [vmem:[%s6147_s11 + $0x50] sm:$0xff]  ;;  %v5098_v27 = vld [vmem:[%s6144_s8 + $0x8] sm:$0xff] }
 0x931   :  { %3879 = vtanh.f32 %v1619_v28  ;;  %v5104_v28 = vld [vmem:[%s6147_s11 + $0x48] sm:$0xff] }
 0x932   :  { %v1706_v29 = vpop.f32.mrf.mxu0 }
 0x933   :  { %v1711_v34 = vadd.f32 %v1706_v29, %v6249_v33  ;;  %v5110_v29 = vld [vmem:[%s6144_s8] sm:$0xff] }
 0x934   :  { %v1708_v35 = vpop.f32.mrf.mxu0 }
 0x935   :  { %v1713_v38 = vmul.f32 0.5, %v1711_v34  ;;  %v1712_v39 = vadd.f32 %v1708_v35, %v5017_v32  ;;  %v5129_v34 = vld [vmem:[%s6147_s11 + $0x30] sm:$0xff]  ;;  %v5135_v35 = vld [vmem:[%s6148_s10 + $0x78] sm:$0xff] }
 0x937   :  { %3881 = vtanh.f32 %v1713_v38  ;;  %v1714_v41 = vmul.f32 %v1712_v39, %v4439_v52  ;;  %v5141_v38 = vld [vmem:[%s6147_s11 + $0x28] sm:$0xff]  ;;  %v5147_v39 = vld [vmem:[%s6148_s10 + $0x70] sm:$0xff] }
 0x939   :  { %3883 = vtanh.f32 %v1714_v41  ;;  %v5153_v41 = vld [vmem:[%s6147_s11 + $0x20] sm:$0xff] }
 0x93c   :  { %v3878_v44 = vpop.eup %3877 }
 0x93d   :  { %v1622_v47 = vmul.f32 0.5, %v3878_v44  ;;  %v5159_v44 = vld [vmem:[%s6148_s10 + $0x68] sm:$0xff] }
 0x93e   :  { %v3880_v51 = vpop.eup %3879 }
 0x93f   :  { %v1623_v36 = vmul.f32 %v3880_v51, %v4439_v52  ;;  %v1624_v37 = vadd.f32 0.5, %v1622_v47  ;;  %v5165_v47 = vld [vmem:[%s6147_s11 + $0x18] sm:$0xff]  ;;  %v5171_v51 = vld [vmem:[%s6148_s10 + $0x60] sm:$0xff] }
 0x941   :  { %v1625_v54 = vadd.f32 %v1623_v36, %v4446_v10  ;;  %v1626_v63 = vmul.f32 %v1624_v37, %v4889_v50  ;;  %v5177_v36 = vld [vmem:[%s6147_s11 + $0x10] sm:$0xff] }
 0x943   :  { %v1627_v58 = vmul.f32 %v1625_v54, %v1624_v37  ;;  %v5183_v37 = vld [vmem:[%s6148_s10 + $0x58] sm:$0xff] }
 0x944   :  { %v3882_v60 = vpop.eup %3881 }
 0x945   :  { %v1717_v62 = vmul.f32 0.5, %v3882_v60  ;;  %1629 = vrot.lane.b32.xlu0 %v1627_v58, %s3981_s9  ;;  %v5196_v58 = vld [vmem:[%s6147_s11] sm:$0xff]  ;;  %v5202_v60 = vld [vmem:[%s6148_s10 + $0x50] sm:$0xff] }
 0x946   :  { %v3884_v1 = vpop.eup %3883 }
 0x947   :  { %v1719_v7 = vadd.f32 0.5, %v1717_v62  ;;  %v1718_v2 = vmul.f32 %v3884_v1, %v4439_v52  ;;  %v5209_v62 = vld [vmem:[%s6148_s10 + $0x48] sm:$0xff]  ;;  %v5215_v1 = vld [vmem:[%s6148_s10 + $0x40] sm:$0xff] }
 0x949   :  { %v1720_v16 = vadd.f32 %v1718_v2, %v4446_v10  ;;  %v1724_v12 = vmul.f32 %v1722_v3, %v1719_v7  ;;  %v5222_v3 = vld [vmem:[%s6148_s10 + $0x38] sm:$0xff]  ;;  %v5234_v2 = vld [vmem:[%s6148_s10 + $0x28] sm:$0xff] }
 0x94a   :  { %6251 = vst [vmem:[#allocation12_spill] sm:$0xff] %v5234_v2 }
 0x94b   :  { %v1725_v18 = vmul.f32 %v1720_v16, %v1719_v7  ;;  %v5228_v7 = vld [vmem:[%s6148_s10 + $0x30] sm:$0xff] }
 0x94c   :  { %6250 = vst [vmem:[#allocation11_spill] sm:$0xff] %v5228_v7 }
 0x94d   :  { %1727 = vrot.lane.b32.xlu1 %v1725_v18, %s3981_s9  ;;  %v5252_v18 = vld [vmem:[%s6148_s10 + $0x10] sm:$0xff] }
 0x94e   :  { %6254 = vst [vmem:[#allocation14_spill] sm:$0xff] %v5252_v18 }
 0x9b7   :  { %v1630_v53 = vpop.permute.xlu0 %1629 }
 0x9b8   :  { %v5030_v56 = vadd.f32 %v1630_v53, %v1626_v63  ;;  %v5258_v63 = vld [vmem:[%s6148_s10 + $0x8] sm:$0xff]  ;;  %v5265_v53 = vld [vmem:[%s6147_s11 + $0x78] sm:$0xff] }
 0x9b9   :  { %6255 = vst [vmem:[#allocation15_spill] sm:$0xff] %v5258_v63  ;;  %6256 = vst [vmem:[#allocation16_spill] sm:$0xff] %v5265_v53 }
 0x9ba   :  { %3885 = vtanh.f32 %v5030_v56 }
 0x9bf   :  { %v1728_v9 = vpop.permute.xlu1 %1727 }
 0x9c0   :  { %v5033_v6 = vadd.f32 %v1728_v9, %v1724_v12  ;;  %v5246_v12 = vld [vmem:[%s6148_s10 + $0x18] sm:$0xff] }
 0x9c1   :  { %6253 = vst [vmem:[#allocation13_spill] sm:$0xff] %v5246_v12 }
 0x9c2   :  { %3887 = vtanh.f32 %v5033_v6 }
 0x9c7   :  { %v3886_v4 = vpop.eup %3885 }
 0x9c8   :  { %v1634_v14 = vmul.f32 %v3886_v4, %v1625_v54  ;;  %v5189_v54 = vld [vmem:[%s6147_s11 + $0x8] sm:$0xff] }
 0x9ca   :  { %1636 = vrot.lane.b32.xlu0 %v1634_v14, %s3981_s9 }
 0x9cf   :  { %v3888_v40 = vpop.eup %3887 }
 0x9d0   :  { %v1732_v19 = vmul.f32 %v3888_v40, %v1720_v16  ;;  %v5240_v16 = vld [vmem:[%s6148_s10 + $0x20] sm:$0xff] }
 0x9d1   :  { %6252 = vst [vmem:[#allocation3_spill] sm:$0xff] %v5240_v16 }
 0x9d2   :  { %1807 = vrot.lane.b32.xlu1 %v1732_v19, %s3981_s9 }
 0xa3c   :  { %v1637_v13 = vpop.permute.xlu0 %1636 }
 0xa3d   :  { %1639 = vst.msk [vmem:[#allocation2 + $0x6] sm:$0x3] %vm819_vm7, %v1637_v13  ;;  %3646 = vmatmul.mubr.msk.f32.vlgmr.msra.gmra.mxu1 %vm399_vm5, %v1637_v13 }
 0xa3e   :  { %1923 = vmatpush1.msra.mxu1 %v4902_v42  ;;  %1970 = vmatprep.mubr.f32.mxu1 %v6225_v0 }
 0xa3f   :  { %1924 = vmatprep.subr.mxu1 %v4909_v55 }
 0xa40   :  { %1925 = vmatpush1.msra.mxu1 %v4915_v48 }
 0xa41   :  { %1926 = vmatprep.subr.mxu1 %v4921_v61 }
 0xa42   :  { %1927 = vmatpush1.msra.mxu1 %v4927_v46 }
 0xa43   :  { %1928 = vmatprep.subr.mxu1 %v4933_v59 }
 0xa44   :  { %v1808_v50 = vpop.permute.xlu1 %1807  ;;  %1929 = vmatpush1.msra.mxu1 %v4940_v49 }
 0xa45   :  { %3647 = vmatmul.mubr.msk.f32.vlgmr.msra.gmra.mxu0 %vm399_vm5, %v1808_v50  ;;  %1930 = vmatprep.subr.mxu1 %v4947_v57 }
 0xa46   :  { %1931 = vmatpush1.msra.mxu1 %v4954_v45  ;;  %2024 = vmatpush1.msra.mxu0 %v5054_v15 }
 0xa47   :  { %1932 = vmatprep.subr.mxu1 %v4961_v20  ;;  %2025 = vmatprep.subr.mxu0 %v5061_v17 }
 0xa48   :  { %1933 = vmatpush1.msra.mxu1 %v4968_v21  ;;  %2026 = vmatpush1.msra.mxu0 %v5068_v22 }
 0xa49   :  { %1934 = vmatprep.subr.mxu1 %v5074_v23  ;;  %2027 = vmatprep.subr.mxu0 %v5080_v24 }
 0xa4a   :  { %1935 = vmatpush1.msra.mxu1 %v5086_v25  ;;  %2028 = vmatpush1.msra.mxu0 %v5092_v26 }
 0xa4b   :  { %1936 = vmatprep.subr.mxu1 %v5098_v27  ;;  %2029 = vmatprep.subr.mxu0 %v5104_v28 }
 0xa4c   :  { %1937 = vmatpush1.msra.mxu1 %v5110_v29  ;;  %2030 = vmatpush1.msra.mxu0 %v5116_v30 }
 0xa4d   :  { %3648 = vmatmul.mubr.msk.f32.vlgmr.msra.gmra.mxu1 %vm399_vm5, %v1808_v50  ;;  %2031 = vmatprep.subr.mxu0 %v5123_v31 }
 0xa4e   :  { %2032 = vmatpush1.msra.mxu0 %v5129_v34  ;;  %2100 = vmatprep.subr.mxu1 %v5135_v35 }
 0xa4f   :  { %2033 = vmatprep.subr.mxu0 %v5141_v38  ;;  %2101 = vmatpush1.msra.mxu1 %v5147_v39 }
 0xa50   :  { %2034 = vmatpush1.msra.mxu0 %v5153_v41  ;;  %2102 = vmatprep.subr.mxu1 %v5159_v44 }
 0xa51   :  { %2035 = vmatprep.subr.mxu0 %v5165_v47  ;;  %2103 = vmatpush1.msra.mxu1 %v5171_v51 }
 0xa52   :  { %2036 = vmatpush1.msra.mxu0 %v5177_v36  ;;  %2104 = vmatprep.subr.mxu1 %v5183_v37 }
 0xa53   :  { %2037 = vmatprep.subr.mxu0 %v5189_v54  ;;  %2071 = vmatprep.mubr.f32.mxu0 %v6225_v0 }
 0xa54   :  { %2038 = vmatpush1.msra.mxu0 %v5196_v58  ;;  %2105 = vmatpush1.msra.mxu1 %v5202_v60 }
 0xa55   :  { %2195 = vmatprep.subr.mxu0 %v5000_v11  ;;  %2106 = vmatprep.subr.mxu1 %v5209_v62 }
 0xa56   :  { %2107 = vmatpush1.msra.mxu1 %v5215_v1  ;;  %2148 = vmatprep.mubr.f32.mxu1 %v6225_v0 }
 0xa57   :  { %2108 = vmatprep.subr.mxu1 %v5222_v3 }
 0xa58   :  { %2109 = vmatpush1.msra.mxu1 %v5228_v7 }
 0xa59   :  { %2110 = vmatprep.subr.mxu1 %v5234_v2 }
 0xa5a   :  { %2111 = vmatpush1.msra.mxu1 %v5240_v16 }
 0xa5b   :  { %2112 = vmatprep.subr.mxu1 %v5246_v12 }
 0xa5c   :  { %2113 = vmatpush1.msra.mxu1 %v5252_v18 }
 0xa5d   :  { %2114 = vmatprep.subr.mxu1 %v5258_v63 }
 0xa5e   :  { %2115 = vmatpush1.msra.mxu1 %v6244_v5 }
 0xa5f   :  { %2296 = vmatprep.subr.mxu1 %v5265_v53 }
 0xafd   :  { %v1801_v9 = vpop.f32.mrf.mxu1 }
 0xaff   :  { %v1803_v40 = vpop.f32.mrf.mxu1 }
 0xb05   :  { %v1877_v4 = vpop.f32.mrf.mxu0 }
 0xb06   :  { %v1878_v14 = vadd.f32 %v1877_v4, %v1801_v9 }
 0xb07   :  { %v1879_v19 = vpop.f32.mrf.mxu0 }
 0xb08   :  { %v1882_v13 = vadd.f32 %v1878_v14, %v4717_v8  ;;  %v1880_v50 = vadd.f32 %v1879_v19, %v1803_v40 }
 0xb0a   :  { %v1884_v18 = vmul.f32 0.5, %v1882_v13  ;;  %v1883_v63 = vadd.f32 %v1880_v50, %v4720_v43 }
 0xb0c   :  { %3889 = vtanh.f32 %v1884_v18  ;;  %v1885_v5 = vmul.f32 %v1883_v63, %v4439_v52 }
 0xb0d   :  { %v1972_v12 = vpop.f32.mrf.mxu1 }
 0xb0e   :  { %3891 = vtanh.f32 %v1885_v5  ;;  %v1979_v16 = vrot.slane %v1972_v12, 6 }
 0xb0f   :  { %v1974_v2 = vpop.f32.mrf.mxu1 }
 0xb10   :  { %v1983_v53 = vadd.f32 %v1979_v16, %v6249_v33  ;;  %v1980_v7 = vrot.slane %v1974_v2, 6 }
 0xb12   :  { %v1985_v11 = vmul.f32 0.5, %v1983_v53  ;;  %v1984_v9 = vadd.f32 %v1980_v7, %v5017_v32  ;;  %v1994_v7 = vrot.slane %v5033_v6, 6 }
 0xb14   :  { %3893 = vtanh.f32 %v1985_v11  ;;  %v1986_v4 = vmul.f32 %v1984_v9, %v4439_v52 }
 0xb16   :  { %3895 = vtanh.f32 %v1986_v4 }
 0xb19   :  { %v3890_v14 = vpop.eup %3889 }
 0xb1a   :  { %v1888_v40 = vmul.f32 0.5, %v3890_v14 }
 0xb1b   :  { %v3892_v19 = vpop.eup %3891 }
 0xb1c   :  { %v1889_v18 = vmul.f32 %v3892_v19, %v4439_v52  ;;  %v1890_v63 = vadd.f32 0.5, %v1888_v40 }
 0xb1e   :  { %v1891_v13 = vadd.f32 %v1889_v18, %v4446_v10  ;;  %v1892_v14 = vmul.f32 %v1890_v63, %v5030_v56 }
 0xb20   :  { %v1893_v12 = vmul.f32 %v1891_v13, %v1890_v63 }
 0xb21   :  { %v3894_v50 = vpop.eup %3893 }
 0xb22   :  { %1895 = vrot.lane.b32.xlu0 %v1893_v12, %s3981_s9  ;;  %v1989_v2 = vmul.f32 0.5, %v3894_v50 }
 0xb23   :  { %v3896_v16 = vpop.eup %3895 }
 0xb24   :  { %v1990_v11 = vmul.f32 %v3896_v16, %v4439_v52  ;;  %v1991_v53 = vadd.f32 0.5, %v1989_v2 }
 0xb26   :  { %v1992_v5 = vadd.f32 %v1990_v11, %v4446_v10  ;;  %v1996_v9 = vmul.f32 %v1994_v7, %v1991_v53  ;;  %v6258_v11 = vld [vmem:[#allocation11_spill] sm:$0xff] }
 0xb28   :  { %v1997_v4 = vmul.f32 %v1992_v5, %v1991_v53  ;;  %v6259_v53 = vld [vmem:[#allocation12_spill] sm:$0xff] }
 0xb2a   :  { %1999 = vrot.lane.b32.xlu1 %v1997_v4, %s3981_s9  ;;  %v6262_v4 = vld [vmem:[#allocation14_spill] sm:$0xff] }
 0xb94   :  { %v1896_v40 = vpop.permute.xlu0 %1895 }
 0xb95   :  { %v5282_v19 = vadd.f32 %v1896_v40, %v1892_v14  ;;  %v6263_v14 = vld [vmem:[#allocation15_spill] sm:$0xff]  ;;  %v5346_v40 = vld [vmem:[%s6148_s10] sm:$0xff] }
 0xb96   :  { %6264 = vst [vmem:[#allocation17_spill] sm:$0xff] %v5346_v40 }
 0xb97   :  { %3897 = vtanh.f32 %v5282_v19 }
 0xb9c   :  { %v2000_v18 = vpop.permute.xlu1 %1999 }
 0xb9d   :  { %v5285_v12 = vadd.f32 %v2000_v18, %v1996_v9  ;;  %v6261_v9 = vld [vmem:[#allocation13_spill] sm:$0xff]  ;;  %v6265_v18 = vld [vmem:[#allocation16_spill] sm:$0xff] }
 0xb9f   :  { %3899 = vtanh.f32 %v5285_v12 }
 0xba4   :  { %v3898_v6 = vpop.eup %3897 }
 0xba5   :  { %v1900_v50 = vmul.f32 %v3898_v6, %v1891_v13  ;;  %v6257_v13 = vld [vmem:[#allocation10_spill] sm:$0xff] }
 0xba7   :  { %1902 = vrot.lane.b32.xlu0 %v1900_v50, %s3981_s9 }
 0xbac   :  { %v3900_v2 = vpop.eup %3899 }
 0xbad   :  { %v2004_v16 = vmul.f32 %v3900_v2, %v1992_v5  ;;  %v6260_v5 = vld [vmem:[#allocation3_spill] sm:$0xff] }
 0xbaf   :  { %v2079_v7 = vrot.slane %v2004_v16, 2 }
 0xbb1   :  { %2080 = vrot.lane.b32.xlu1 %v2079_v7, %s3981_s9 }
 0xc19   :  { %v1903_v56 = vpop.permute.xlu0 %1902 }
 0xc1a   :  { %1905 = vst.msk [vmem:[#allocation2 + $0x8] sm:$0x3] %vm819_vm7, %v1903_v56  ;;  %3649 = vmatmul.mubr.msk.f32.vlgmr.msra.gmra.mxu0 %vm399_vm5, %v1903_v56 }
 0xc1b   :  { %2196 = vmatpush1.msra.mxu0 %v4902_v42  ;;  %2243 = vmatprep.mubr.f32.mxu0 %v6225_v0 }
 0xc1c   :  { %2197 = vmatprep.subr.mxu0 %v4909_v55 }
 0xc1d   :  { %2198 = vmatpush1.msra.mxu0 %v4915_v48 }
 0xc1e   :  { %2199 = vmatprep.subr.mxu0 %v4921_v61 }
 0xc1f   :  { %2200 = vmatpush1.msra.mxu0 %v4927_v46 }
 0xc20   :  { %2201 = vmatprep.subr.mxu0 %v4933_v59 }
 0xc21   :  { %2202 = vmatpush1.msra.mxu0 %v4940_v49 }
 0xc22   :  { %2203 = vmatprep.subr.mxu0 %v4947_v57 }
 0xc23   :  { %2204 = vmatpush1.msra.mxu0 %v4954_v45  ;;  %v2081_v63 = vpop.permute.xlu1 %2080 }
 0xc24   :  { %2205 = vmatprep.subr.mxu0 %v4961_v20  ;;  %3650 = vmatmul.mubr.msk.f32.vlgmr.msra.gmra.mxu1 %vm399_vm5, %v2081_v63 }
 0xc25   :  { %2206 = vmatpush1.msra.mxu0 %v4968_v21  ;;  %2297 = vmatpush1.msra.mxu1 %v5054_v15 }
 0xc26   :  { %2207 = vmatprep.subr.mxu0 %v5074_v23  ;;  %2298 = vmatprep.subr.mxu1 %v5061_v17 }
 0xc27   :  { %2208 = vmatpush1.msra.mxu0 %v5086_v25  ;;  %2299 = vmatpush1.msra.mxu1 %v5068_v22 }
 0xc28   :  { %2209 = vmatprep.subr.mxu0 %v5098_v27  ;;  %2300 = vmatprep.subr.mxu1 %v5080_v24 }
 0xc29   :  { %2210 = vmatpush1.msra.mxu0 %v5110_v29  ;;  %2301 = vmatpush1.msra.mxu1 %v5092_v26 }
 0xc2a   :  { %3651 = vmatmul.mubr.msk.f32.vlgmr.msra.gmra.mxu0 %vm399_vm5, %v2081_v63  ;;  %2302 = vmatprep.subr.mxu1 %v5104_v28 }
 0xc2b   :  { %2303 = vmatpush1.msra.mxu1 %v5116_v30  ;;  %2373 = vmatprep.subr.mxu0 %v5135_v35 }
 0xc2c   :  { %2304 = vmatprep.subr.mxu1 %v5123_v31  ;;  %2374 = vmatpush1.msra.mxu0 %v5147_v39 }
 0xc2d   :  { %2305 = vmatpush1.msra.mxu1 %v5129_v34  ;;  %2375 = vmatprep.subr.mxu0 %v5159_v44 }
 0xc2e   :  { %2306 = vmatprep.subr.mxu1 %v5141_v38  ;;  %2376 = vmatpush1.msra.mxu0 %v5171_v51 }
 0xc2f   :  { %2307 = vmatpush1.msra.mxu1 %v5153_v41  ;;  %2377 = vmatprep.subr.mxu0 %v5183_v37 }
 0xc30   :  { %2308 = vmatprep.subr.mxu1 %v5165_v47  ;;  %2378 = vmatpush1.msra.mxu0 %v5202_v60 }
 0xc31   :  { %2309 = vmatpush1.msra.mxu1 %v5177_v36  ;;  %2379 = vmatprep.subr.mxu0 %v5209_v62 }
 0xc32   :  { %2310 = vmatprep.subr.mxu1 %v5189_v54  ;;  %2380 = vmatpush1.msra.mxu0 %v5215_v1 }
 0xc33   :  { %2311 = vmatpush1.msra.mxu1 %v5196_v58  ;;  %2344 = vmatprep.mubr.f32.mxu1 %v6225_v0 }
 0xc34   :  { %2381 = vmatprep.subr.mxu0 %v5222_v3  ;;  %2468 = vmatprep.subr.mxu1 %v6257_v13 }
 0xc35   :  { %2382 = vmatpush1.msra.mxu0 %v6258_v11  ;;  %2421 = vmatprep.mubr.f32.mxu0 %v6225_v0 }
 0xc36   :  { %2383 = vmatprep.subr.mxu0 %v6259_v53 }
 0xc37   :  { %2384 = vmatpush1.msra.mxu0 %v6260_v5 }
 0xc38   :  { %2385 = vmatprep.subr.mxu0 %v6261_v9 }
 0xc39   :  { %2386 = vmatpush1.msra.mxu0 %v6262_v4 }
 0xc3a   :  { %2387 = vmatprep.subr.mxu0 %v6263_v14 }
 0xc3b   :  { %2388 = vmatpush1.msra.mxu0 %v5346_v40 }
 0xc3c   :  { %2569 = vmatprep.subr.mxu0 %v6265_v18 }
 0xcda   :  { %v2073_v6 = vpop.f32.mrf.mxu0 }
 0xcdc   :  { %v2075_v16 = vpop.f32.mrf.mxu0 }
 0xce4   :  { %v2150_v50 = vpop.f32.mrf.mxu1 }
 0xce5   :  { %v2151_v2 = vadd.f32 %v2150_v50, %v2073_v6 }
 0xce6   :  { %v2152_v7 = vpop.f32.mrf.mxu1 }
 0xce7   :  { %v2155_v56 = vadd.f32 %v2151_v2, %v4717_v8  ;;  %v2153_v63 = vadd.f32 %v2152_v7, %v2075_v16 }
 0xce9   :  { %v2157_v13 = vmul.f32 0.5, %v2155_v56  ;;  %v2156_v14 = vadd.f32 %v2153_v63, %v4720_v43 }
 0xcea   :  { %v2245_v4 = vpop.f32.mrf.mxu0 }
 0xceb   :  { %3901 = vtanh.f32 %v2157_v13  ;;  %v2158_v9 = vmul.f32 %v2156_v14, %v4439_v52  ;;  %v2252_v5 = vrot.slane %v2245_v4, 4 }
 0xcec   :  { %v2247_v53 = vpop.f32.mrf.mxu0 }
 0xced   :  { %3903 = vtanh.f32 %v2158_v9  ;;  %v2256_v18 = vadd.f32 %v2252_v5, %v6249_v33  ;;  %v2253_v40 = vrot.slane %v2247_v53, 4  ;;  %v2267_v53 = vrot.slane %v5285_v12, 6 }
 0xcef   :  { %v2258_v11 = vmul.f32 0.5, %v2256_v18  ;;  %v2257_v6 = vadd.f32 %v2253_v40, %v5017_v32 }
 0xcf1   :  { %3905 = vtanh.f32 %v2258_v11  ;;  %v2259_v50 = vmul.f32 %v2257_v6, %v4439_v52 }
 0xcf3   :  { %3907 = vtanh.f32 %v2259_v50 }
 0xcf8   :  { %v3902_v2 = vpop.eup %3901 }
 0xcf9   :  { %v2161_v16 = vmul.f32 0.5, %v3902_v2 }
 0xcfa   :  { %v3904_v7 = vpop.eup %3903 }
 0xcfb   :  { %v2162_v56 = vmul.f32 %v3904_v7, %v4439_v52  ;;  %v2163_v63 = vadd.f32 0.5, %v2161_v16 }
 0xcfd   :  { %v2164_v4 = vadd.f32 %v2162_v56, %v4446_v10  ;;  %v2165_v2 = vmul.f32 %v2163_v63, %v5282_v19 }
 0xcfe   :  { %v3906_v14 = vpop.eup %3905 }
 0xcff   :  { %v2166_v9 = vmul.f32 %v2164_v4, %v2163_v63  ;;  %v2262_v13 = vmul.f32 0.5, %v3906_v14 }
 0xd00   :  { %v3908_v5 = vpop.eup %3907 }
 0xd01   :  { %2168 = vrot.lane.b32.xlu0 %v2166_v9, %s3981_s9  ;;  %v2263_v11 = vmul.f32 %v3908_v5, %v4439_v52  ;;  %v2264_v40 = vadd.f32 0.5, %v2262_v13 }
 0xd03   :  { %v2265_v18 = vadd.f32 %v2263_v11, %v4446_v10  ;;  %v2269_v6 = vmul.f32 %v2267_v53, %v2264_v40 }
 0xd05   :  { %v2270_v50 = vmul.f32 %v2265_v18, %v2264_v40 }
 0xd07   :  { %2272 = vrot.lane.b32.xlu1 %v2270_v50, %s3981_s9 }
 0xd73   :  { %v2169_v16 = vpop.permute.xlu0 %2168 }
 0xd74   :  { %v5364_v7 = vadd.f32 %v2169_v16, %v2165_v2  ;;  %v2786_v2 = vld [vmem:[%s6150_s13 + $0x1d8] sm:$0xff] }
 0xd76   :  { %3909 = vtanh.f32 %v5364_v7 }
 0xd79   :  { %v2273_v56 = vpop.permute.xlu1 %2272 }
 0xd7a   :  { %v5367_v12 = vadd.f32 %v2273_v56, %v2269_v6 }
 0xd7c   :  { %3911 = vtanh.f32 %v5367_v12 }
 0xd83   :  { %v3910_v14 = vpop.eup %3909 }
 0xd84   :  { %v2173_v9 = vmul.f32 %v3910_v14, %v2164_v4  ;;  %v2784_v4 = vld [vmem:[%s6150_s13 + $0x1c8] sm:$0xff] }
 0xd86   :  { %2175 = vrot.lane.b32.xlu0 %v2173_v9, %s3981_s9  ;;  %v2783_v9 = vld [vmem:[%s6150_s13 + $0x1c0] sm:$0xff] }
 0xd89   :  { %v3912_v13 = vpop.eup %3911 }
 0xd8a   :  { %v2277_v5 = vmul.f32 %v3912_v13, %v2265_v18 }
 0xd8c   :  { %v2352_v53 = vrot.slane %v2277_v5, 4  ;;  %v2776_v5 = vld [vmem:[%s6150_s13 + $0x188] sm:$0xff] }
 0xd8e   :  { %2353 = vrot.lane.b32.xlu1 %v2352_v53, %s3981_s9  ;;  %v2775_v53 = vld [vmem:[%s6150_s13 + $0x180] sm:$0xff] }
 0xdf8   :  { %v2176_v19 = vpop.permute.xlu0 %2175 }
 0xdf9   :  { %2178 = vst.msk [vmem:[#allocation2 + $0xa] sm:$0x3] %vm819_vm7, %v2176_v19  ;;  %3652 = vmatmul.mubr.msk.f32.vlgmr.msra.gmra.mxu1 %vm399_vm5, %v2176_v19  ;;  %v2768_v19 = vld [vmem:[%s6150_s13 + $0x148] sm:$0xff] }
 0xdfa   :  { %2469 = vmatpush1.msra.mxu1 %v4902_v42  ;;  %2516 = vmatprep.mubr.f32.mxu1 %v6225_v0  ;;  %v6266_v42 = vld [vmem:[#allocation11_spill] sm:$0xff] }
 0xdfb   :  { %2470 = vmatprep.subr.mxu1 %v4909_v55  ;;  %v6267_v55 = vld [vmem:[#allocation12_spill] sm:$0xff] }
 0xdfc   :  { %2471 = vmatpush1.msra.mxu1 %v4915_v48  ;;  %v6268_v48 = vld [vmem:[#allocation3_spill] sm:$0xff] }
 0xdfd   :  { %2472 = vmatprep.subr.mxu1 %v4921_v61  ;;  %v6269_v61 = vld [vmem:[#allocation13_spill] sm:$0xff] }
 0xdfe   :  { %2473 = vmatpush1.msra.mxu1 %v4927_v46  ;;  %v6270_v46 = vld [vmem:[#allocation14_spill] sm:$0xff] }
 0xdff   :  { %2474 = vmatprep.subr.mxu1 %v4933_v59  ;;  %v6271_v59 = vld [vmem:[#allocation15_spill] sm:$0xff] }
 0xe00   :  { %v2354_v63 = vpop.permute.xlu1 %2353  ;;  %2475 = vmatpush1.msra.mxu1 %v4940_v49  ;;  %v6272_v49 = vld [vmem:[#allocation17_spill] sm:$0xff] }
 0xe01   :  { %3653 = vmatmul.mubr.msk.f32.vlgmr.msra.gmra.mxu0 %vm399_vm5, %v2354_v63  ;;  %2476 = vmatprep.subr.mxu1 %v4947_v57 }
 0xe02   :  { %2477 = vmatpush1.msra.mxu1 %v4954_v45  ;;  %2570 = vmatpush1.msra.mxu0 %v5054_v15 }
 0xe03   :  { %2478 = vmatprep.subr.mxu1 %v4961_v20  ;;  %2571 = vmatprep.subr.mxu0 %v5061_v17 }
 0xe04   :  { %2479 = vmatpush1.msra.mxu1 %v4968_v21  ;;  %2572 = vmatpush1.msra.mxu0 %v5068_v22 }
 0xe05   :  { %2480 = vmatprep.subr.mxu1 %v5074_v23  ;;  %2573 = vmatprep.subr.mxu0 %v5080_v24 }
 0xe06   :  { %2481 = vmatpush1.msra.mxu1 %v5086_v25  ;;  %2574 = vmatpush1.msra.mxu0 %v5092_v26 }
 0xe07   :  { %2482 = vmatprep.subr.mxu1 %v5098_v27  ;;  %2575 = vmatprep.subr.mxu0 %v5104_v28 }
 0xe08   :  { %2483 = vmatpush1.msra.mxu1 %v5110_v29  ;;  %2576 = vmatpush1.msra.mxu0 %v5116_v30 }
 0xe09   :  { %3654 = vmatmul.mubr.msk.f32.vlgmr.msra.gmra.mxu1 %vm399_vm5, %v2354_v63  ;;  %2577 = vmatprep.subr.mxu0 %v5123_v31  ;;  %v2767_v63 = vld [vmem:[%s6150_s13 + $0x140] sm:$0xff] }
 0xe0a   :  { %2578 = vmatpush1.msra.mxu0 %v5129_v34  ;;  %2646 = vmatprep.subr.mxu1 %v5135_v35 }
 0xe0b   :  { %2579 = vmatprep.subr.mxu0 %v5141_v38  ;;  %2647 = vmatpush1.msra.mxu1 %v5147_v39 }
 0xe0c   :  { %2580 = vmatpush1.msra.mxu0 %v5153_v41  ;;  %2648 = vmatprep.subr.mxu1 %v5159_v44 }
 0xe0d   :  { %2581 = vmatprep.subr.mxu0 %v5165_v47  ;;  %2649 = vmatpush1.msra.mxu1 %v5171_v51 }
 0xe0e   :  { %2582 = vmatpush1.msra.mxu0 %v5177_v36  ;;  %2650 = vmatprep.subr.mxu1 %v5183_v37 }
 0xe0f   :  { %2583 = vmatprep.subr.mxu0 %v5189_v54  ;;  %2651 = vmatpush1.msra.mxu1 %v5202_v60 }
 0xe10   :  { %2584 = vmatpush1.msra.mxu0 %v5196_v58  ;;  %2617 = vmatprep.mubr.f32.mxu0 %v6225_v0 }
 0xe11   :  { %2652 = vmatprep.subr.mxu1 %v5209_v62  ;;  %2694 = vmatprep.mubr.f32.mxu1 %v6225_v0 }
 0xe12   :  { %2653 = vmatpush1.msra.mxu1 %v5215_v1  ;;  %2855 = vmatprep.subr.mxu0 %v2784_v4 }
 0xe13   :  { %2654 = vmatprep.subr.mxu1 %v5222_v3 }
 0xe14   :  { %2655 = vmatpush1.msra.mxu1 %v6266_v42  ;;  %v2760_v42 = vld [vmem:[%s6150_s13 + $0x108] sm:$0xff] }
 0xe15   :  { %2656 = vmatprep.subr.mxu1 %v6267_v55  ;;  %v2759_v55 = vld [vmem:[%s6150_s13 + $0x100] sm:$0xff] }
 0xe16   :  { %2657 = vmatpush1.msra.mxu1 %v6268_v48  ;;  %v2752_v48 = vld [vmem:[%s6150_s13 + $0xc8] sm:$0xff] }
 0xe17   :  { %2658 = vmatprep.subr.mxu1 %v6269_v61  ;;  %v2751_v61 = vld [vmem:[%s6150_s13 + $0xc0] sm:$0xff] }
 0xe18   :  { %2659 = vmatpush1.msra.mxu1 %v6270_v46  ;;  %v2744_v46 = vld [vmem:[%s6150_s13 + $0x88] sm:$0xff] }
 0xe19   :  { %2660 = vmatprep.subr.mxu1 %v6271_v59  ;;  %v2743_v59 = vld [vmem:[%s6150_s13 + $0x80] sm:$0xff] }
 0xe1a   :  { %2661 = vmatpush1.msra.mxu1 %v6272_v49  ;;  %v2785_v49 = vld [vmem:[%s6150_s13 + $0x1d0] sm:$0xff] }
 0xe1b   :  { %2932 = vmatprep.subr.mxu1 %v2786_v2  ;;  %v2782_v2 = vld [vmem:[%s6150_s13 + $0x1b8] sm:$0xff] }
 0xeb9   :  { %v2346_v57 = vpop.f32.mrf.mxu1 }
 0xebb   :  { %v2348_v21 = vpop.f32.mrf.mxu1 }
 0xec1   :  { %v2423_v45 = vpop.f32.mrf.mxu0 }
 0xec2   :  { %v2424_v20 = vadd.f32 %v2423_v45, %v2346_v57  ;;  %v2736_v45 = vld [vmem:[%s6150_s13 + $0x48] sm:$0xff] }
 0xec3   :  { %v2425_v15 = vpop.f32.mrf.mxu0 }
 0xec4   :  { %v2428_v17 = vadd.f32 %v2424_v20, %v4717_v8  ;;  %v2426_v22 = vadd.f32 %v2425_v15, %v2348_v21  ;;  %v2778_v20 = vld [vmem:[%s6150_s13 + $0x198] sm:$0xff]  ;;  %v2735_v21 = vld [vmem:[%s6150_s13 + $0x40] sm:$0xff]  ;;  %v2777_v15 = vld [vmem:[%s6150_s13 + $0x190] sm:$0xff] }
 0xec6   :  { %v2430_v23 = vmul.f32 0.5, %v2428_v17  ;;  %v2429_v24 = vadd.f32 %v2426_v22, %v4720_v43  ;;  %v2728_v17 = vld [vmem:[%s6150_s13 + $0x8] sm:$0xff]  ;;  %v2770_v22 = vld [vmem:[%s6150_s13 + $0x158] sm:$0xff] }
 0xec8   :  { %3913 = vtanh.f32 %v2430_v23  ;;  %v2431_v25 = vmul.f32 %v2429_v24, %v4439_v52  ;;  %v2727_v23 = vld [vmem:[%s6150_s13] sm:$0xff]  ;;  %v2769_v24 = vld [vmem:[%s6150_s13 + $0x150] sm:$0xff] }
 0xec9   :  { %v2518_v26 = vpop.f32.mrf.mxu1 }
 0xeca   :  { %3915 = vtanh.f32 %v2431_v25  ;;  %v2525_v27 = vrot.slane %v2518_v26, 2  ;;  %v2762_v25 = vld [vmem:[%s6150_s13 + $0x118] sm:$0xff]  ;;  %v2761_v26 = vld [vmem:[%s6150_s13 + $0x110] sm:$0xff] }
 0xecb   :  { %v2520_v28 = vpop.f32.mrf.mxu1 }
 0xecc   :  { %v2529_v29 = vadd.f32 %v2525_v27, %v6249_v33  ;;  %v2526_v30 = vrot.slane %v2520_v28, 2  ;;  %v5526_v27 = vld [vmem:[#allocation2] sm:$0xff]  ;;  %v2754_v28 = vld [vmem:[%s6150_s13 + $0xd8] sm:$0xff] }
 0xece   :  { %v2531_v31 = vmul.f32 0.5, %v2529_v29  ;;  %v2530_v34 = vadd.f32 %v2526_v30, %v5017_v32  ;;  %v2540_v32 = vrot.slane %v5367_v12, 6  ;;  %v2753_v29 = vld [vmem:[%s6150_s13 + $0xd0] sm:$0xff]  ;;  %v2746_v30 = vld [vmem:[%s6150_s13 + $0x98] sm:$0xff] }
 0xed0   :  { %3917 = vtanh.f32 %v2531_v31  ;;  %v2532_v35 = vmul.f32 %v2530_v34, %v4439_v52  ;;  %v2745_v31 = vld [vmem:[%s6150_s13 + $0x90] sm:$0xff]  ;;  %v2738_v34 = vld [vmem:[%s6150_s13 + $0x58] sm:$0xff] }
 0xed2   :  { %3919 = vtanh.f32 %v2532_v35  ;;  %v2737_v35 = vld [vmem:[%s6150_s13 + $0x50] sm:$0xff] }
 0xed5   :  { %v3914_v38 = vpop.eup %3913 }
 0xed6   :  { %v2434_v39 = vmul.f32 0.5, %v3914_v38  ;;  %v2730_v38 = vld [vmem:[%s6150_s13 + $0x18] sm:$0xff] }
 0xed7   :  { %v3916_v41 = vpop.eup %3915 }
 0xed8   :  { %v2435_v44 = vmul.f32 %v3916_v41, %v4439_v52  ;;  %v2436_v47 = vadd.f32 0.5, %v2434_v39  ;;  %v2729_v39 = vld [vmem:[%s6150_s13 + $0x10] sm:$0xff] }
 0xeda   :  { %v2437_v51 = vadd.f32 %v2435_v44, %v4446_v10  ;;  %v2438_v11 = vmul.f32 %v2436_v47, %v5364_v7 }
 0xedc   :  { %v2439_v36 = vmul.f32 %v2437_v51, %v2436_v47 }
 0xedd   :  { %v3918_v37 = vpop.eup %3917 }
 0xede   :  { %2441 = vrot.lane.b32.xlu1 %v2439_v36, %s3981_s9  ;;  %v2535_v33 = vmul.f32 0.5, %v3918_v37 }
 0xedf   :  { %v3920_v54 = vpop.eup %3919 }
 0xee0   :  { %v2536_v58 = vmul.f32 %v3920_v54, %v4439_v52  ;;  %v2537_v60 = vadd.f32 0.5, %v2535_v33 }
 0xee2   :  { %v2538_v62 = vadd.f32 %v2536_v58, %v4446_v10  ;;  %v2542_v1 = vmul.f32 %v2540_v32, %v2537_v60 }
 0xee4   :  { %v2543_v3 = vmul.f32 %v2538_v62, %v2537_v60 }
 0xee6   :  { %2545 = vrot.lane.b32.xlu0 %v2543_v3, %s3981_s9 }
 0xf50   :  { %v2442_v40 = vpop.permute.xlu1 %2441 }
 0xf51   :  { %v5442_v18 = vadd.f32 %v2442_v40, %v2438_v11 }
 0xf53   :  { %3921 = vtanh.f32 %v5442_v18 }
 0xf58   :  { %v2546_v6 = vpop.permute.xlu0 %2545 }
 0xf59   :  { %v5445_v50 = vadd.f32 %v2546_v6, %v2542_v1  ;;  %v2780_v6 = vld [vmem:[%s6150_s13 + $0x1a8] sm:$0xff] }
 0xf5b   :  { %3923 = vtanh.f32 %v5445_v50 }
 0xf60   :  { %v3922_v16 = vpop.eup %3921 }
 0xf61   :  { %v2446_v56 = vmul.f32 %v3922_v16, %v2437_v51  ;;  %v2779_v16 = vld [vmem:[%s6150_s13 + $0x1a0] sm:$0xff] }
 0xf63   :  { %2448 = vrot.lane.b32.xlu0 %v2446_v56, %s3981_s9  ;;  %v2781_v56 = vld [vmem:[%s6150_s13 + $0x1b0] sm:$0xff] }
 0xf68   :  { %v3924_v7 = vpop.eup %3923 }
 0xf69   :  { %v5452_v12 = vmul.f32 %v3924_v7, %v2538_v62 }
 0xf6b   :  { %v2625_v14 = vrot.slane %v5452_v12, 6 }
 0xf6d   :  { %2626 = vrot.lane.b32.xlu1 %v2625_v14, %s3981_s9 }
 0xfd5   :  { %v2449_v13 = vpop.permute.xlu0 %2448 }
 0xfd6   :  { %2451 = vst.msk [vmem:[#allocation2 + $0xc] sm:$0x3] %vm819_vm7, %v2449_v13  ;;  %3655 = vmatmul.mubr.msk.f32.vlgmr.msra.gmra.mxu0 %vm399_vm5, %v2449_v13  ;;  %v2772_v13 = vld [vmem:[%s6150_s13 + $0x168] sm:$0xff] }
 0xfd7   :  { %2856 = vmatpush1.msra.mxu0 %v2783_v9  ;;  %2903 = vmatprep.mubr.f32.mxu0 %v6225_v0 }
 0xfd8   :  { %2857 = vmatprep.subr.mxu0 %v2776_v5  ;;  %v2771_v5 = vld [vmem:[%s6150_s13 + $0x160] sm:$0xff] }
 0xfd9   :  { %2858 = vmatpush1.msra.mxu0 %v2775_v53  ;;  %v2773_v53 = vld [vmem:[%s6150_s13 + $0x170] sm:$0xff] }
 0xfda   :  { %2859 = vmatprep.subr.mxu0 %v2768_v19  ;;  %v2764_v19 = vld [vmem:[%s6150_s13 + $0x128] sm:$0xff] }
 0xfdb   :  { %2860 = vmatpush1.msra.mxu0 %v2767_v63  ;;  %v2766_v63 = vld [vmem:[%s6150_s13 + $0x138] sm:$0xff] }
 0xfdc   :  { %2861 = vmatprep.subr.mxu0 %v2760_v42  ;;  %v2763_v42 = vld [vmem:[%s6150_s13 + $0x120] sm:$0xff] }
 0xfdd   :  { %2862 = vmatpush1.msra.mxu0 %v2759_v55  ;;  %v2765_v55 = vld [vmem:[%s6150_s13 + $0x130] sm:$0xff] }
 0xfde   :  { %2863 = vmatprep.subr.mxu0 %v2752_v48  ;;  %v2756_v48 = vld [vmem:[%s6150_s13 + $0xe8] sm:$0xff] }
 0xfdf   :  { %2864 = vmatpush1.msra.mxu0 %v2751_v61  ;;  %v2627_v57 = vpop.permute.xlu1 %2626  ;;  %v2758_v61 = vld [vmem:[%s6150_s13 + $0xf8] sm:$0xff] }
 0xfe0   :  { %2865 = vmatprep.subr.mxu0 %v2744_v46  ;;  %3656 = vmatmul.mubr.msk.f32.vlgmr.msra.gmra.mxu1 %vm399_vm5, %v2627_v57  ;;  %v2755_v46 = vld [vmem:[%s6150_s13 + $0xe0] sm:$0xff]  ;;  %v2750_v57 = vld [vmem:[%s6150_s13 + $0xb8] sm:$0xff] }
 0xfe1   :  { %2866 = vmatpush1.msra.mxu0 %v2743_v59  ;;  %2933 = vmatpush1.msra.mxu1 %v2785_v49  ;;  %v2757_v59 = vld [vmem:[%s6150_s13 + $0xf0] sm:$0xff]  ;;  %v2748_v49 = vld [vmem:[%s6150_s13 + $0xa8] sm:$0xff] }
 0xfe2   :  { %2867 = vmatprep.subr.mxu0 %v2736_v45  ;;  %2934 = vmatprep.subr.mxu1 %v2778_v20  ;;  %v2747_v45 = vld [vmem:[%s6150_s13 + $0xa0] sm:$0xff]  ;;  %v2749_v20 = vld [vmem:[%s6150_s13 + $0xb0] sm:$0xff] }
 0xfe3   :  { %2868 = vmatpush1.msra.mxu0 %v2735_v21  ;;  %2935 = vmatpush1.msra.mxu1 %v2777_v15  ;;  %v2740_v21 = vld [vmem:[%s6150_s13 + $0x68] sm:$0xff]  ;;  %v2742_v15 = vld [vmem:[%s6150_s13 + $0x78] sm:$0xff] }
 0xfe4   :  { %2869 = vmatprep.subr.mxu0 %v2728_v17  ;;  %2936 = vmatprep.subr.mxu1 %v2770_v22  ;;  %v2739_v17 = vld [vmem:[%s6150_s13 + $0x60] sm:$0xff]  ;;  %v2741_v22 = vld [vmem:[%s6150_s13 + $0x70] sm:$0xff] }
 0xfe5   :  { %2870 = vmatpush1.msra.mxu0 %v2727_v23  ;;  %2937 = vmatpush1.msra.mxu1 %v2769_v24  ;;  %v2732_v23 = vld [vmem:[%s6150_s13 + $0x28] sm:$0xff]  ;;  %v2734_v24 = vld [vmem:[%s6150_s13 + $0x38] sm:$0xff] }
 0xfe6   :  { %3657 = vmatmul.mubr.msk.f32.vlgmr.msra.gmra.mxu0 %vm399_vm5, %v5526_v27  ;;  %2938 = vmatprep.subr.mxu1 %v2762_v25  ;;  %v2731_v25 = vld [vmem:[%s6150_s13 + $0x20] sm:$0xff] }
 0xfe7   :  { %2939 = vmatpush1.msra.mxu1 %v2761_v26  ;;  %2980 = vmatprep.mubr.f32.mxu1 %v6225_v0  ;;  %v2733_v26 = vld [vmem:[%s6150_s13 + $0x30] sm:$0xff] }
 0xfe8   :  { %2940 = vmatprep.subr.mxu1 %v2754_v28  ;;  %2909 = vmatprep.mubr.f32.mxu0 %v6225_v0 }
 0xfe9   :  { %2941 = vmatpush1.msra.mxu1 %v2753_v29  ;;  %v3194_v29 = vld [vmem:[%s6152_s15 + $0xf8] sm:$0xff] }
 0xfea   :  { %2942 = vmatprep.subr.mxu1 %v2746_v30  ;;  %v3226_v30 = vld [vmem:[%s6152_s15 + $0x1f8] sm:$0xff] }
 0xfeb   :  { %2943 = vmatpush1.msra.mxu1 %v2745_v31 }
 0xfec   :  { %2944 = vmatprep.subr.mxu1 %v2738_v34 }
 0xfed   :  { %2945 = vmatpush1.msra.mxu1 %v2737_v35 }
 0xfee   :  { %2946 = vmatprep.subr.mxu1 %v2730_v38 }
 0xfef   :  { %2947 = vmatpush1.msra.mxu1 %v2729_v39  ;;  %v6273_v39 = vld [vmem:[#allocation4_spill] sm:$0xff] }
 0xff0   :  { %3659 = vmatmul.mubr.msk.f32.vlgmr.msra.gmra.mxu1 %vm399_vm5, %v5526_v27 }
 0xff1   :  { %2986 = vmatprep.mubr.f32.mxu1 %v6225_v0 }
0x1096   :  { %v2619_v41 = vpop.f32.mrf.mxu0 }
0x1098   :  { %v2621_v51 = vpop.f32.mrf.mxu0 }
0x10a0   :  { %v2696_v44 = vpop.f32.mrf.mxu1 }
0x10a1   :  { %v2697_v47 = vadd.f32 %v2696_v44, %v2619_v41  ;;  %v2807_v41 = vsub.s32 3, %v6273_v39 }
0x10a2   :  { %v2698_v36 = vpop.f32.mrf.mxu1 }
0x10a3   :  { %v2701_v37 = vadd.f32 %v2697_v47, %v4717_v8  ;;  %v2699_v33 = vadd.f32 %v2698_v36, %v2621_v51  ;;  %v2790_v8 = vld [vmem:[%s6150_s13 + $0x1f8] sm:$0xff]  ;;  %v5705_v51 = vld [vmem:[%s6153_s14] sm:$0xff]  ;;  %v6274_v36 = vld [vmem:[#allocation6_spill] sm:$0xff] }
0x10a4   :  { %3086 = vmatprep.subr.mxu1 %v2790_v8  ;;  %v3176_v8 = vld [vmem:[%s6152_s15 + $0x68] sm:$0xff] }
0x10a5   :  { %v2703_v54 = vmul.f32 0.5, %v2701_v37  ;;  %v2702_v32 = vadd.f32 %v2699_v33, %v4720_v43  ;;  %v2788_v43 = vld [vmem:[%s6150_s13 + $0x1e8] sm:$0xff]  ;;  %v5711_v37 = vrot.slane %v5705_v51, %v6274_v36  ;;  %v3178_v33 = vld [vmem:[%s6152_s15 + $0x78] sm:$0xff] }
0x10a6   :  { %3009 = vmatprep.subr.mxu0 %v2788_v43 }
0x10a7   :  { %3925 = vtanh.f32 %v2703_v54  ;;  %v2704_v58 = vmul.f32 %v2702_v32, %v4439_v52  ;;  %v3210_v54 = vld [vmem:[%s6152_s15 + $0x178] sm:$0xff] }
0x10a9   :  { %3927 = vtanh.f32 %v2704_v58  ;;  %v5720_v58 = vrot.slane %v5705_v51, %v2807_v41  ;;  %v6275_v41 = vld [vmem:[#allocation5_spill] sm:$0xff] }
0x10b0   :  { %v5698_v47 = vpop.f32.mrf.mxu1 }
0x10b4   :  { %v3926_v60 = vpop.eup %3925 }
0x10b5   :  { %v2707_v62 = vmul.f32 0.5, %v3926_v60  ;;  %v3193_v60 = vld [vmem:[%s6152_s15 + $0xf0] sm:$0xff] }
0x10b6   :  { %v3928_v1 = vpop.eup %3927 }
0x10b7   :  { %v2708_v3 = vmul.f32 %v3928_v1, %v4439_v52  ;;  %v2709_v4 = vadd.f32 0.5, %v2707_v62  ;;  %v2787_v52 = vld [vmem:[%s6150_s13 + $0x1e0] sm:$0xff]  ;;  %v3225_v62 = vld [vmem:[%s6152_s15 + $0x1f0] sm:$0xff]  ;;  %v2984_v1 = vpop.f32.mrf.mxu1 }
0x10b8   :  { %3010 = vmatpush1.msra.mxu0 %v2787_v52  ;;  %v2985_v43 = vadd.f32 %v2984_v1, %v5720_v58  ;;  %v3208_v52 = vld [vmem:[%s6152_s15 + $0x168] sm:$0xff]  ;;  %v3197_v1 = vld [vmem:[%s6152_s15 + $0x110] sm:$0xff] }
0x10b9   :  { %v5564_v11 = vadd.f32 %v2708_v3, %v4446_v10  ;;  %v2789_v10 = vld [vmem:[%s6150_s13 + $0x1f0] sm:$0xff]  ;;  %3011 = vmatprep.subr.mxu0 %v2780_v6  ;;  %v2711_v7 = vmul.f32 %v2709_v4, %v5442_v18  ;;  %v2774_v18 = vld [vmem:[%s6150_s13 + $0x178] sm:$0xff] }
0x10ba   :  { %3087 = vmatpush1.msra.mxu1 %v2789_v10  ;;  %3012 = vmatpush1.msra.mxu0 %v2779_v16  ;;  %v3177_v3 = vld [vmem:[%s6152_s15 + $0x70] sm:$0xff]  ;;  %v3191_v10 = vld [vmem:[%s6152_s15 + $0xe0] sm:$0xff] }
0x10bb   :  { %v2712_v40 = vmul.f32 %v5564_v11, %v2709_v4  ;;  %3088 = vmatprep.subr.mxu1 %v2782_v2  ;;  %3013 = vmatprep.subr.mxu0 %v2772_v13  ;;  %v3209_v4 = vld [vmem:[%s6152_s15 + $0x170] sm:$0xff]  ;;  %v3150_v2 = vmax.f32 %v2985_v43, 0.0  ;;  %v3175_v16 = vld [vmem:[%s6152_s15 + $0x60] sm:$0xff]  ;;  %v3196_v43 = vld [vmem:[%s6152_s15 + $0x108] sm:$0xff] }
0x10bc   :  { %3089 = vmatpush1.msra.mxu1 %v2781_v56  ;;  %3014 = vmatpush1.msra.mxu0 %v2771_v5  ;;  %v3207_v56 = vld [vmem:[%s6152_s15 + $0x160] sm:$0xff]  ;;  %v3189_v13 = vld [vmem:[%s6152_s15 + $0xd0] sm:$0xff] }
0x10bd   :  { %2714 = vrot.lane.b32.xlu0 %v2712_v40, %s3981_s9  ;;  %3090 = vmatprep.subr.mxu1 %v2774_v18  ;;  %v3192_v40 = vld [vmem:[%s6152_s15 + $0xe8] sm:$0xff]  ;;  %v3221_v18 = vld [vmem:[%s6152_s15 + $0x1d0] sm:$0xff] }
0x10be   :  { %3091 = vmatpush1.msra.mxu1 %v2773_v53  ;;  %3015 = vmatprep.subr.mxu0 %v2764_v19  ;;  %v3173_v5 = vld [vmem:[%s6152_s15 + $0x50] sm:$0xff]  ;;  %v3188_v19 = vld [vmem:[%s6152_s15 + $0xc8] sm:$0xff] }
0x10bf   :  { %3092 = vmatprep.subr.mxu1 %v2766_v63  ;;  %3016 = vmatpush1.msra.mxu0 %v2763_v42  ;;  %v3205_v53 = vld [vmem:[%s6152_s15 + $0x150] sm:$0xff]  ;;  %v3220_v63 = vld [vmem:[%s6152_s15 + $0x1c8] sm:$0xff] }
0x10c0   :  { %3093 = vmatpush1.msra.mxu1 %v2765_v55  ;;  %3017 = vmatprep.subr.mxu0 %v2756_v48  ;;  %v3172_v42 = vld [vmem:[%s6152_s15 + $0x48] sm:$0xff]  ;;  %v3187_v48 = vld [vmem:[%s6152_s15 + $0xc0] sm:$0xff] }
0x10c1   :  { %3600 = vrot.lane.b32.xlu0 %v5452_v12, %s3981_s9  ;;  %3094 = vmatprep.subr.mxu1 %v2758_v61  ;;  %v3204_v55 = vld [vmem:[%s6152_s15 + $0x148] sm:$0xff]  ;;  %v3219_v61 = vld [vmem:[%s6152_s15 + $0x1c0] sm:$0xff] }
0x10c2   :  { %3018 = vmatpush1.msra.mxu0 %v2755_v46  ;;  %3095 = vmatpush1.msra.mxu1 %v2757_v59  ;;  %v3171_v46 = vld [vmem:[%s6152_s15 + $0x40] sm:$0xff] }
0x10c3   :  { %3019 = vmatprep.subr.mxu0 %v2748_v49  ;;  %3096 = vmatprep.subr.mxu1 %v2750_v57  ;;  %v3203_v59 = vld [vmem:[%s6152_s15 + $0x140] sm:$0xff]  ;;  %v3186_v49 = vld [vmem:[%s6152_s15 + $0xb8] sm:$0xff] }
0x10c4   :  { %3020 = vmatpush1.msra.mxu0 %v2747_v45  ;;  %3097 = vmatpush1.msra.mxu1 %v2749_v20  ;;  %v3218_v57 = vld [vmem:[%s6152_s15 + $0x1b8] sm:$0xff] }
0x10c5   :  { %3021 = vmatprep.subr.mxu0 %v2740_v21  ;;  %3098 = vmatprep.subr.mxu1 %v2742_v15  ;;  %v3170_v45 = vld [vmem:[%s6152_s15 + $0x38] sm:$0xff]  ;;  %v3185_v21 = vld [vmem:[%s6152_s15 + $0xb0] sm:$0xff] }
0x10c6   :  { %3022 = vmatpush1.msra.mxu0 %v2739_v17  ;;  %3099 = vmatpush1.msra.mxu1 %v2741_v22  ;;  %v3202_v20 = vld [vmem:[%s6152_s15 + $0x138] sm:$0xff]  ;;  %v3217_v15 = vld [vmem:[%s6152_s15 + $0x1b0] sm:$0xff] }
0x10c7   :  { %3023 = vmatprep.subr.mxu0 %v2732_v23  ;;  %3100 = vmatprep.subr.mxu1 %v2734_v24  ;;  %v3169_v17 = vld [vmem:[%s6152_s15 + $0x30] sm:$0xff]  ;;  %v3184_v23 = vld [vmem:[%s6152_s15 + $0xa8] sm:$0xff] }
0x10c8   :  { %3024 = vmatpush1.msra.mxu0 %v2731_v25  ;;  %3101 = vmatpush1.msra.mxu1 %v2733_v26  ;;  %v3201_v22 = vld [vmem:[%s6152_s15 + $0x130] sm:$0xff]  ;;  %v3216_v24 = vld [vmem:[%s6152_s15 + $0x1a8] sm:$0xff]  ;;  %v2803_v25 = vsub.s32 2, %v6273_v39 }
0x10c9   :  { %3671 = vmatprep.subr.mxu0 %v3194_v29  ;;  %3709 = vmatprep.subr.mxu1 %v3226_v30  ;;  %v3168_v26 = vld [vmem:[%s6152_s15 + $0x28] sm:$0xff]  ;;  %v3183_v29 = vld [vmem:[%s6152_s15 + $0xa0] sm:$0xff] }
0x10ca   :  { %v3215_v30 = vld [vmem:[%s6152_s15 + $0x1a0] sm:$0xff]  ;;  %v5876_v36 = vrot.slane %v5705_v51, %v2803_v25 }
0x10cb   :  { %v3235_v25 = vld [vmem:[%s6152_s15 + $0x240] sm:$0xff] }
0x112f   :  { %v2715_v12 = vpop.permute.xlu0 %2714 }
0x1130   :  { %v2717_v14 = vadd.f32 %v2715_v12, %v2711_v7  ;;  %v3190_v7 = vld [vmem:[%s6152_s15 + $0xd8] sm:$0xff] }
0x1131   :  { %v3222_v12 = vld [vmem:[%s6152_s15 + $0x1d8] sm:$0xff] }
0x1132   :  { %3929 = vtanh.f32 %v2717_v14  ;;  %3612 = vrot.lane.b32.xlu0 %v2717_v14, %s3981_s9  ;;  %v3174_v14 = vld [vmem:[%s6152_s15 + $0x58] sm:$0xff] }
0x1133   :  { %v3601_v9 = vpop.permute.xlu0 %3600 }
0x1134   :  { %3604 = vst.msk [vmem:[%s6151_s18 - $0x6] sm:$0xc0] %vm3603_vm8, %v3601_v9  ;;  %v3206_v9 = vld [vmem:[%s6152_s15 + $0x158] sm:$0xff] }
0x113f   :  { %v3930_v28 = vpop.eup %3929 }
0x1140   :  { %v2719_v31 = vmul.f32 %v3930_v28, %v5564_v11  ;;  %v3200_v28 = vld [vmem:[%s6152_s15 + $0x128] sm:$0xff] }
0x1142   :  { %2721 = vrot.lane.b32.xlu1 %v2719_v31, %s3981_s9  ;;  %v3167_v31 = vld [vmem:[%s6152_s15 + $0x20] sm:$0xff] }
0x1146   :  { %3607 = vrot.lane.b32.xlu1 %v5445_v50, %s3981_s9  ;;  %v5695_v50 = vpop.f32.mrf.mxu0 }
0x1148   :  { %v2907_v32 = vpop.f32.mrf.mxu0 }
0x1149   :  { %v2908_v11 = vadd.f32 %v2907_v32, %v5711_v37  ;;  %v3181_v32 = vld [vmem:[%s6152_s15 + $0x90] sm:$0xff] }
0x114b   :  { %v3148_v6 = vmax.f32 %v2908_v11, 0.0 }
0x11a4   :  { %v3613_v34 = vpop.permute.xlu0 %3612 }
0x11a5   :  { %3615 = vst.msk [vmem:[%s6151_s18 + $0x6] sm:$0x3] %vm819_vm7, %v3613_v34  ;;  %v3199_v34 = vld [vmem:[%s6152_s15 + $0x120] sm:$0xff] }
0x11b4   :  { %v2722_v35 = vpop.permute.xlu1 %2721 }
0x11b5   :  { %2724 = vst.msk [vmem:[#allocation2 + $0xe] sm:$0x3] %vm819_vm7, %v2722_v35  ;;  %3605 = vst.msk [vmem:[%s6151_s18 + $0x2] sm:$0x3] %vm819_vm7, %v2722_v35  ;;  %v3182_v35 = vld [vmem:[%s6152_s15 + $0x98] sm:$0xff] }
0x11b8   :  { %v3608_v38 = vpop.permute.xlu1 %3607 }
0x11b9   :  { %3610 = vst.msk [vmem:[%s6151_s18 - $0x2] sm:$0xc0] %vm3603_vm8, %v3608_v38  ;;  %v3214_v38 = vld [vmem:[%s6152_s15 + $0x198] sm:$0xff] }
0x11bc   :  { %v2726_v44 = vld [vmem:[#allocation2 + $0x8] sm:$0xff] }
0x11bd   :  { %3658 = vmatmul.mubr.msk.f32.gmra.mxu0 %vm399_vm5, %v2726_v44  ;;  %3660 = vmatmul.mubr.msk.f32.gmra.mxu1 %vm399_vm5, %v2726_v44 }
0x11be   :  { %3057 = vmatprep.mubr.f32.mxu0 %v6225_v0  ;;  %3134 = vmatprep.mubr.f32.mxu1 %v6225_v0 }
0x11c1   :  { %3661 = vmatmul.mubr.msk.f32.vlgmr.msra.gmra.mxu0 %vm399_vm5, %v5526_v27  ;;  %3663 = vmatmul.mubr.msk.f32.vlgmr.msra.gmra.mxu1 %vm399_vm5, %v5526_v27  ;;  %v3224_v27 = vld [vmem:[%s6152_s15 + $0x1e8] sm:$0xff] }
0x11c2   :  { %3672 = vmatpush3.msra.mxu0 %v3178_v33  ;;  %3710 = vmatpush3.msra.mxu1 %v3210_v54  ;;  %v3166_v33 = vld [vmem:[%s6152_s15 + $0x18] sm:$0xff] }
0x11c3   :  { %3673 = vmatprep.subr.mxu0 %v3193_v60  ;;  %3711 = vmatprep.subr.mxu1 %v3225_v62  ;;  %v3198_v54 = vld [vmem:[%s6152_s15 + $0x118] sm:$0xff]  ;;  %v3213_v60 = vld [vmem:[%s6152_s15 + $0x190] sm:$0xff] }
0x11c4   :  { %3674 = vmatpush3.msra.mxu0 %v3177_v3  ;;  %3712 = vmatpush3.msra.mxu1 %v3209_v4  ;;  %v3165_v62 = vld [vmem:[%s6152_s15 + $0x10] sm:$0xff]  ;;  %v3180_v3 = vld [vmem:[%s6152_s15 + $0x88] sm:$0xff] }
0x11c5   :  { %3063 = vmatprep.mubr.f32.mxu0 %v6225_v0  ;;  %3140 = vmatprep.mubr.f32.mxu1 %v6225_v0  ;;  %v3223_v0 = vld [vmem:[%s6152_s15 + $0x1e0] sm:$0xff]  ;;  %v3212_v4 = vld [vmem:[%s6152_s15 + $0x188] sm:$0xff] }
0x11c6   :  { %3675 = vmatprep.subr.mxu0 %v3192_v40  ;;  %3713 = vmatprep.subr.mxu1 %v3224_v27  ;;  %v2983_v40 = vadd.f32 %v5698_v47, %v5876_v36  ;;  %v3164_v27 = vld [vmem:[%s6152_s15 + $0x8] sm:$0xff]  ;;  %v3163_v47 = vld [vmem:[%s6152_s15] sm:$0xff] }
0x11c7   :  { %3662 = vmatmul.mubr.msk.f32.gmra.mxu0 %vm399_vm5, %v2726_v44  ;;  %3664 = vmatmul.mubr.msk.f32.gmra.mxu1 %vm399_vm5, %v2726_v44  ;;  %v5873_v44 = vrot.slane %v5705_v51, %v6275_v41  ;;  %v3265_v41 = vld [vmem:[%s6152_s15 + $0x330] sm:$0xff] }
0x11c8   :  { %3676 = vmatpush3.msra.mxu0 %v3176_v8  ;;  %3714 = vmatpush3.msra.mxu1 %v3208_v52  ;;  %v3179_v8 = vld [vmem:[%s6152_s15 + $0x80] sm:$0xff] }
0x11c9   :  { %3677 = vmatprep.subr.mxu0 %v3191_v10  ;;  %3362 = vmatprep.mubr.f32.mxu0 %v3148_v6  ;;  %v2906_v11 = vadd.f32 %v5695_v50, %v5873_v44  ;;  %v3211_v50 = vld [vmem:[%s6152_s15 + $0x180] sm:$0xff]  ;;  %v3149_v6 = vmax.f32 %v2983_v40, 0.0  ;;  %v3278_v40 = vld [vmem:[%s6152_s15 + $0x398] sm:$0xff] }
0x11ca   :  { %3715 = vmatprep.subr.mxu1 %v3223_v0  ;;  %3437 = vmatprep.mubr.f32.mxu1 %v3150_v2  ;;  %v3195_v52 = vld [vmem:[%s6152_s15 + $0x100] sm:$0xff]  ;;  %v3258_v0 = vld [vmem:[%s6152_s15 + $0x2f8] sm:$0xff] }
0x11cb   :  { %3678 = vmatpush3.msra.mxu0 %v3175_v16  ;;  %3716 = vmatpush3.msra.mxu1 %v3207_v56  ;;  %v3147_v10 = vmax.f32 %v2906_v11, 0.0  ;;  %v3290_v2 = vld [vmem:[%s6152_s15 + $0x3f8] sm:$0xff] }
0x11cc   :  { %3679 = vmatprep.subr.mxu0 %v3190_v7  ;;  %3717 = vmatprep.subr.mxu1 %v3222_v12  ;;  %v3242_v16 = vld [vmem:[%s6152_s15 + $0x278] sm:$0xff]  ;;  %v3257_v7 = vld [vmem:[%s6152_s15 + $0x2f0] sm:$0xff] }
0x11cd   :  { %3680 = vmatpush3.msra.mxu0 %v3174_v14  ;;  %3718 = vmatpush3.msra.mxu1 %v3206_v9  ;;  %v3274_v56 = vld [vmem:[%s6152_s15 + $0x378] sm:$0xff]  ;;  %v3289_v12 = vld [vmem:[%s6152_s15 + $0x3f0] sm:$0xff] }
0x11ce   :  { %3681 = vmatprep.subr.mxu0 %v3189_v13  ;;  %3719 = vmatprep.subr.mxu1 %v3221_v18  ;;  %v3241_v14 = vld [vmem:[%s6152_s15 + $0x270] sm:$0xff]  ;;  %v3256_v13 = vld [vmem:[%s6152_s15 + $0x2e8] sm:$0xff]  ;;  %v3246_v11 = vld [vmem:[%s6152_s15 + $0x298] sm:$0xff] }
0x11cf   :  { %3682 = vmatpush3.msra.mxu0 %v3173_v5  ;;  %3720 = vmatpush3.msra.mxu1 %v3205_v53  ;;  %v3273_v9 = vld [vmem:[%s6152_s15 + $0x370] sm:$0xff]  ;;  %v3288_v18 = vld [vmem:[%s6152_s15 + $0x3e8] sm:$0xff] }
0x11d0   :  { %3683 = vmatprep.subr.mxu0 %v3188_v19  ;;  %3721 = vmatprep.subr.mxu1 %v3220_v63  ;;  %v3240_v5 = vld [vmem:[%s6152_s15 + $0x268] sm:$0xff]  ;;  %v3255_v19 = vld [vmem:[%s6152_s15 + $0x2e0] sm:$0xff] }
0x11d1   :  { %3684 = vmatpush3.msra.mxu0 %v3172_v42  ;;  %3722 = vmatpush3.msra.mxu1 %v3204_v55  ;;  %v3272_v53 = vld [vmem:[%s6152_s15 + $0x368] sm:$0xff]  ;;  %v3287_v63 = vld [vmem:[%s6152_s15 + $0x3e0] sm:$0xff] }
0x11d2   :  { %3685 = vmatprep.subr.mxu0 %v3187_v48  ;;  %3723 = vmatprep.subr.mxu1 %v3219_v61  ;;  %v3239_v42 = vld [vmem:[%s6152_s15 + $0x260] sm:$0xff]  ;;  %v3254_v48 = vld [vmem:[%s6152_s15 + $0x2d8] sm:$0xff] }
0x11d3   :  { %3686 = vmatpush3.msra.mxu0 %v3171_v46  ;;  %3724 = vmatpush3.msra.mxu1 %v3203_v59  ;;  %v3271_v55 = vld [vmem:[%s6152_s15 + $0x360] sm:$0xff]  ;;  %v3286_v61 = vld [vmem:[%s6152_s15 + $0x3d8] sm:$0xff] }
0x11d4   :  { %3687 = vmatprep.subr.mxu0 %v3186_v49  ;;  %3725 = vmatprep.subr.mxu1 %v3218_v57  ;;  %v3238_v46 = vld [vmem:[%s6152_s15 + $0x258] sm:$0xff]  ;;  %v3253_v49 = vld [vmem:[%s6152_s15 + $0x2d0] sm:$0xff] }
0x11d5   :  { %3688 = vmatpush3.msra.mxu0 %v3170_v45  ;;  %3726 = vmatpush3.msra.mxu1 %v3202_v20  ;;  %v3270_v59 = vld [vmem:[%s6152_s15 + $0x358] sm:$0xff]  ;;  %v3285_v57 = vld [vmem:[%s6152_s15 + $0x3d0] sm:$0xff] }
0x11d6   :  { %3689 = vmatprep.subr.mxu0 %v3185_v21  ;;  %3727 = vmatprep.subr.mxu1 %v3217_v15  ;;  %v3237_v45 = vld [vmem:[%s6152_s15 + $0x250] sm:$0xff]  ;;  %v3252_v21 = vld [vmem:[%s6152_s15 + $0x2c8] sm:$0xff] }
0x11d7   :  { %3690 = vmatpush3.msra.mxu0 %v3169_v17  ;;  %3728 = vmatpush3.msra.mxu1 %v3201_v22  ;;  %v3269_v20 = vld [vmem:[%s6152_s15 + $0x350] sm:$0xff]  ;;  %v3284_v15 = vld [vmem:[%s6152_s15 + $0x3c8] sm:$0xff] }
0x11d8   :  { %3691 = vmatprep.subr.mxu0 %v3184_v23  ;;  %3729 = vmatprep.subr.mxu1 %v3216_v24  ;;  %v3236_v17 = vld [vmem:[%s6152_s15 + $0x248] sm:$0xff]  ;;  %v3251_v23 = vld [vmem:[%s6152_s15 + $0x2c0] sm:$0xff] }
0x11d9   :  { %3692 = vmatpush3.msra.mxu0 %v3168_v26  ;;  %3730 = vmatpush3.msra.mxu1 %v3200_v28  ;;  %v3268_v22 = vld [vmem:[%s6152_s15 + $0x348] sm:$0xff]  ;;  %v3283_v24 = vld [vmem:[%s6152_s15 + $0x3c0] sm:$0xff]  ;;  %v3250_v28 = vld [vmem:[%s6152_s15 + $0x2b8] sm:$0xff] }
0x11da   :  { %3693 = vmatprep.subr.mxu0 %v3183_v29  ;;  %3731 = vmatprep.subr.mxu1 %v3215_v30  ;;  %v3267_v26 = vld [vmem:[%s6152_s15 + $0x340] sm:$0xff]  ;;  %v3282_v29 = vld [vmem:[%s6152_s15 + $0x3b8] sm:$0xff] }
0x11db   :  { %3694 = vmatpush3.msra.mxu0 %v3167_v31  ;;  %3732 = vmatpush3.msra.mxu1 %v3199_v34  ;;  %v3234_v30 = vld [vmem:[%s6152_s15 + $0x238] sm:$0xff]  ;;  %v3249_v34 = vld [vmem:[%s6152_s15 + $0x2b0] sm:$0xff] }
0x11dc   :  { %3695 = vmatprep.subr.mxu0 %v3182_v35  ;;  %3733 = vmatprep.subr.mxu1 %v3214_v38  ;;  %v3266_v31 = vld [vmem:[%s6152_s15 + $0x338] sm:$0xff]  ;;  %v3281_v35 = vld [vmem:[%s6152_s15 + $0x3b0] sm:$0xff] }
0x11dd   :  { %3696 = vmatpush3.msra.mxu0 %v3166_v33  ;;  %3734 = vmatpush3.msra.mxu1 %v3198_v54  ;;  %v3233_v38 = vld [vmem:[%s6152_s15 + $0x230] sm:$0xff]  ;;  %v3248_v33 = vld [vmem:[%s6152_s15 + $0x2a8] sm:$0xff] }
0x11de   :  { %3697 = vmatprep.subr.mxu0 %v3181_v32  ;;  %3735 = vmatprep.subr.mxu1 %v3213_v60  ;;  %v3280_v54 = vld [vmem:[%s6152_s15 + $0x3a8] sm:$0xff] }
0x11df   :  { %3698 = vmatpush3.msra.mxu0 %v3165_v62  ;;  %3736 = vmatpush3.msra.mxu1 %v3197_v1  ;;  %v3232_v32 = vld [vmem:[%s6152_s15 + $0x228] sm:$0xff]  ;;  %v3247_v62 = vld [vmem:[%s6152_s15 + $0x2a0] sm:$0xff] }
0x11e0   :  { %3699 = vmatprep.subr.mxu0 %v3180_v3  ;;  %3737 = vmatprep.subr.mxu1 %v3212_v4  ;;  %v3264_v60 = vld [vmem:[%s6152_s15 + $0x328] sm:$0xff]  ;;  %v3279_v1 = vld [vmem:[%s6152_s15 + $0x3a0] sm:$0xff] }
0x11e1   :  { %3700 = vmatpush3.msra.mxu0 %v3164_v27  ;;  %3738 = vmatpush3.msra.mxu1 %v3196_v43  ;;  %v3231_v3 = vld [vmem:[%s6152_s15 + $0x220] sm:$0xff]  ;;  %v3230_v27 = vld [vmem:[%s6152_s15 + $0x218] sm:$0xff] }
0x11e2   :  { %3701 = vmatprep.subr.mxu0 %v3179_v8  ;;  %3739 = vmatprep.subr.mxu1 %v3211_v50  ;;  %v3263_v4 = vld [vmem:[%s6152_s15 + $0x320] sm:$0xff]  ;;  %v3262_v43 = vld [vmem:[%s6152_s15 + $0x318] sm:$0xff]  ;;  %v3245_v8 = vld [vmem:[%s6152_s15 + $0x290] sm:$0xff] }
0x11e3   :  { %3702 = vmatpush3.msra.mxu0 %v3163_v47  ;;  %3740 = vmatpush3.msra.mxu1 %v3195_v52  ;;  %v3277_v50 = vld [vmem:[%s6152_s15 + $0x390] sm:$0xff] }
0x11e4   :  { %3363 = vmatmul.mubr.f32.vlgmr.msra.gmra.mxu0 %v3147_v10  ;;  %3438 = vmatmul.mubr.f32.vlgmr.msra.gmra.mxu1 %v3149_v6  ;;  %v3229_v47 = vld [vmem:[%s6152_s15 + $0x210] sm:$0xff]  ;;  %v3244_v10 = vld [vmem:[%s6152_s15 + $0x288] sm:$0xff] }
0x11e5   :  { %3747 = vmatprep.subr.mxu0 %v3258_v0  ;;  %3785 = vmatprep.subr.mxu1 %v3290_v2  ;;  %v3261_v52 = vld [vmem:[%s6152_s15 + $0x310] sm:$0xff]  ;;  %v3276_v6 = vld [vmem:[%s6152_s15 + $0x388] sm:$0xff] }
0x11e6   :  { %3748 = vmatpush3.msra.mxu0 %v3242_v16  ;;  %3786 = vmatpush3.msra.mxu1 %v3274_v56  ;;  %v3228_v0 = vld [vmem:[%s6152_s15 + $0x208] sm:$0xff]  ;;  %v3243_v16 = vld [vmem:[%s6152_s15 + $0x280] sm:$0xff] }
0x11e7   :  { %3749 = vmatprep.subr.mxu0 %v3257_v7  ;;  %3787 = vmatprep.subr.mxu1 %v3289_v12  ;;  %v3260_v2 = vld [vmem:[%s6152_s15 + $0x308] sm:$0xff]  ;;  %v3275_v56 = vld [vmem:[%s6152_s15 + $0x380] sm:$0xff] }
0x11e8   :  { %3750 = vmatpush3.msra.mxu0 %v3241_v14  ;;  %3788 = vmatpush3.msra.mxu1 %v3273_v9  ;;  %v3227_v7 = vld [vmem:[%s6152_s15 + $0x200] sm:$0xff]  ;;  %v2811_v14 = vsub.s32 4, %v6273_v39  ;;  %v2819_v9 = vsub.s32 6, %v6273_v39 }
0x11e9   :  { %3751 = vmatprep.subr.mxu0 %v3256_v13  ;;  %3789 = vmatprep.subr.mxu1 %v3288_v18  ;;  %v3259_v12 = vld [vmem:[%s6152_s15 + $0x300] sm:$0xff]  ;;  %v2815_v13 = vsub.s32 5, %v6273_v39  ;;  %v2823_v18 = vsub.s32 7, %v6273_v39 }
0x11ea   :  { %3752 = vmatpush3.msra.mxu0 %v3240_v5  ;;  %3790 = vmatpush3.msra.mxu1 %v3272_v53 }
0x11eb   :  { %3753 = vmatprep.subr.mxu0 %v3255_v19  ;;  %3791 = vmatprep.subr.mxu1 %v3287_v63  ;;  %v2824_v39 = vrot.slane %v5705_v51, %v2823_v18 }
0x11ec   :  { %3754 = vmatpush3.msra.mxu0 %v3239_v42  ;;  %3792 = vmatpush3.msra.mxu1 %v3271_v55 }
0x11ed   :  { %3755 = vmatprep.subr.mxu0 %v3254_v48  ;;  %3793 = vmatprep.subr.mxu1 %v3286_v61  ;;  %v2812_v48 = vrot.slane %v5705_v51, %v2811_v14  ;;  %v2820_v61 = vrot.slane %v5705_v51, %v2819_v9 }
0x11ee   :  { %3756 = vmatpush3.msra.mxu0 %v3238_v46  ;;  %3794 = vmatpush3.msra.mxu1 %v3270_v59 }
0x11ef   :  { %3757 = vmatprep.subr.mxu0 %v3253_v49  ;;  %3795 = vmatprep.subr.mxu1 %v3285_v57  ;;  %v2816_v49 = vrot.slane %v5705_v51, %v2815_v13 }
0x11f0   :  { %3758 = vmatpush3.msra.mxu0 %v3237_v45  ;;  %3796 = vmatpush3.msra.mxu1 %v3269_v20 }
0x11f1   :  { %3759 = vmatprep.subr.mxu0 %v3252_v21  ;;  %3797 = vmatprep.subr.mxu1 %v3284_v15 }
0x11f2   :  { %3760 = vmatpush3.msra.mxu0 %v3236_v17  ;;  %3798 = vmatpush3.msra.mxu1 %v3268_v22 }
0x11f3   :  { %3761 = vmatprep.subr.mxu0 %v3251_v23  ;;  %3799 = vmatprep.subr.mxu1 %v3283_v24 }
0x11f4   :  { %3762 = vmatpush3.msra.mxu0 %v3235_v25  ;;  %3800 = vmatpush3.msra.mxu1 %v3267_v26 }
0x11f5   :  { %3763 = vmatprep.subr.mxu0 %v3250_v28  ;;  %3801 = vmatprep.subr.mxu1 %v3282_v29 }
0x11f6   :  { %3764 = vmatpush3.msra.mxu0 %v3234_v30  ;;  %3802 = vmatpush3.msra.mxu1 %v3266_v31 }
0x11f7   :  { %3765 = vmatprep.subr.mxu0 %v3249_v34  ;;  %3803 = vmatprep.subr.mxu1 %v3281_v35 }
0x11f8   :  { %3766 = vmatpush3.msra.mxu0 %v3233_v38  ;;  %3804 = vmatpush3.msra.mxu1 %v3265_v41 }
0x11f9   :  { %3767 = vmatprep.subr.mxu0 %v3248_v33  ;;  %3805 = vmatprep.subr.mxu1 %v3280_v54 }
0x11fa   :  { %3768 = vmatpush3.msra.mxu0 %v3232_v32  ;;  %3806 = vmatpush3.msra.mxu1 %v3264_v60 }
0x11fb   :  { %3769 = vmatprep.subr.mxu0 %v3247_v62  ;;  %3807 = vmatprep.subr.mxu1 %v3279_v1 }
0x11fc   :  { %3770 = vmatpush3.msra.mxu0 %v3231_v3  ;;  %3808 = vmatpush3.msra.mxu1 %v3263_v4 }
0x11fd   :  { %3771 = vmatprep.subr.mxu0 %v3246_v11  ;;  %3809 = vmatprep.subr.mxu1 %v3278_v40  ;;  %v3665_v40 = vld [vmem:[%s6154_s16] ss:$0 sm:$0xff] }
0x11fe   :  { %3772 = vmatpush3.msra.mxu0 %v3230_v27  ;;  %3810 = vmatpush3.msra.mxu1 %v3262_v43 }
0x11ff   :  { %3773 = vmatprep.subr.mxu0 %v3245_v8  ;;  %3811 = vmatprep.subr.mxu1 %v3277_v50 }
0x1200   :  { %3774 = vmatpush3.msra.mxu0 %v3229_v47  ;;  %3812 = vmatpush3.msra.mxu1 %v3261_v52 }
0x1201   :  { %3775 = vmatprep.subr.mxu0 %v3244_v10  ;;  %3813 = vmatprep.subr.mxu1 %v3276_v6 }
0x1202   :  { %3776 = vmatpush3.msra.mxu0 %v3228_v0  ;;  %3814 = vmatpush3.msra.mxu1 %v3260_v2 }
0x1203   :  { %3777 = vmatprep.subr.mxu0 %v3243_v16  ;;  %3815 = vmatprep.subr.mxu1 %v3275_v56 }
0x1204   :  { %3778 = vmatpush3.msra.mxu0 %v3227_v7  ;;  %3816 = vmatpush3.msra.mxu1 %v3259_v12 }
0x127d   :  { %v2911_v5 = vpop.f32.mrf.mxu0  ;;  %v2988_v53 = vpop.f32.mrf.mxu1 }
0x127e   :  { %v2912_v19 = vadd.f32 %v2911_v5, %v5873_v44  ;;  %v2989_v63 = vadd.f32 %v2988_v53, %v5876_v36 }
0x127f   :  { %v2913_v42 = vpop.f32.mrf.mxu0  ;;  %v2990_v55 = vpop.f32.mrf.mxu1 }
0x1280   :  { %v2914_v46 = vadd.f32 %v2913_v42, %v5711_v37  ;;  %v2991_v59 = vadd.f32 %v2990_v55, %v5720_v58  ;;  %v3155_v21 = vmax.f32 %v2912_v19, 0.0  ;;  %v3157_v36 = vmax.f32 %v2989_v63, 0.0 }
0x1281   :  { %v3059_v57 = vpop.f32.mrf.mxu0  ;;  %v3136_v45 = vpop.f32.mrf.mxu1 }
0x1282   :  { %v3156_v20 = vmax.f32 %v2914_v46, 0.0  ;;  %v3158_v44 = vmax.f32 %v2991_v59, 0.0  ;;  %v3060_v15 = vadd.f32 %v3059_v57, %v2812_v48  ;;  %v3137_v17 = vadd.f32 %v3136_v45, %v2820_v61 }
0x1283   :  { %v3061_v22 = vpop.f32.mrf.mxu0  ;;  %v3138_v23 = vpop.f32.mrf.mxu1 }
0x1284   :  { %v3062_v24 = vadd.f32 %v3061_v22, %v2816_v49  ;;  %v3139_v25 = vadd.f32 %v3138_v23, %v2824_v39  ;;  %3367 = vmatprep.mubr.f32.mxu0 %v3156_v20  ;;  %3442 = vmatprep.mubr.f32.mxu1 %v3158_v44  ;;  %v3151_v26 = vmax.f32 %v3060_v15, 0.0  ;;  %v3153_v51 = vmax.f32 %v3137_v17, 0.0 }
0x1285   :  { %3368 = vmatmul.mubr.f32.gmra.mxu0 %v3155_v21  ;;  %3443 = vmatmul.mubr.f32.gmra.mxu1 %v3157_v36 }
0x1286   :  { %v3152_v37 = vmax.f32 %v3062_v24, 0.0  ;;  %v3154_v58 = vmax.f32 %v3139_v25, 0.0 }
0x1287   :  { %v3065_v28 = vpop.f32.mrf.mxu0  ;;  %v3142_v29 = vpop.f32.mrf.mxu1 }
0x1288   :  { %3512 = vmatprep.mubr.f32.mxu0 %v3152_v37  ;;  %3587 = vmatprep.mubr.f32.mxu1 %v3154_v58  ;;  %v3066_v30 = vadd.f32 %v3065_v28, %v2812_v48  ;;  %v3143_v31 = vadd.f32 %v3142_v29, %v2820_v61 }
0x1289   :  { %v3067_v34 = vpop.f32.mrf.mxu0  ;;  %v3144_v35 = vpop.f32.mrf.mxu1  ;;  %3513 = vmatmul.mubr.f32.vlgmr.msra.gmra.mxu0 %v3151_v26  ;;  %3588 = vmatmul.mubr.f32.vlgmr.msra.gmra.mxu1 %v3153_v51 }
0x128a   :  { %v3068_v38 = vadd.f32 %v3067_v34, %v2816_v49  ;;  %v3145_v41 = vadd.f32 %v3144_v35, %v2824_v39  ;;  %v3159_v32 = vmax.f32 %v3066_v30, 0.0  ;;  %v3161_v60 = vmax.f32 %v3143_v31, 0.0 }
0x128c   :  { %v3160_v33 = vmax.f32 %v3068_v38, 0.0  ;;  %v3162_v54 = vmax.f32 %v3145_v41, 0.0 }
0x128e   :  { %3517 = vmatprep.mubr.f32.mxu0 %v3160_v33  ;;  %3592 = vmatprep.mubr.f32.mxu1 %v3162_v54 }
0x128f   :  { %3518 = vmatmul.mubr.f32.gmra.mxu0 %v3159_v32  ;;  %3593 = vmatmul.mubr.f32.gmra.mxu1 %v3161_v60 }
0x12a4   :  { %v3703_v62 = vpop.f32.mrf.mxu0  ;;  %v3741_v1 = vpop.f32.mrf.mxu1 }
0x12a6   :  { %v3704_v3 = vpop.f32.mrf.mxu0  ;;  %v3742_v4 = vpop.f32.mrf.mxu1 }
0x12a7   :  { %v3705_v11 = vadd.f32 %v3704_v3, %v3703_v62  ;;  %v3743_v6 = vadd.f32 %v3742_v4, %v3741_v1 }
0x12a9   :  { %v3365_v47 = vadd.f32 %v3705_v11, %v3665_v40 }
0x12ab   :  { %v3440_v56 = vadd.f32 %v3743_v6, %v3365_v47 }
0x1345   :  { %v3706_v27 = vpop.f32.mrf.mxu0  ;;  %v3744_v43 = vpop.f32.mrf.mxu1 }
0x1347   :  { %v3707_v8 = vpop.f32.mrf.mxu0  ;;  %v3745_v50 = vpop.f32.mrf.mxu1 }
0x1348   :  { %v3708_v0 = vadd.f32 %v3707_v8, %v3706_v27  ;;  %v3746_v5 = vadd.f32 %v3745_v50, %v3744_v43 }
0x1349   :  { %v3779_v52 = vpop.f32.mrf.mxu0  ;;  %v3817_v10 = vpop.f32.mrf.mxu1 }
0x134a   :  { %v3370_v12 = vadd.f32 %v3708_v0, %v3665_v40 }
0x134b   :  { %v3780_v2 = vpop.f32.mrf.mxu0  ;;  %v3818_v16 = vpop.f32.mrf.mxu1 }
0x134c   :  { %v3781_v7 = vadd.f32 %v3780_v2, %v3779_v52  ;;  %v3819_v9 = vadd.f32 %v3818_v16, %v3817_v10  ;;  %v3445_v42 = vadd.f32 %v3746_v5, %v3370_v12 }
0x134e   :  { %v3515_v14 = vadd.f32 %v3781_v7, %v3440_v56 }
0x134f   :  { %v3782_v13 = vpop.f32.mrf.mxu0  ;;  %v3820_v18 = vpop.f32.mrf.mxu1 }
0x1350   :  { %v3590_v53 = vadd.f32 %v3819_v9, %v3515_v14 }
0x1351   :  { %v3783_v19 = vpop.f32.mrf.mxu0  ;;  %v3821_v63 = vpop.f32.mrf.mxu1 }
0x1352   :  { %3598 = vst [vmem:[%s6155_s17] sm:$0xff] %v3590_v53  ;;  %v3784_v55 = vadd.f32 %v3783_v19, %v3782_v13  ;;  %v3822_v61 = vadd.f32 %v3821_v63, %v3820_v18 }
0x1354   :  { %v3520_v48 = vadd.f32 %v3784_v55, %v3445_v42 }
0x1356   :  { %v3595_v46 = vadd.f32 %v3822_v61, %v3520_v48 }
0x1358   :  { %3599 = vst [vmem:[%s6155_s17 + $0x8] sm:$0xff] %v3595_v46 }

</bundles_post_ra>
